<compile_context>
chip_gen: v6e
topology: v6e:2x2x1
jax: 0.10.0
libtpu: 0.0.40
codegen_flags: <defaults>
</compile_context>

<pallas_src>
import functools

import jax
import jax.numpy as jnp
from jax import lax
from jax.experimental import pallas as pl
from jax.experimental.pallas import tpu as pltpu

BN_EPS = 1e-5   # PyTorch BatchNorm2d default
LANES = 128


def _ceil_to(v, m):
    return (v + m - 1) // m * m


# ----------------------------------------------------------------------------
# In-kernel helpers
# ----------------------------------------------------------------------------
def _fill_padded(pad_ref, h, H, W):
    """Zero only the 1-px halo border and write h (1,H,W,Cp) into the interior."""
    Hp = H + 2
    Wp = pad_ref.shape[2]          # W+2 rounded up to a multiple of 8
    Cp = pad_ref.shape[3]
    zrow = jnp.zeros((1, 1, Wp, Cp), pad_ref.dtype)
    pad_ref[:, 0:1, :, :] = zrow
    pad_ref[:, H + 1:H + 2, :, :] = zrow
    zcol = jnp.zeros((1, Hp, 1, Cp), pad_ref.dtype)
    pad_ref[:, :, 0:1, :] = zcol
    pad_ref[:, :, W + 1:W + 2, :] = zcol
    pad_ref[:, 1:H + 1, 1:W + 1, :] = h.astype(pad_ref.dtype)


def _im2col(pad_ref, col_ref, H, W):
    """Scatter the 9 conv taps into col_ref (H*W, 9*Cp), tap-major (dy*3+dx)."""
    Cp = pad_ref.shape[3]
    for dy in range(3):
        for dx in range(3):
            tap = dy * 3 + dx
            patch = pad_ref[:, dy:dy + H, dx:dx + W, :].reshape(H * W, Cp)
            col_ref[:, tap * Cp:(tap + 1) * Cp] = patch


# ----------------------------------------------------------------------------
# Pallas kernels (grid over batch)
# ----------------------------------------------------------------------------
def gblock_conv1_kernel(x_ref, s1_ref, t1_ref, w1_ref, b1_ref,
                        h1_ref, pad_ref, col_ref):
    """h1 = conv3x3_a(relu(BN1(x))); BN1 scale/shift precomputed (f32)."""
    _, H, W, Cp = x_ref.shape
    h = jnp.maximum(x_ref[...] * s1_ref[...] + t1_ref[...], 0.0)   # f32 BN+ReLU
    _fill_padded(pad_ref, h, H, W)
    _im2col(pad_ref, col_ref, H, W)
    # single fused MXU matmul, K = 9*Cp, bf16 inputs / f32 accumulation
    y = jnp.dot(col_ref[...], w1_ref[...],
                preferred_element_type=jnp.float32) + b1_ref[...]
    h1_ref[...] = y.reshape(1, H, W, Cp).astype(h1_ref.dtype)


def gblock_conv2_kernel(identity_sc, x_ref, h1_ref, s2_ref, t2_ref,
                        w2_ref, b2_ref, *refs):
    """out = conv3x3_b(relu(BN2(h1))) + shortcut(x)."""
    if identity_sc:
        o_ref, pad_ref, col_ref = refs
    else:
        wsc_ref, bsc_ref, o_ref, pad_ref, col_ref = refs
    _, H, W, Cp = h1_ref.shape
    Cop = o_ref.shape[3]
    h = jnp.maximum(h1_ref[...] * s2_ref[...] + t2_ref[...], 0.0)
    _fill_padded(pad_ref, h, H, W)
    _im2col(pad_ref, col_ref, H, W)
    y = jnp.dot(col_ref[...], w2_ref[...],
                preferred_element_type=jnp.float32) + b2_ref[...]
    if identity_sc:
        # Cin == Cout: the module skips conv_1x1 -> no matmul, just add x.
        sc = x_ref[...].reshape(H * W, Cp)
    else:
        sc = jnp.dot(x_ref[...].astype(jnp.bfloat16).reshape(H * W, Cp),
                     wsc_ref[...],
                     preferred_element_type=jnp.float32) + bsc_ref[...]
    o_ref[...] = (y + sc).reshape(1, H, W, Cop).astype(o_ref.dtype)


# ----------------------------------------------------------------------------
# Wrapper (NCHW in / NCHW out, like PyTorch)
# ----------------------------------------------------------------------------
def gblock_forward(x_nchw, p):
    x = jnp.transpose(x_nchw, (0, 2, 3, 1)).astype(jnp.float32)   # NCHW -> NHWC
    B, H, W, Cin = x.shape
    Cout = p["cout"]
    Cp_in, Cp_out = p["cp_in"], p["cp_out"]
    Wp = _ceil_to(W + 2, 8)
    n_pix = B * H * W
    identity_sc = (p["cin"] == p["cout"])

    # lane-pad channels to a multiple of 128 (padded channels stay exactly 0)
    xp = jnp.pad(x, ((0, 0), (0, 0), (0, 0), (0, Cp_in - Cin)))

    # --- BN1: training-mode batch statistics, global, f32 (so batch tiling in
    #     the kernels cannot change semantics); two-pass variance via jnp.var --
    m1 = jnp.mean(xp, axis=(0, 1, 2))
    v1 = jnp.var(xp, axis=(0, 1, 2))
    sc1 = p["g1_p"] * lax.rsqrt(v1 + BN_EPS)
    sh1 = p["bb1_p"] - m1 * sc1

    act_spec_in = pl.BlockSpec((1, H, W, Cp_in), lambda b: (b, 0, 0, 0))
    act_spec_out = pl.BlockSpec((1, H, W, Cp_out), lambda b: (b, 0, 0, 0))

    def vec_spec(c):
        return pl.BlockSpec((1, c), lambda b: (0, 0))

    def mat_spec(r, c):
        # constant index_map -> weights stay VMEM-resident across grid steps
        return pl.BlockSpec((r, c), lambda b: (0, 0))

    scratch = [pltpu.VMEM((1, H + 2, Wp, Cp_in), jnp.bfloat16),   # padded activ.
               pltpu.VMEM((H * W, 9 * Cp_in), jnp.bfloat16)]      # im2col buffer

    cparams = pltpu.CompilerParams(
        dimension_semantics=("parallel",),        # megacore-shard the batch grid
        vmem_limit_bytes=32 * 1024 * 1024)

    # --- kernel 1: relu(bn1(x)) -> 3x3 conv (Cin -> Cin) ----------------------
    ce1 = pl.CostEstimate(
        flops=2 * n_pix * 9 * Cp_in * Cp_in,
        transcendentals=0,
        bytes_accessed=xp.size * 4 + n_pix * Cp_in * 4 + 9 * Cp_in * Cp_in * 2)
    h1 = pl.pallas_call(
        gblock_conv1_kernel,
        out_shape=jax.ShapeDtypeStruct((B, H, W, Cp_in), jnp.float32),
        grid=(B,),
        in_specs=[act_spec_in, vec_spec(Cp_in), vec_spec(Cp_in),
                  mat_spec(9 * Cp_in, Cp_in), vec_spec(Cp_in)],
        out_specs=act_spec_in,
        scratch_shapes=scratch,
        compiler_params=cparams,
        cost_estimate=ce1,
    )(xp, sc1.reshape(1, Cp_in), sh1.reshape(1, Cp_in), p["w1_k"], p["b1_k"])

    # --- BN2 statistics from the intermediate (global, f32) -------------------
    m2 = jnp.mean(h1, axis=(0, 1, 2))
    v2 = jnp.var(h1, axis=(0, 1, 2))
    sc2 = p["g2_p"] * lax.rsqrt(v2 + BN_EPS)
    sh2 = p["bb2_p"] - m2 * sc2

    # --- kernel 2: relu(bn2(h1)) -> 3x3 conv (Cin -> Cout), + shortcut --------
    in_specs2 = [act_spec_in, act_spec_in, vec_spec(Cp_in), vec_spec(Cp_in),
                 mat_spec(9 * Cp_in, Cp_out), vec_spec(Cp_out)]
    args2 = [xp, h1, sc2.reshape(1, Cp_in), sh2.reshape(1, Cp_in),
             p["w2_k"], p["b2_k"]]
    sc_flops = 0
    if not identity_sc:
        in_specs2 += [mat_spec(Cp_in, Cp_out), vec_spec(Cp_out)]
        args2 += [p["wsc_k"], p["bsc_k"]]
        sc_flops = 2 * n_pix * Cp_in * Cp_out
    ce2 = pl.CostEstimate(
        flops=2 * n_pix * 9 * Cp_in * Cp_out + sc_flops,
        transcendentals=0,
        bytes_accessed=(xp.size + h1.size) * 4 + n_pix * Cp_out * 4
                       + 9 * Cp_in * Cp_out * 2)
    out_p = pl.pallas_call(
        functools.partial(gblock_conv2_kernel, identity_sc),
        out_shape=jax.ShapeDtypeStruct((B, H, W, Cp_out), jnp.float32),
        grid=(B,),
        in_specs=in_specs2,
        out_specs=act_spec_out,
        scratch_shapes=scratch,
        compiler_params=cparams,
        cost_estimate=ce2,
    )(*args2)

    # TODO(synk): for very large H*W also tile H with a 1-row halo so per-step
    # VMEM stays inside the v7x 64 MiB budget (BN stats are already global).
    out = out_p[..., :Cout]
    return jnp.transpose(out, (0, 3, 1, 2))   # NHWC -> NCHW


# ----------------------------------------------------------------------------
# Parameter setup (plain JAX glue, done once)
# ----------------------------------------------------------------------------
def spectral_normalize(w, key, eps=1e-4, n_iter=30):
    """Approximate torch spectral_norm: divide by the top singular value of the
    (Cout, Cin*kh*kw) reshape, estimated with power iteration."""
    mat = w.reshape(w.shape[0], -1)
    u = jax.random.normal(key, (mat.shape[0],), jnp.float32)
    u = u / (jnp.linalg.norm(u) + eps)
    for _ in range(n_iter):
        v = mat.T @ u
        v = v / (jnp.linalg.norm(v) + eps)
        u = mat @ v
        u = u / (jnp.linalg.norm(u) + eps)
    sigma = u @ (mat @ v)
    return w / sigma


def make_gblock_params(key, cin, cout):
    ks = jax.random.split(key, 13)
    # PyTorch-layout weights (Cout, Cin, kh, kw)
    w1 = 0.2 * jax.random.normal(ks[0], (cin, cin, 3, 3), jnp.float32)
    b1 = 0.05 * jax.random.normal(ks[1], (cin,), jnp.float32)
    w2 = 0.2 * jax.random.normal(ks[2], (cout, cin, 3, 3), jnp.float32)
    b2 = 0.05 * jax.random.normal(ks[3], (cout,), jnp.float32)
    wsc = 0.2 * jax.random.normal(ks[4], (cout, cin, 1, 1), jnp.float32)
    bsc = 0.05 * jax.random.normal(ks[5], (cout,), jnp.float32)
    g1 = 1.0 + 0.1 * jax.random.normal(ks[6], (cin,), jnp.float32)
    bb1 = 0.05 * jax.random.normal(ks[7], (cin,), jnp.float32)
    g2 = 1.0 + 0.1 * jax.random.normal(ks[8], (cin,), jnp.float32)
    bb2 = 0.05 * jax.random.normal(ks[9], (cin,), jnp.float32)

    w1 = spectral_normalize(w1, ks[10])
    w2 = spectral_normalize(w2, ks[11])
    wsc = spectral_normalize(wsc, ks[12])

    w1_hwio = jnp.transpose(w1, (2, 3, 1, 0))   # (3,3,cin,cin)
    w2_hwio = jnp.transpose(w2, (2, 3, 1, 0))   # (3,3,cin,cout)
    wsc_io = wsc[:, :, 0, 0].T                  # (cin, cout)

    cp_in, cp_out = _ceil_to(cin, LANES), _ceil_to(cout, LANES)

    def padv(v, c):
        return jnp.pad(v, (0, c - v.shape[0]))

    w1_p = jnp.pad(w1_hwio, ((0, 0), (0, 0), (0, cp_in - cin), (0, cp_in - cin)))
    w2_p = jnp.pad(w2_hwio, ((0, 0), (0, 0), (0, cp_in - cin), (0, cp_out - cout)))
    wsc_p = jnp.pad(wsc_io, ((0, cp_in - cin), (0, cp_out - cout)))

    return dict(
        cin=cin, cout=cout, cp_in=cp_in, cp_out=cp_out,
        # reference-layout params
        g1=g1, bb1=bb1, g2=g2, bb2=bb2,
        w1_hwio=w1_hwio, b1=b1, w2_hwio=w2_hwio, b2=b2, wsc=wsc_io, bsc=bsc,
        # kernel-layout params: channel-padded, tap-major flattened, bf16 weights
        g1_p=padv(g1, cp_in), bb1_p=padv(bb1, cp_in),
        g2_p=padv(g2, cp_in), bb2_p=padv(bb2, cp_in),
        w1_k=w1_p.reshape(9 * cp_in, cp_in).astype(jnp.bfloat16),
        b1_k=padv(b1, cp_in).reshape(1, cp_in),
        w2_k=w2_p.reshape(9 * cp_in, cp_out).astype(jnp.bfloat16),
        b2_k=padv(b2, cp_out).reshape(1, cp_out),
        wsc_k=wsc_p.astype(jnp.bfloat16),
        bsc_k=padv(bsc, cp_out).reshape(1, cp_out),
    )


# ----------------------------------------------------------------------------
# Pure-JAX reference with the same bf16-input / f32-accumulate MXU numerics
# ----------------------------------------------------------------------------
def gblock_reference(x_nchw, p):
    x = jnp.transpose(x_nchw, (0, 2, 3, 1)).astype(jnp.float32)

    def bn(v, g, b):
        m = jnp.mean(v, axis=(0, 1, 2))
        var = jnp.var(v, axis=(0, 1, 2))
        return (v - m) * (g * lax.rsqrt(var + BN_EPS)) + b

    def conv3(v, w_hwio, b):
        y = lax.conv_general_dilated(
            v.astype(jnp.bfloat16), w_hwio.astype(jnp.bfloat16),
            window_strides=(1, 1), padding="SAME",
            dimension_numbers=("NHWC", "HWIO", "NHWC"),
            preferred_element_type=jnp.float32)
        return y + b

    if p["cin"] != p["cout"]:
        sc = jnp.einsum("bhwc,co->bhwo", x.astype(jnp.bfloat16),
                        p["wsc"].astype(jnp.bfloat16),
                        preferred_element_type=jnp.float32) + p["bsc"]
    else:
        sc = x
    h = jax.nn.relu(bn(x, p["g1"], p["bb1"]))
    h = conv3(h, p["w1_hwio"], p["b1"])
    h = jax.nn.relu(bn(h, p["g2"], p["bb2"]))
    h = conv3(h, p["w2_hwio"], p["b2"])
    return jnp.transpose(h + sc, (0, 3, 1, 2))


if __name__ == "__main__":
    key = jax.random.PRNGKey(0)
    kx, kp, kx2, kp2 = jax.random.split(key, 4)

    # Config 1: Cin != Cout -> exercises the spectral-normalized 1x1 shortcut.
    B, Cin, Cout, H, W = 2, 4, 8, 16, 16
    x = jax.random.normal(kx, (B, Cin, H, W), jnp.float32)   # NCHW like PyTorch
    params = make_gblock_params(kp, Cin, Cout)
    out = jax.block_until_ready(gblock_forward(x, params))
    ref = jax.block_until_ready(gblock_reference(x, params))
    assert out.shape == (B, Cout, H, W), out.shape
    assert jnp.allclose(out, ref, atol=2e-2, rtol=2e-2), (
        float(jnp.max(jnp.abs(out - ref))))

    # Config 2: Cin == Cout -> exercises the identity-shortcut kernel variant.
    x2 = jax.random.normal(kx2, (B, Cin, H, W), jnp.float32)
    params2 = make_gblock_params(kp2, Cin, Cin)
    out2 = jax.block_until_ready(gblock_forward(x2, params2))
    ref2 = jax.block_until_ready(gblock_reference(x2, params2))
    assert out2.shape == (B, Cin, H, W), out2.shape
    assert jnp.allclose(out2, ref2, atol=2e-2, rtol=2e-2), (
        float(jnp.max(jnp.abs(out2 - ref2))))

    print("KERNEL_OK")
</pallas_src>

<mosaic_0001>
module attributes {stable_mosaic.version = 11 : i64} {
  func.func @gblock_conv1_kernel(%arg0: i32, %arg1: memref<1x16x16x128xf32, #tpu.memory_space<vmem>>, %arg2: memref<1x128xf32, #tpu.memory_space<vmem>>, %arg3: memref<1x128xf32, #tpu.memory_space<vmem>>, %arg4: memref<1152x128xbf16, #tpu.memory_space<vmem>>, %arg5: memref<1x128xf32, #tpu.memory_space<vmem>>, %arg6: memref<1x16x16x128xf32, #tpu.memory_space<vmem>>, %arg7: memref<1x18x24x128xbf16, #tpu.memory_space<vmem>>, %arg8: memref<256x1152xbf16, #tpu.memory_space<vmem>>) attributes {dimension_semantics = [#tpu.dimension_semantics<parallel>], iteration_bounds = array<i64: 2>, scalar_prefetch = 0 : i64, scratch_operands = 2 : i64, tpu.core_type = #tpu.core_type<tc>, window_params = [{transform_indices = @transform_0, window_bounds = array<i64: 1, 16, 16, 128>}, {pipeline_mode = #tpu.pipeline_mode<synchronous>, transform_indices = @transform_1, window_bounds = array<i64: 1, 128>}, {pipeline_mode = #tpu.pipeline_mode<synchronous>, transform_indices = @transform_2, window_bounds = array<i64: 1, 128>}, {pipeline_mode = #tpu.pipeline_mode<synchronous>, transform_indices = @transform_3, window_bounds = array<i64: 1152, 128>}, {pipeline_mode = #tpu.pipeline_mode<synchronous>, transform_indices = @transform_4, window_bounds = array<i64: 1, 128>}, {transform_indices = @transform_5, window_bounds = array<i64: 1, 16, 16, 128>}]} {
    %c0 = arith.constant 0 : index
    %c0_0 = arith.constant 0 : index
    %c0_1 = arith.constant 0 : index
    %c0_2 = arith.constant 0 : index
    %0 = vector.load %arg1[%c0, %c0_0, %c0_1, %c0_2] : memref<1x16x16x128xf32, #tpu.memory_space<vmem>>, vector<1x16x16x128xf32>
    %c0_3 = arith.constant 0 : index
    %c0_4 = arith.constant 0 : index
    %1 = vector.load %arg2[%c0_3, %c0_4] : memref<1x128xf32, #tpu.memory_space<vmem>>, vector<1x128xf32>
    %2 = vector.shape_cast %1 : vector<1x128xf32> to vector<1x1x1x128xf32>
    %3 = vector.broadcast %2 : vector<1x1x1x128xf32> to vector<1x16x16x128xf32>
    %4 = arith.mulf %0, %3 : vector<1x16x16x128xf32>
    %c0_5 = arith.constant 0 : index
    %c0_6 = arith.constant 0 : index
    %5 = vector.load %arg3[%c0_5, %c0_6] : memref<1x128xf32, #tpu.memory_space<vmem>>, vector<1x128xf32>
    %6 = vector.shape_cast %5 : vector<1x128xf32> to vector<1x1x1x128xf32>
    %7 = vector.broadcast %6 : vector<1x1x1x128xf32> to vector<1x16x16x128xf32>
    %8 = arith.addf %4, %7 : vector<1x16x16x128xf32>
    %cst = arith.constant 0.000000e+00 : f32
    %9 = vector.broadcast %cst : f32 to vector<1x16x16x128xf32>
    %10 = arith.maximumf %8, %9 : vector<1x16x16x128xf32>
    %cst_7 = arith.constant 0.000000e+00 : bf16
    %11 = vector.broadcast %cst_7 : bf16 to vector<1x1x24x128xbf16>
    %c0_8 = arith.constant 0 : index
    %c0_9 = arith.constant 0 : index
    %c0_10 = arith.constant 0 : index
    %c0_11 = arith.constant 0 : index
    %12 = vector.load %arg7[%c0_8, %c0_9, %c0_10, %c0_11] : memref<1x18x24x128xbf16, #tpu.memory_space<vmem>>, vector<1x1x24x128xbf16>
    tpu.vector_store %arg7[%c0_8, %c0_9, %c0_10, %c0_11], %11 {strides = array<i32>} : memref<1x18x24x128xbf16, #tpu.memory_space<vmem>>, vector<1x1x24x128xbf16>,
    %c0_12 = arith.constant 0 : index
    %c17 = arith.constant 17 : index
    %c0_13 = arith.constant 0 : index
    %c0_14 = arith.constant 0 : index
    %13 = vector.load %arg7[%c0_12, %c17, %c0_13, %c0_14] : memref<1x18x24x128xbf16, #tpu.memory_space<vmem>>, vector<1x1x24x128xbf16>
    tpu.vector_store %arg7[%c0_12, %c17, %c0_13, %c0_14], %11 {strides = array<i32>} : memref<1x18x24x128xbf16, #tpu.memory_space<vmem>>, vector<1x1x24x128xbf16>,
    %cst_15 = arith.constant 0.000000e+00 : bf16
    %14 = vector.broadcast %cst_15 : bf16 to vector<1x18x1x128xbf16>
    %c0_16 = arith.constant 0 : index
    %c0_17 = arith.constant 0 : index
    %c0_18 = arith.constant 0 : index
    %c0_19 = arith.constant 0 : index
    %15 = vector.load %arg7[%c0_16, %c0_17, %c0_18, %c0_19] : memref<1x18x24x128xbf16, #tpu.memory_space<vmem>>, vector<1x18x1x128xbf16>
    tpu.vector_store %arg7[%c0_16, %c0_17, %c0_18, %c0_19], %14 {strides = array<i32>} : memref<1x18x24x128xbf16, #tpu.memory_space<vmem>>, vector<1x18x1x128xbf16>,
    %c0_20 = arith.constant 0 : index
    %c0_21 = arith.constant 0 : index
    %c17_22 = arith.constant 17 : index
    %c0_23 = arith.constant 0 : index
    %16 = vector.load %arg7[%c0_20, %c0_21, %c17_22, %c0_23] : memref<1x18x24x128xbf16, #tpu.memory_space<vmem>>, vector<1x18x1x128xbf16>
    tpu.vector_store %arg7[%c0_20, %c0_21, %c17_22, %c0_23], %14 {strides = array<i32>} : memref<1x18x24x128xbf16, #tpu.memory_space<vmem>>, vector<1x18x1x128xbf16>,
    %17 = arith.truncf %10 : vector<1x16x16x128xf32> to vector<1x16x16x128xbf16>
    %c0_24 = arith.constant 0 : index
    %c1 = arith.constant 1 : index
    %c1_25 = arith.constant 1 : index
    %c0_26 = arith.constant 0 : index
    %18 = vector.load %arg7[%c0_24, %c1, %c1_25, %c0_26] : memref<1x18x24x128xbf16, #tpu.memory_space<vmem>>, vector<1x16x16x128xbf16>
    tpu.vector_store %arg7[%c0_24, %c1, %c1_25, %c0_26], %17 {strides = array<i32>} : memref<1x18x24x128xbf16, #tpu.memory_space<vmem>>, vector<1x16x16x128xbf16>,
    %c0_27 = arith.constant 0 : index
    %c0_28 = arith.constant 0 : index
    %c0_29 = arith.constant 0 : index
    %c0_30 = arith.constant 0 : index
    %19 = vector.load %arg7[%c0_27, %c0_28, %c0_29, %c0_30] : memref<1x18x24x128xbf16, #tpu.memory_space<vmem>>, vector<1x16x16x128xbf16>
    %20 = vector.shape_cast %19 : vector<1x16x16x128xbf16> to vector<256x128xbf16>
    %c0_31 = arith.constant 0 : index
    %c0_32 = arith.constant 0 : index
    %21 = vector.load %arg8[%c0_31, %c0_32] : memref<256x1152xbf16, #tpu.memory_space<vmem>>, vector<256x128xbf16>
    tpu.vector_store %arg8[%c0_31, %c0_32], %20 {strides = array<i32>} : memref<256x1152xbf16, #tpu.memory_space<vmem>>, vector<256x128xbf16>,
    %c0_33 = arith.constant 0 : index
    %c0_34 = arith.constant 0 : index
    %c1_35 = arith.constant 1 : index
    %c0_36 = arith.constant 0 : index
    %22 = vector.load %arg7[%c0_33, %c0_34, %c1_35, %c0_36] : memref<1x18x24x128xbf16, #tpu.memory_space<vmem>>, vector<1x16x16x128xbf16>
    %23 = vector.shape_cast %22 : vector<1x16x16x128xbf16> to vector<256x128xbf16>
    %c0_37 = arith.constant 0 : index
    %c128 = arith.constant 128 : index
    %24 = vector.load %arg8[%c0_37, %c128] : memref<256x1152xbf16, #tpu.memory_space<vmem>>, vector<256x128xbf16>
    tpu.vector_store %arg8[%c0_37, %c128], %23 {strides = array<i32>} : memref<256x1152xbf16, #tpu.memory_space<vmem>>, vector<256x128xbf16>,
    %c0_38 = arith.constant 0 : index
    %c0_39 = arith.constant 0 : index
    %c2 = arith.constant 2 : index
    %c0_40 = arith.constant 0 : index
    %25 = vector.load %arg7[%c0_38, %c0_39, %c2, %c0_40] : memref<1x18x24x128xbf16, #tpu.memory_space<vmem>>, vector<1x16x16x128xbf16>
    %26 = vector.shape_cast %25 : vector<1x16x16x128xbf16> to vector<256x128xbf16>
    %c0_41 = arith.constant 0 : index
    %c256 = arith.constant 256 : index
    %27 = vector.load %arg8[%c0_41, %c256] : memref<256x1152xbf16, #tpu.memory_space<vmem>>, vector<256x128xbf16>
    tpu.vector_store %arg8[%c0_41, %c256], %26 {strides = array<i32>} : memref<256x1152xbf16, #tpu.memory_space<vmem>>, vector<256x128xbf16>,
    %c0_42 = arith.constant 0 : index
    %c1_43 = arith.constant 1 : index
    %c0_44 = arith.constant 0 : index
    %c0_45 = arith.constant 0 : index
    %28 = vector.load %arg7[%c0_42, %c1_43, %c0_44, %c0_45] : memref<1x18x24x128xbf16, #tpu.memory_space<vmem>>, vector<1x16x16x128xbf16>
    %29 = vector.shape_cast %28 : vector<1x16x16x128xbf16> to vector<256x128xbf16>
    %c0_46 = arith.constant 0 : index
    %c384 = arith.constant 384 : index
    %30 = vector.load %arg8[%c0_46, %c384] : memref<256x1152xbf16, #tpu.memory_space<vmem>>, vector<256x128xbf16>
    tpu.vector_store %arg8[%c0_46, %c384], %29 {strides = array<i32>} : memref<256x1152xbf16, #tpu.memory_space<vmem>>, vector<256x128xbf16>,
    %c0_47 = arith.constant 0 : index
    %c1_48 = arith.constant 1 : index
    %c1_49 = arith.constant 1 : index
    %c0_50 = arith.constant 0 : index
    %31 = vector.load %arg7[%c0_47, %c1_48, %c1_49, %c0_50] : memref<1x18x24x128xbf16, #tpu.memory_space<vmem>>, vector<1x16x16x128xbf16>
    %32 = vector.shape_cast %31 : vector<1x16x16x128xbf16> to vector<256x128xbf16>
    %c0_51 = arith.constant 0 : index
    %c512 = arith.constant 512 : index
    %33 = vector.load %arg8[%c0_51, %c512] : memref<256x1152xbf16, #tpu.memory_space<vmem>>, vector<256x128xbf16>
    tpu.vector_store %arg8[%c0_51, %c512], %32 {strides = array<i32>} : memref<256x1152xbf16, #tpu.memory_space<vmem>>, vector<256x128xbf16>,
    %c0_52 = arith.constant 0 : index
    %c1_53 = arith.constant 1 : index
    %c2_54 = arith.constant 2 : index
    %c0_55 = arith.constant 0 : index
    %34 = vector.load %arg7[%c0_52, %c1_53, %c2_54, %c0_55] : memref<1x18x24x128xbf16, #tpu.memory_space<vmem>>, vector<1x16x16x128xbf16>
    %35 = vector.shape_cast %34 : vector<1x16x16x128xbf16> to vector<256x128xbf16>
    %c0_56 = arith.constant 0 : index
    %c640 = arith.constant 640 : index
    %36 = vector.load %arg8[%c0_56, %c640] : memref<256x1152xbf16, #tpu.memory_space<vmem>>, vector<256x128xbf16>
    tpu.vector_store %arg8[%c0_56, %c640], %35 {strides = array<i32>} : memref<256x1152xbf16, #tpu.memory_space<vmem>>, vector<256x128xbf16>,
    %c0_57 = arith.constant 0 : index
    %c2_58 = arith.constant 2 : index
    %c0_59 = arith.constant 0 : index
    %c0_60 = arith.constant 0 : index
    %37 = vector.load %arg7[%c0_57, %c2_58, %c0_59, %c0_60] : memref<1x18x24x128xbf16, #tpu.memory_space<vmem>>, vector<1x16x16x128xbf16>
    %38 = vector.shape_cast %37 : vector<1x16x16x128xbf16> to vector<256x128xbf16>
    %c0_61 = arith.constant 0 : index
    %c768 = arith.constant 768 : index
    %39 = vector.load %arg8[%c0_61, %c768] : memref<256x1152xbf16, #tpu.memory_space<vmem>>, vector<256x128xbf16>
    tpu.vector_store %arg8[%c0_61, %c768], %38 {strides = array<i32>} : memref<256x1152xbf16, #tpu.memory_space<vmem>>, vector<256x128xbf16>,
    %c0_62 = arith.constant 0 : index
    %c2_63 = arith.constant 2 : index
    %c1_64 = arith.constant 1 : index
    %c0_65 = arith.constant 0 : index
    %40 = vector.load %arg7[%c0_62, %c2_63, %c1_64, %c0_65] : memref<1x18x24x128xbf16, #tpu.memory_space<vmem>>, vector<1x16x16x128xbf16>
    %41 = vector.shape_cast %40 : vector<1x16x16x128xbf16> to vector<256x128xbf16>
    %c0_66 = arith.constant 0 : index
    %c896 = arith.constant 896 : index
    %42 = vector.load %arg8[%c0_66, %c896] : memref<256x1152xbf16, #tpu.memory_space<vmem>>, vector<256x128xbf16>
    tpu.vector_store %arg8[%c0_66, %c896], %41 {strides = array<i32>} : memref<256x1152xbf16, #tpu.memory_space<vmem>>, vector<256x128xbf16>,
    %c0_67 = arith.constant 0 : index
    %c2_68 = arith.constant 2 : index
    %c2_69 = arith.constant 2 : index
    %c0_70 = arith.constant 0 : index
    %43 = vector.load %arg7[%c0_67, %c2_68, %c2_69, %c0_70] : memref<1x18x24x128xbf16, #tpu.memory_space<vmem>>, vector<1x16x16x128xbf16>
    %44 = vector.shape_cast %43 : vector<1x16x16x128xbf16> to vector<256x128xbf16>
    %c0_71 = arith.constant 0 : index
    %c1024 = arith.constant 1024 : index
    %45 = vector.load %arg8[%c0_71, %c1024] : memref<256x1152xbf16, #tpu.memory_space<vmem>>, vector<256x128xbf16>
    tpu.vector_store %arg8[%c0_71, %c1024], %44 {strides = array<i32>} : memref<256x1152xbf16, #tpu.memory_space<vmem>>, vector<256x128xbf16>,
    %c0_72 = arith.constant 0 : index
    %c0_73 = arith.constant 0 : index
    %46 = vector.load %arg8[%c0_72, %c0_73] : memref<256x1152xbf16, #tpu.memory_space<vmem>>, vector<256x1152xbf16>
    %c0_74 = arith.constant 0 : index
    %c0_75 = arith.constant 0 : index
    %47 = vector.load %arg4[%c0_74, %c0_75] : memref<1152x128xbf16, #tpu.memory_space<vmem>>, vector<1152x128xbf16>
    %cst_76 = arith.constant dense<0.000000e+00> : vector<256x128xf32>
    %48 = tpu.matmul %46, %47, %cst_76 {dimension_numbers = #tpu.dot_dimension_numbers<[1], [0], [0], [1], [0, 0, 1, 1], [], []>} : vector<256x1152xbf16>, vector<1152x128xbf16>, vector<256x128xf32> -> vector<256x128xf32>
    %c0_77 = arith.constant 0 : index
    %c0_78 = arith.constant 0 : index
    %49 = vector.load %arg5[%c0_77, %c0_78] : memref<1x128xf32, #tpu.memory_space<vmem>>, vector<1x128xf32>
    %50 = vector.broadcast %49 : vector<1x128xf32> to vector<256x128xf32>
    %51 = arith.addf %48, %50 : vector<256x128xf32>
    %52 = vector.shape_cast %51 : vector<256x128xf32> to vector<1x16x16x128xf32>
    %c0_79 = arith.constant 0 : index
    %c0_80 = arith.constant 0 : index
    %c0_81 = arith.constant 0 : index
    %c0_82 = arith.constant 0 : index
    %53 = vector.load %arg6[%c0_79, %c0_80, %c0_81, %c0_82] : memref<1x16x16x128xf32, #tpu.memory_space<vmem>>, vector<1x16x16x128xf32>
    tpu.vector_store %arg6[%c0_79, %c0_80, %c0_81, %c0_82], %52 {strides = array<i32>} : memref<1x16x16x128xf32, #tpu.memory_space<vmem>>, vector<1x16x16x128xf32>,
    return
  }
  func.func @transform_0(%arg0: i32) -> (i32, i32, i32, i32) {
    %c0_i32 = arith.constant 0 : i32
    %c0_i32_0 = arith.constant 0 : i32
    %c0_i32_1 = arith.constant 0 : i32
    %c0_i32_2 = arith.constant 0 : i32
    return %arg0, %c0_i32, %c0_i32_0, %c0_i32_1 : i32, i32, i32, i32
  }
  func.func @transform_1(%arg0: i32) -> (i32, i32) {
    %c0_i32 = arith.constant 0 : i32
    %c0_i32_0 = arith.constant 0 : i32
    %c0_i32_1 = arith.constant 0 : i32
    return %c0_i32, %c0_i32_0 : i32, i32
  }
  func.func @transform_2(%arg0: i32) -> (i32, i32) {
    %c0_i32 = arith.constant 0 : i32
    %c0_i32_0 = arith.constant 0 : i32
    %c0_i32_1 = arith.constant 0 : i32
    return %c0_i32, %c0_i32_0 : i32, i32
  }
  func.func @transform_3(%arg0: i32) -> (i32, i32) {
    %c0_i32 = arith.constant 0 : i32
    %c0_i32_0 = arith.constant 0 : i32
    %c0_i32_1 = arith.constant 0 : i32
    return %c0_i32, %c0_i32_0 : i32, i32
  }
  func.func @transform_4(%arg0: i32) -> (i32, i32) {
    %c0_i32 = arith.constant 0 : i32
    %c0_i32_0 = arith.constant 0 : i32
    %c0_i32_1 = arith.constant 0 : i32
    return %c0_i32, %c0_i32_0 : i32, i32
  }
  func.func @transform_5(%arg0: i32) -> (i32, i32, i32, i32) {
    %c0_i32 = arith.constant 0 : i32
    %c0_i32_0 = arith.constant 0 : i32
    %c0_i32_1 = arith.constant 0 : i32
    %c0_i32_2 = arith.constant 0 : i32
    return %arg0, %c0_i32, %c0_i32_0, %c0_i32_1 : i32, i32, i32, i32
  }
}

</mosaic_0001>

<bundles_post_ra>
// kernel: tpu_custom_call.1
= control target key start
LH: loop header
LB: loop body
LE: loop exit
PB: predicated region body
PF: predicated region fallthrough
CT: control target
= control target key end

     0   :  { %10 = vsyncpa [#allocation5], 0  ;;  %s9000_s0 = inlined_call_operand.hbm [shape: f32[2,16,16,128], index: 0, kind: input, shape index: {}]   ;;  %s9001_s1 = inlined_call_operand.vmem [shape: f32[1,128], index: 1, kind: input, shape index: {}]   ;;  %s9002_s2 = inlined_call_operand.vmem [shape: f32[1,128], index: 2, kind: input, shape index: {}]   ;;  %s9003_s3 = inlined_call_operand.hbm [shape: bf16[1152,128], index: 3, kind: input, shape index: {}]   ;;  %s9004_s4 = inlined_call_operand.vmem [shape: f32[1,128], index: 4, kind: input, shape index: {}]   ;;  %s9005_s5 = inlined_call_operand.hbm [shape: f32[2,16,16,128], index: 5, kind: output, shape index: {}]  }
   0x1   :  { %12 = vsyncpa [#allocation5 + $0x1], 0 }
   0x2   :  { %13 = vsyncpa [#allocation8], 0 }
   0x3   :  { %14 = vsyncpa [#allocation6], 0 }
   0x4   :  { %16 = vsyncpa [#allocation6 + $0x1], 0  ;;  %s7368_s18 = smov 0   ;;  %s7370_s19 = smov 0  }
   0x5   :  { %s7372_s20 = smov 0   ;;  %s7374_s21 = smov 0  }
   0x6 LB: > { %s7389_s22 = sadd.s32 4294967295, %s7326_s21   ;;  %s5970_s23 = sadd.s32 4294967294, %s7326_s21   ;;  %s7326_s21 = sphi %s7374_s21, %s9087_s21   ;;  %s7322_s20 = sphi %s7372_s20, %s9086_s20   ;;  %s7318_s19 = sphi %s7370_s19, %s9085_s19   ;;  %s7314_s18 = sphi %s7368_s18, %s9084_s18  }
   0x7   : > { %p42_p0 = scmp.ne.s32.totalorder %s7318_s19, %s7314_s18  ;;  %p9006_p1 = scmp.eq.s32.totalorder %s7389_s22, 0 }
   0x8   : > { %p156_p3 = scmp.eq.s32.totalorder %s5970_s23, 1  ;;  %p5971_p5 = scmp.ge.s32.totalorder %s7326_s21, 1 }
   0x9   : > { %p7398_p4 = por %p9006_p1, %p42_p0  ;;  %p163_p7 = scmp.lt.s32.totalorder %s7326_s21, 3 }
   0xa   : > { %p7403_p6 = por %p156_p3, %p42_p0  ;;  %s7328_s27 = smov [#allocation7]  }
   0xb   : > { %s9011_s24 = scalar_select %p7398_p4, 1, 0 }
   0xc   : > { %s9012_s25 = scalar_select %p7403_p6, 1, 0 }
   0xd   : > { %p7408_p8 = pnand %p5971_p5, %p163_p7  ;;  %s181_s28 = sshll.u32 %s7328_s27, 4  ;;  %s182_s28 = int_to_ptr.vmem [resolvable:$true] %s181_s28 }
   0xe   : > { %s7422_s30 = sadd.s32 1, %s7326_s21   ;;  %s29_s6 = sadd.s32 1, %s7322_s20 }
   0xf   : > { %s9013_s26 = scalar_select %p7408_p8, 1, 0 }
  0x10   : > { %p6863_p9 = pneg %p7408_p8  ;;  %s26_s7 = ssub.s32 %s7326_s21, %s7422_s30 }
  0x11   : > { %s7215_s8 = scalar_lea.vmem %s182_s28, 9216  ;;  %p7223_p5 = scmp.lt.s32.totalorder %s182_s28, %s182_s28 }
  0x12   : > { %p7417_p11 = pnand %p6863_p9, %p9006_p1  ;;  %p7216_p13 = scmp.ne.s32.totalorder %s182_s28, %s7215_s8 }
  0x13   : > { %p7224_p7 = scmp.lt.s32.totalorder %s7215_s8, %s7215_s8 }
  0x14   : > { %p7206_p12 = pneg %p7417_p11 }
  0x15   : > { %p7225_p10 = por %p7224_p7, %p7223_p5 }
  0x16   : > { %p7218_p0 = pnand %p7216_p13, %p7206_p12 }
  0x18   : > { %p7219_p3 = pneg %p7218_p0 }
  0x1a   : > { %p7226_p2 = pnand %p7225_p10, %p7219_p3 }
  0x1c   : > { %7229 = shalt.err (!%p7226_p2)
}
  0x1d   : > { %s7329_s9 = smov 64   ;;  %s7330_s10 = smov 4  }
  0x1e   : > { %6866 = dma.hbm_to_vmem [thread:$0]  (!%p7417_p11), %s9003_s3, 9216, %s182_s28, [#allocation8], %s7329_s9, %s7329_s9, %s7330_s10  }
  0x1f   : > { %p27_p9 = scmp.eq.s32.totalorder %s26_s7, 0  ;;  %p36_p12 = scmp.ne.s32.totalorder %s7322_s20, %s7318_s19 }
  0x20   : > { %p37_p10 = scmp.eq.s32.totalorder %s7326_s21, 0  ;;  %p6876_p2 = scmp.lt.s32.totalorder %s7326_s21, 2 }
  0x21   : > { %s7439_s13 = scalar_select %p27_p9, %s7322_s20, %s29_s6  }
  0x22   : > { %p38_p13 = por %p37_p10, %p36_p12  ;;  %p9015_p0 = scmp.eq.s32.totalorder %s7389_s22, 1 }
  0x23   : > { %s198_s15 = sand.u32 1, %s7322_s20   ;;  %s6285_s16 = sshll.u32 %s7326_s21, 12 }
  0x24   : > { %p7443_p3 = por %p9015_p0, %p36_p12  ;;  %s5974_s17 = sshll.u32 %s198_s15, 8 }
  0x25   : > { %s7452_s29 = scalar_lea.hbm %s9000_s0, %s6285_s16  ;;  %s202_s28 = scalar_lea.vmem [#allocation4], %s5974_s17 }
  0x26   : > { %s9016_s14 = scalar_select %p7443_p3, 1, 0 }
  0x27   : > { %s209_s6 = sshll.u32 %s202_s28, 4  ;;  %p7454_p11 = pnand %p6876_p2, %p38_p13  ;;  %s7458_s6 = int_to_ptr.vmem [resolvable:$true] %s209_s6 }
  0x28   : > { %s7460_s8 = scalar_lea.sflag [#allocation5], %s198_s15  ;;  %s7230_s9 = scalar_lea.hbm %s7452_s29, 4096 }
  0x29   : > { %p7231_p5 = scmp.ne.s32.totalorder %s7452_s29, %s7230_s9  ;;  %p7232_p7 = pneg %p7454_p11 }
  0x2a   : > { %s7235_s12 = scalar_lea.hbm %s9000_s0, 8192  ;;  %p7236_p10 = scmp.lt.s32.totalorder %s7452_s29, %s9000_s0 }
  0x2b   : > { %p7233_p9 = pnand %p7232_p7, %p7231_p5  ;;  %p7237_p2 = scmp.lt.s32.totalorder %s7235_s12, %s7230_s9 }
  0x2d   : > { %p7234_p12 = pneg %p7233_p9  ;;  %p7238_p13 = por %p7237_p2, %p7236_p10 }
  0x2f   : > { %p7239_p0 = pnand %p7238_p13, %p7234_p12 }
  0x31   : > { %7242 = shalt.err (!%p7239_p0)
}
  0x32   : > { %s7243_s15 = scalar_lea.vmem %s7458_s6, 4096  ;;  %s7331_s23 = smov [#allocation4]  }
  0x33   : > { %p7244_p1 = scmp.ne.s32.totalorder %s7458_s6, %s7243_s15  ;;  %s7248_s27 = sshll.u32 %s7331_s23, 4  ;;  %s7249_s27 = int_to_ptr.vmem [resolvable:$false] %s7248_s27 }
  0x34   : > { %s7250_s28 = scalar_lea.vmem %s7249_s27, 8192  ;;  %p7251_p9 = scmp.lt.s32.totalorder %s7458_s6, %s7249_s27 }
  0x35   : > { %p7246_p6 = pnand %p7244_p1, %p7232_p7  ;;  %p7252_p3 = scmp.lt.s32.totalorder %s7250_s28, %s7243_s15 }
  0x37   : > { %p7247_p5 = pneg %p7246_p6  ;;  %p7253_p4 = por %p7252_p3, %p7251_p9 }
  0x39   : > { %p7254_p8 = pnand %p7253_p4, %p7247_p5 }
  0x3b   : > { %7257 = shalt.err (!%p7254_p8)
}
  0x3c   : > { %s7332_s9 = smov 128   ;;  %s7333_s10 = smov 8  }
  0x3d   : > { %6870 = dma.hbm_to_vmem [thread:$0]  (!%p7454_p11), %s7452_s29, 4096, %s7458_s6, %s7460_s8, %s7332_s9, %s7332_s9, %s7333_s10  }
  0x3e   : > { %p9018_p1 = scmp.ne.s32.totalorder %s9013_s26, 0 }
  0x40   : > { %221 = sbr.rel (%p9018_p1) target bundleno = 834 (0x342), region = 40 }
  0x45   : > { %s7484_s11 = sand.u32 1, %s7318_s19   ;;  %p9019_p4 = scmp.ne.s32.totalorder %s9011_s24, 0 }
  0x46   : > { %s5978_s12 = sshll.u32 %s7484_s11, 8  ;;  %s224_s16 = scalar_lea.sflag [#allocation5], %s7484_s11 }
  0x47   : > { %s7490_s17 = scalar_lea.vmem [#allocation4], %s5978_s12 }
  0x48   : > { %7301 = dma.done.wait (%p9019_p4), %s224_s16, 4096  }
  0x49   : > { %7303 = vsyncadd (%p9019_p4), %s224_s16, 4294963200  ;;  %p9020_p6 = scmp.eq.s32.totalorder %s7389_s22, 0 }
  0x4b   : > { %7305 = dma.done.wait (%p9020_p6), [#allocation8], 9216   ;;  %p9021_p8 = pmov %p9020_p6 }
  0x4c   : > { %v7334_v0 = vmov 0   ;;  %v6919_v1 = vld [vmem:[#allocation7 + $0x78] sm:$0xff]   ;;  %v6921_v3 = vld [vmem:[#allocation7 + $0x70] sm:$0xff]   ;;  %v6923_v5 = vld [vmem:[#allocation7 + $0x68] sm:$0xff]   ;;  %vm409_vm0 = vsmask.f32 256 }
  0x4d   : > { %7307 = vsyncadd (%p9021_p8), [#allocation8], 4294958080  ;;  %401 = vst [vmem:[#allocation2] sm:$0xf] %v7334_v0  ;;  %v6920_v2 = vld [vmem:[#allocation7 + $0x38] sm:$0xff]   ;;  %6319 = vmatprep.subr.bf16.mxu0 %v6919_v1  ;;  %6839 = vmatprep.subr.bf16.mxu1 %v6919_v1  ;;  %v6922_v4 = vld [vmem:[#allocation7 + $0x30] sm:$0xff]  }
  0x4e   : > { %402 = vst [vmem:[#allocation2 + $0x4] sm:$0xf] %v7334_v0  ;;  %403 = vst [vmem:[#allocation2 + $0x8] sm:$0xf] %v7334_v0  ;;  %6320 = vmatpush3.bf16.msra.mxu0 %v6920_v2  ;;  %6847 = vmatpush3.bf16.msra.mxu1 %v6920_v2  ;;  %v6924_v6 = vld [vmem:[#allocation7 + $0x28] sm:$0xff]   ;;  %vm408_vm1 = vcmask 1040384  }
  0x4f   : > { %405 = vst [vmem:[#allocation2 + $0xcc] sm:$0xf] %v7334_v0  ;;  %406 = vst [vmem:[#allocation2 + $0xd0] sm:$0xf] %v7334_v0  ;;  %6321 = vmatprep.subr.bf16.mxu0 %v6921_v3  ;;  %6840 = vmatprep.subr.bf16.mxu1 %v6921_v3  ;;  %v6925_v7 = vld [vmem:[#allocation7 + $0x60] sm:$0xff]   ;;  %v9022_v8 = vmov 0 }
  0x50   : > { %407 = vst [vmem:[#allocation2 + $0xd4] sm:$0xf] %v7334_v0  ;;  %vm7501_vm2 = vmand %vm408_vm1, %vm409_vm0  ;;  %vm465_vm3 = vsmask.f32 7938  ;;  %v6926_v9 = vld [vmem:[#allocation7 + $0x20] sm:$0xff]   ;;  %v6927_v10 = vld [vmem:[#allocation7 + $0x58] sm:$0xff]  }
  0x51   : > { %v9023_v8 = vsel %vm7501_vm2, 4294967295, %v9022_v8  ;;  %vm7506_vm4 = vmand %vm408_vm1, %vm465_vm3  ;;  %v6928_v12 = vld [vmem:[#allocation7 + $0x18] sm:$0xff]   ;;  %v6929_v13 = vld [vmem:[#allocation7 + $0x50] sm:$0xff]   ;;  %vm1166_vm5 = vsmask.f32 3328  ;;  %vm940_vm8 = vcmask 1043456  }
  0x52   : > { %6322 = vmatpush3.bf16.msra.mxu0 %v6922_v4  ;;  %6848 = vmatpush3.bf16.msra.mxu1 %v6922_v4  ;;  %9024 = vst [vmem:[#allocation13_spill] sm:$0xff] %v9023_v8  ;;  %vm1167_vm6 = vsmask.f32 7440  ;;  %v6930_v17 = vld [vmem:[#allocation7 + $0x10] sm:$0xff]   ;;  %v259_v21 = vld [vmem:[%s7490_s17] sm:$0xff]  ;;  %v260_v22 = vld [vmem:[%s7490_s17 + $0x8] sm:$0xff] }
  0x53   : > { %6323 = vmatprep.subr.bf16.mxu0 %v6923_v5  ;;  %6841 = vmatprep.subr.bf16.mxu1 %v6923_v5  ;;  %vm617_vm7 = vsmask.f32 4368  ;;  %v7519_v25 = vld [vmem:[%s9001_s1] ss:$0 sm:$0xff]  ;;  %v414_v29 = vld [vmem:[#allocation2 + $0xc] sm:$0x1]  ;;  %vm7549_vm9 = vmor %vm1166_vm5, %vm1167_vm6 }
  0x54   : > { %v411_v14 = vld [vmem:[#allocation2] sm:$0x1]  ;;  %v298_v27 = vmul.f32 %v7519_v25, %v259_v21  ;;  %v299_v28 = vmul.f32 %v7519_v25, %v260_v22  ;;  %v470_v30 = vld [vmem:[#allocation2 + $0x14] sm:$0x1]  ;;  %v281_v31 = vld [vmem:[%s7490_s17 + $0xb0] sm:$0xff]  ;;  %v415_v35 = vsel %vm7501_vm2, 0, %v414_v29 }
  0x55   : > { %v467_v15 = vld [vmem:[#allocation2 + $0x8] sm:$0x1]  ;;  %v1055_v16 = vld [vmem:[#allocation2 + $0x4] sm:$0xf]  ;;  %v412_v18 = vsel %vm7501_vm2, 0, %v411_v14  ;;  %v471_v36 = vsel %vm7506_vm4, 0, %v470_v30  ;;  %v320_v40 = vmul.f32 %v7519_v25, %v281_v31  ;;  %vm7555_vm10 = vmor %vm409_vm0, %vm617_vm7 }
  0x56   : > { %6324 = vmatpush3.bf16.msra.mxu0 %v6924_v6  ;;  %6849 = vmatpush3.bf16.msra.mxu1 %v6924_v6  ;;  %v468_v19 = vsel %vm7506_vm4, 0, %v467_v15  ;;  %1087 = vst [vmem:[#allocation3 + $0x24] sm:$0xf] %v1055_v16  ;;  %v1119_v20 = vld [vmem:[#allocation2 + $0x4] sm:$0xf]  ;;  %v282_v37 = vld [vmem:[%s7490_s17 + $0xb8] sm:$0xff]  ;;  %vm7561_vm11 = vmand %vm940_vm8, %vm465_vm3 }
  0x57   : > { %6325 = vmatprep.subr.bf16.mxu0 %v6925_v7  ;;  %6842 = vmatprep.subr.bf16.mxu1 %v6925_v7  ;;  %413 = vst [vmem:[#allocation2] sm:$0x1] %v412_v18  ;;  %469 = vst [vmem:[#allocation2 + $0x8] sm:$0x1] %v468_v19  ;;  %v1179_v23 = vshll.u32 %v1119_v20, 16  ;;  %v1183_v24 = vshrl.u32 %v1119_v20, 16  ;;  %v321_v41 = vmul.f32 %v7519_v25, %v282_v37 }
  0x58   : > { %v7524_v26 = vld [vmem:[%s9002_s2] ss:$0 sm:$0xff]  ;;  %416 = vst [vmem:[#allocation2 + $0xc] sm:$0x1] %v415_v35  ;;  %472 = vst [vmem:[#allocation2 + $0x14] sm:$0x1] %v471_v36 }
  0x59   : > { %v6931_v32 = vld [vmem:[#allocation7 + $0x48] sm:$0xff]   ;;  %v7529_v33 = vrot.slane %v1179_v23, 5  ;;  %v1185_v34 = vrot.slane %v1183_v24, 4  ;;  %v337_v38 = vadd.f32 %v7524_v26, %v298_v27  ;;  %v338_v39 = vadd.f32 %v7524_v26, %v299_v28  ;;  %v447_v42 = vld [vmem:[#allocation2 + $0x90] sm:$0x1]  ;;  %v6933_v51 = vld [vmem:[#allocation7 + $0x40] sm:$0xff]  }
  0x5a   : > { %6326 = vmatpush3.bf16.msra.mxu0 %v6926_v9  ;;  %6850 = vmatpush3.bf16.msra.mxu1 %v6926_v9  ;;  %v503_v43 = vld [vmem:[#allocation2 + $0x98] sm:$0x1]  ;;  %v448_v45 = vsel %vm7501_vm2, 0, %v447_v42  ;;  %v6932_v47 = vld [vmem:[#allocation7 + $0x8] sm:$0xff]   ;;  %v359_v50 = vadd.f32 %v7524_v26, %v320_v40  ;;  %v360_v53 = vadd.f32 %v7524_v26, %v321_v41  ;;  %v262_v40 = vld [vmem:[%s7490_s17 + $0x18] sm:$0xff]  ;;  %vm1713_vm12 = vcmask 1042432  }
  0x5b   : > { %6327 = vmatprep.subr.bf16.mxu0 %v6927_v10  ;;  %6843 = vmatprep.subr.bf16.mxu1 %v6927_v10  ;;  %v1186_v44 = vor.u32 %v1185_v34, %v7529_v33  ;;  %v504_v46 = vsel %vm7506_vm4, 0, %v503_v43  ;;  %v369_v48 = vmax.f32 %v337_v38, 0.0  ;;  %v370_v49 = vmax.f32 %v338_v39, 0.0  ;;  %449 = vst [vmem:[#allocation2 + $0x90] sm:$0x1] %v448_v45  ;;  %v6934_v54 = vld [vmem:[#allocation7] sm:$0xff]  }
  0x5c   : > { %505 = vst [vmem:[#allocation2 + $0x98] sm:$0x1] %v504_v46  ;;  %v391_v63 = vmax.f32 %v359_v50, 0.0  ;;  %v392_v10 = vmax.f32 %v360_v53, 0.0  ;;  %v261_v39 = vld [vmem:[%s7490_s17 + $0x10] sm:$0xff]  ;;  %vm1714_vm13 = vcmask 1046532  }
  0x5d   : > { %v1187_v52 = vrot.slane %v1186_v44, 4  ;;  %v6286_v58 = vpack.c.bf16 %v369_v48, %v369_v48  ;;  %v6287_v59 = vpack.c.bf16 %v370_v49, %v370_v49  ;;  %v417_v41 = vld [vmem:[#allocation2 + $0x18] sm:$0x1]  ;;  %v300_v45 = vmul.f32 %v7519_v25, %v261_v39  ;;  %v473_v46 = vld [vmem:[#allocation2 + $0x20] sm:$0x1]  ;;  %vm7765_vm14 = vmor %vm1713_vm12, %vm1714_vm13  ;;  %s8860_s29 = scalar_lea.vmem [#allocation9], %s5978_s12 }
  0x5e   : > { %6328 = vmatpush3.bf16.msra.mxu0 %v6928_v12  ;;  %6851 = vmatpush3.bf16.msra.mxu1 %v6928_v12  ;;  %v1054_v55 = vld [vmem:[#allocation2] sm:$0xf]  ;;  %v1120_v57 = vld [vmem:[#allocation2 + $0x8] sm:$0x1]  ;;  %v6943_v12 = vld [vmem:[#allocation7 + $0xf8] sm:$0xff]   ;;  %v6309_v22 = vpack.c.bf16 %v392_v10, %v392_v10  ;;  %v301_v49 = vmul.f32 %v7519_v25, %v262_v40  ;;  %v418_v50 = vsel %vm7501_vm2, 0, %v417_v41 }
  0x5f   : > { %6329 = vmatprep.subr.bf16.mxu0 %v6929_v13  ;;  %6844 = vmatprep.subr.bf16.mxu1 %v6929_v13  ;;  %v1118_v56 = vld [vmem:[#allocation2] sm:$0xf]  ;;  %1086 = vst [vmem:[#allocation3] sm:$0xf] %v1054_v55  ;;  %v1189_v62 = vshll.u32 %v1120_v57, 16  ;;  %v620_v1 = vshrl.u32 %v6286_v58, 16  ;;  %v339_v57 = vadd.f32 %v7524_v26, %v300_v45 }
  0x60   : > { %v1170_v60 = vshrl.u32 %v1118_v56, 16  ;;  %v1173_v61 = vshll.u32 %v1118_v56, 16  ;;  %v623_v2 = vshll.u32 %v6286_v58, 16  ;;  %v628_v3 = vshrl.u32 %v6287_v59, 16  ;;  %v6947_v13 = vld [vmem:[#allocation7 + $0x178] sm:$0xff]   ;;  %s6318_s12 = sshll.u32 %s7389_s22, 12 }
  0x61   : > { %v631_v4 = vshll.u32 %v6287_v59, 16  ;;  %v1191_v7 = vrot.slane %v1189_v62, 5  ;;  %v622_v14 = vrot.slane %v620_v1, 7  ;;  %v942_v20 = vld [vmem:[#allocation2 + $0xc] sm:$0xf]  ;;  %v818_v37 = vshll.u32 %v6309_v22, 16  ;;  %s8954_s15 = scalar_lea.hbm %s9005_s5, %s6318_s12 }
  0x62   : > { %6330 = vmatpush3.bf16.msra.mxu0 %v6930_v17  ;;  %6852 = vmatpush3.bf16.msra.mxu1 %v6930_v17  ;;  %v1172_v5 = vrot.slane %v1170_v60, 4  ;;  %v1175_v6 = vrot.slane %v1173_v61, 5  ;;  %v630_v15 = vrot.slane %v628_v3, 7  ;;  %v6308_v17 = vpack.c.bf16 %v391_v63, %v391_v63  ;;  %v946_v21 = vld [vmem:[#allocation2 + $0x14] sm:$0x1]  ;;  %s5887_s6 = sshll.u32 %s8860_s29, 4  ;;  %s8956_s6 = int_to_ptr.vmem [resolvable:$true] %s5887_s6 }
  0x63   : > { %6331 = vmatprep.subr.bf16.mxu0 %v6931_v32  ;;  %6845 = vmatprep.subr.bf16.mxu1 %v6931_v32  ;;  %v1192_v19 = vsel %vm7549_vm9, %v1187_v52, %v1191_v7  ;;  %v625_v23 = vor.u32 %v623_v2, %v622_v14  ;;  %v626_v24 = vrot.slane %v622_v14, 4  ;;  %v815_v32 = vshrl.u32 %v6309_v22, 16  ;;  %v1019_v38 = vld [vmem:[#allocation2 + $0x90] sm:$0xf]  ;;  %v1023_v48 = vld [vmem:[#allocation2 + $0x98] sm:$0x1] }
  0x64   : > { %v1176_v18 = vor.u32 %v1175_v6, %v1172_v5  ;;  %1586 = vst [vmem:[#allocation3 + $0x28] sm:$0xf] %v1192_v19  ;;  %v633_v27 = vor.u32 %v631_v4, %v630_v15  ;;  %v635_v28 = vrot.slane %v630_v15, 4  ;;  %v807_v30 = vshrl.u32 %v6308_v17, 16  ;;  %v450_v52 = vld [vmem:[#allocation2 + $0x9c] sm:$0x1] }
  0x65   : > { %v810_v31 = vshll.u32 %v6308_v17, 16  ;;  %v943_v35 = vsel %vm7561_vm11, %v625_v23, %v942_v20  ;;  %v817_v44 = vrot.slane %v815_v32, 7  ;;  %419 = vst [vmem:[#allocation2 + $0x18] sm:$0x1] %v418_v50  ;;  %v340_v58 = vadd.f32 %v7524_v26, %v301_v49  ;;  %v506_v60 = vld [vmem:[#allocation2 + $0xa4] sm:$0x1] }
  0x66   : > { %6332 = vmatpush3.bf16.msra.mxu0 %v6932_v47  ;;  %6853 = vmatpush3.bf16.msra.mxu1 %v6932_v47  ;;  %v1177_v29 = vrot.slane %v1176_v18, 4  ;;  %v634_v34 = vsel %vm7555_vm10, %v626_v24, %v633_v27  ;;  %v947_v36 = vsel %vm7501_vm2, %v635_v28, %v946_v21  ;;  %944 = vst [vmem:[#allocation2 + $0xc] sm:$0xf] %v943_v35  ;;  %v809_v43 = vrot.slane %v807_v30, 7  ;;  %v283_v47 = vld [vmem:[%s7490_s17 + $0xc0] sm:$0xff]  ;;  %v284_v4 = vld [vmem:[%s7490_s17 + $0xc8] sm:$0xff] }
  0x67   : > { %6333 = vmatprep.subr.bf16.mxu0 %v6933_v51  ;;  %6846 = vmatprep.subr.bf16.mxu1 %v6933_v51  ;;  %945 = vst [vmem:[#allocation2 + $0x10] sm:$0xf] %v634_v34  ;;  %948 = vst [vmem:[#allocation2 + $0x14] sm:$0x1] %v947_v36  ;;  %v474_v51 = vsel %vm7506_vm4, 0, %v473_v46  ;;  %v820_v55 = vor.u32 %v818_v37, %v817_v44  ;;  %v822_v56 = vrot.slane %v817_v44, 4 }
  0x68   : > { %v1182_v42 = vsel %vm7549_vm9, %v1177_v29, %v7529_v33  ;;  %v322_v33 = vmul.f32 %v7519_v25, %v283_v47  ;;  %v812_v53 = vor.u32 %v810_v31, %v809_v43  ;;  %475 = vst [vmem:[#allocation2 + $0x20] sm:$0x1] %v474_v51  ;;  %v451_v1 = vsel %vm7501_vm2, 0, %v450_v52  ;;  %v6949_v5 = vld [vmem:[#allocation7 + $0x138] sm:$0xff]   ;;  %v6935_v17 = vld [vmem:[#allocation3] ss:$36 sps:$4 sm:$0xff]  }
  0x69   : > { %1585 = vst [vmem:[#allocation3 + $0x4] sm:$0xf] %v1182_v42  ;;  %v1024_v63 = vsel %vm7501_vm2, %v822_v56, %v1023_v48  ;;  %v371_v2 = vmax.f32 %v339_v57, 0.0  ;;  %v372_v3 = vmax.f32 %v340_v58, 0.0  ;;  %452 = vst [vmem:[#allocation2 + $0x9c] sm:$0x1] %v451_v1  ;;  %v323_v24 = vmul.f32 %v7519_v25, %v284_v4 }
  0x6a   : > { %6334 = vmatpush3.bf16.msra.mxu0 %v6934_v54  ;;  %6854 = vmatpush3.bf16.msra.mxu1 %v6934_v54  ;;  %v813_v54 = vrot.slane %v809_v43, 4  ;;  %v361_v59 = vadd.f32 %v7524_v26, %v322_v33  ;;  %v1020_v62 = vsel %vm7561_vm11, %v812_v53, %v1019_v38  ;;  %1025 = vst [vmem:[#allocation2 + $0x98] sm:$0x1] %v1024_v63  ;;  %v507_v7 = vsel %vm7506_vm4, 0, %v506_v60  ;;  %s5874_s23 = scalar_lea.sflag [#allocation6], %s7484_s11  ;;  %s7258_s27 = scalar_lea.vmem %s8956_s6, 4096 }
  0x6b   : > { %6431 = vmatprep.subr.bf16.mxu1 %v6943_v12  ;;  %6543 = vmatprep.subr.bf16.mxu0 %v6947_v13  ;;  %1021 = vst [vmem:[#allocation2 + $0x90] sm:$0xf] %v1020_v62  ;;  %v6288_v14 = vpack.c.bf16 %v371_v2, %v371_v2  ;;  %v7600_v15 = vpack.c.bf16 %v372_v3, %v372_v3  ;;  %508 = vst [vmem:[#allocation2 + $0xa4] sm:$0x1] %v507_v7  ;;  %v263_v2 = vld [vmem:[%s7490_s17 + $0x20] sm:$0xff]  ;;  %p7259_p3 = scmp.ne.s32.totalorder %s8956_s6, %s7258_s27  ;;  %p9081_p11 = scmp.ne.s32.totalorder %s9016_s14, 0 }
  0x6c   : > { %v821_v61 = vsel %vm7555_vm10, %v813_v54, %v820_v55  ;;  %v393_v6 = vmax.f32 %v361_v59, 0.0  ;;  %v362_v46 = vadd.f32 %v7524_v26, %v323_v24  ;;  %v949_v56 = vld [vmem:[#allocation2 + $0x18] sm:$0xf]  ;;  %s7335_s22 = smov [#allocation9]  }
  0x6d   : > { %1022 = vst [vmem:[#allocation2 + $0x94] sm:$0xf] %v821_v61  ;;  %v1056_v10 = vld [vmem:[#allocation2 + $0xc] sm:$0xf]  ;;  %v637_v23 = vshrl.u32 %v6288_v14, 16  ;;  %v640_v34 = vshll.u32 %v6288_v14, 16  ;;  %p7260_p7 = pnand %p7259_p3, %p9081_p11 }
  0x6e   : > { %v1057_v12 = vld [vmem:[#allocation2 + $0x10] sm:$0xf]  ;;  %v1121_v13 = vld [vmem:[#allocation2 + $0xc] sm:$0xf]  ;;  %1088 = vst [vmem:[#allocation3 + $0x48] sm:$0xf] %v1056_v10  ;;  %v6310_v47 = vpack.c.bf16 %v393_v6, %v393_v6 }
  0x6f   : > { %1089 = vst [vmem:[#allocation3 + $0x6c] sm:$0xf] %v1057_v12  ;;  %v1194_v19 = vshrl.u32 %v1121_v13, 16  ;;  %v1122_v20 = vld [vmem:[#allocation2 + $0x10] sm:$0xf]  ;;  %v1197_v22 = vshll.u32 %v1121_v13, 16  ;;  %p7261_p12 = pneg %p7260_p7 }
  0x70   : > { %v6937_v18 = vld [vmem:[#allocation3 + $0x4] ss:$36 sps:$4 sm:$0xff]   ;;  %v1123_v21 = vld [vmem:[#allocation2 + $0x14] sm:$0x1]  ;;  %v1203_v28 = vshll.u32 %v1122_v20, 16  ;;  %v1207_v29 = vshrl.u32 %v1122_v20, 16 }
  0x71   : > { %5068 = vmatprep.mubr.bf16.mxu0 %v6937_v18  ;;  %v1196_v27 = vrot.slane %v1194_v19, 4  ;;  %v1213_v30 = vshll.u32 %v1123_v21, 16  ;;  %v1199_v31 = vrot.slane %v1197_v22, 5  ;;  %v639_v32 = vrot.slane %v637_v23, 7  ;;  %v1156_v49 = vld [vmem:[#allocation2 + $0x98] sm:$0x1] }
  0x72   : > { %5069 = vmatmul.mubr.bf16.vlgmr.msra.gmra.mxu0 %v6935_v17  ;;  %v645_v35 = vshrl.u32 %v7600_v15, 16  ;;  %v1205_v36 = vrot.slane %v1203_v28, 5  ;;  %v1209_v37 = vrot.slane %v1207_v29, 4  ;;  %v1078_v39 = vld [vmem:[#allocation2 + $0x90] sm:$0xf]  ;;  %v648_v40 = vshll.u32 %v7600_v15, 16 }
  0x73   : > { %v1215_v38 = vrot.slane %v1213_v30, 5  ;;  %6544 = vmatpush3.bf16.msra.mxu0 %v6949_v5  ;;  %v1200_v41 = vor.u32 %v1199_v31, %v1196_v27  ;;  %1110 = vst [vmem:[#allocation3 + $0x360] sm:$0xf] %v1078_v39  ;;  %v1154_v43 = vld [vmem:[#allocation2 + $0x90] sm:$0xf]  ;;  %v642_v45 = vor.u32 %v640_v34, %v639_v32  ;;  %v1477_v54 = vshll.u32 %v1156_v49, 16 }
  0x74   : > { %v1079_v42 = vld [vmem:[#allocation2 + $0x94] sm:$0xf]  ;;  %v1210_v48 = vor.u32 %v1209_v37, %v1205_v36  ;;  %v1458_v50 = vshrl.u32 %v1154_v43, 16  ;;  %v1461_v51 = vshll.u32 %v1154_v43, 16  ;;  %v643_v55 = vrot.slane %v639_v32, 4  ;;  %v264_v10 = vld [vmem:[%s7490_s17 + $0x28] sm:$0xff] }
  0x75   : > { %v1155_v44 = vld [vmem:[#allocation2 + $0x94] sm:$0xf]  ;;  %1111 = vst [vmem:[#allocation3 + $0x384] sm:$0xf] %v1079_v42  ;;  %v1201_v52 = vrot.slane %v1200_v41, 4  ;;  %v1479_v63 = vrot.slane %v1477_v54, 5  ;;  %v950_v5 = vsel %vm7561_vm11, %v642_v45, %v949_v56  ;;  %v302_v23 = vmul.f32 %v7519_v25, %v263_v2 }
  0x76   : > { %v1467_v33 = vshll.u32 %v1155_v44, 16  ;;  %v1471_v53 = vshrl.u32 %v1155_v44, 16  ;;  %v1211_v57 = vrot.slane %v1210_v48, 4  ;;  %v1460_v58 = vrot.slane %v1458_v50, 4  ;;  %v953_v6 = vld [vmem:[#allocation2 + $0x20] sm:$0x1] }
  0x77   : > { %v1463_v59 = vrot.slane %v1461_v51, 5  ;;  %v1206_v61 = vsel %vm7549_vm9, %v1201_v52, %v1205_v36  ;;  %v647_v1 = vrot.slane %v645_v35, 7  ;;  %v394_v7 = vmax.f32 %v362_v46, 0.0  ;;  %951 = vst [vmem:[#allocation2 + $0x18] sm:$0xf] %v950_v5  ;;  %v6965_v30 = vld [vmem:[#allocation7 + $0x170] sm:$0xff]  }
  0x78   : > { %v1469_v60 = vrot.slane %v1467_v33, 5  ;;  %v1473_v62 = vrot.slane %v1471_v53, 4  ;;  %v1216_v3 = vsel %vm7549_vm9, %v1211_v57, %v1215_v38  ;;  %1587 = vst [vmem:[#allocation3 + $0x4c] sm:$0xf] %v1206_v61  ;;  %v824_v15 = vshrl.u32 %v6310_v47, 16  ;;  %v285_v41 = vld [vmem:[%s7490_s17 + $0xd0] sm:$0xff]  ;;  %6545 = vmatprep.subr.bf16.mxu0 %v6965_v30 }
  0x79   : > { %v1464_v4 = vor.u32 %v1463_v59, %v1460_v58  ;;  %1588 = vst [vmem:[#allocation3 + $0x70] sm:$0xf] %v1216_v3  ;;  %v650_v13 = vor.u32 %v648_v40, %v647_v1  ;;  %v652_v14 = vrot.slane %v647_v1, 4  ;;  %v420_v17 = vld [vmem:[#allocation2 + $0x24] sm:$0x1]  ;;  %v6311_v20 = vpack.c.bf16 %v394_v7, %v394_v7  ;;  %v286_v46 = vld [vmem:[%s7490_s17 + $0xd8] sm:$0xff] }
  0x7a   : > { %v1474_v12 = vor.u32 %v1473_v62, %v1469_v60  ;;  %v476_v18 = vld [vmem:[#allocation2 + $0x2c] sm:$0x1]  ;;  %v827_v21 = vshll.u32 %v6310_v47, 16  ;;  %v1026_v22 = vld [vmem:[#allocation2 + $0x9c] sm:$0xf]  ;;  %v826_v29 = vrot.slane %v824_v15, 7  ;;  %v303_v35 = vmul.f32 %v7519_v25, %v264_v10 }
  0x7b   : > { %v1465_v19 = vrot.slane %v1464_v4, 4  ;;  %v651_v27 = vsel %vm7555_vm10, %v643_v55, %v650_v13  ;;  %v954_v28 = vsel %vm7501_vm2, %v652_v14, %v953_v6  ;;  %v832_v32 = vshrl.u32 %v6311_v20, 16  ;;  %v1030_v39 = vld [vmem:[#allocation2 + $0xa4] sm:$0x1]  ;;  %v6969_v47 = vld [vmem:[#allocation7 + $0x130] sm:$0xff]   ;;  %v6945_v3 = vld [vmem:[#allocation7 + $0xb8] sm:$0xff]  }
  0x7c   : > { %v1475_v24 = vrot.slane %v1474_v12, 4  ;;  %952 = vst [vmem:[#allocation2 + $0x1c] sm:$0xf] %v651_v27  ;;  %955 = vst [vmem:[#allocation2 + $0x20] sm:$0x1] %v954_v28  ;;  %v835_v34 = vshll.u32 %v6311_v20, 16  ;;  %v829_v37 = vor.u32 %v827_v21, %v826_v29  ;;  %v341_v40 = vadd.f32 %v7524_v26, %v302_v23  ;;  %6546 = vmatpush3.bf16.msra.mxu0 %v6969_v47 }
  0x7d   : > { %v1470_v31 = vsel %vm7549_vm9, %v1465_v19, %v1469_v60  ;;  %v830_v38 = vrot.slane %v826_v29, 4  ;;  %v834_v42 = vrot.slane %v832_v32, 7  ;;  %v342_v43 = vadd.f32 %v7524_v26, %v303_v35  ;;  %v6944_v51 = vld [vmem:[#allocation3 + $0x48] ss:$36 sps:$4 sm:$0xff]   ;;  %v6940_v10 = vld [vmem:[#allocation3 + $0x360] ss:$36 sps:$4 sm:$0xff]  }
  0x7e   : > { %v1480_v36 = vsel %vm7549_vm9, %v1475_v24, %v1479_v63  ;;  %1609 = vst [vmem:[#allocation3 + $0x364] sm:$0xf] %v1470_v31  ;;  %v421_v44 = vsel %vm7501_vm2, 0, %v420_v17  ;;  %v477_v45 = vsel %vm7506_vm4, 0, %v476_v18  ;;  %v1027_v48 = vsel %vm7561_vm11, %v829_v37, %v1026_v22  ;;  %v1058_v53 = vld [vmem:[#allocation2 + $0x18] sm:$0xf] }
  0x7f   : > { %1610 = vst [vmem:[#allocation3 + $0x388] sm:$0xf] %v1480_v36  ;;  %v373_v49 = vmax.f32 %v341_v40, 0.0  ;;  %422 = vst [vmem:[#allocation2 + $0x24] sm:$0x1] %v421_v44  ;;  %v837_v33 = vor.u32 %v835_v34, %v834_v42  ;;  %v839_v52 = vrot.slane %v834_v42, 4  ;;  %v324_v57 = vmul.f32 %v7519_v25, %v285_v41 }
  0x80   : > { %478 = vst [vmem:[#allocation2 + $0x2c] sm:$0x1] %v477_v45  ;;  %v6938_v50 = vld [vmem:[#allocation3 + $0x4c] ss:$36 sps:$4 sm:$0xff]   ;;  %1028 = vst [vmem:[#allocation2 + $0x9c] sm:$0xf] %v1027_v48  ;;  %v325_v2 = vmul.f32 %v7519_v25, %v286_v46 }
  0x81   : > { %v1124_v54 = vld [vmem:[#allocation2 + $0x18] sm:$0xf]  ;;  %v374_v55 = vmax.f32 %v342_v43, 0.0  ;;  %v7634_v56 = vpack.c.bf16 %v373_v49, %v373_v49  ;;  %5076 = vmatprep.mubr.bf16.mxu0 %v6938_v50  ;;  %1090 = vst [vmem:[#allocation3 + $0x90] sm:$0xf] %v1058_v53  ;;  %v838_v60 = vsel %vm7555_vm10, %v830_v38, %v837_v33  ;;  %v1031_v61 = vsel %vm7501_vm2, %v839_v52, %v1030_v39  ;;  %v6946_v17 = vld [vmem:[#allocation7 + $0xf0] sm:$0xff]  }
  0x82   : > { %v1218_v58 = vshrl.u32 %v1124_v54, 16  ;;  %v1221_v59 = vshll.u32 %v1124_v54, 16  ;;  %5077 = vmatmul.mubr.bf16.gmra.mxu0 %v6944_v51  ;;  %1029 = vst [vmem:[#allocation2 + $0xa0] sm:$0xf] %v838_v60  ;;  %1032 = vst [vmem:[#allocation2 + $0xa4] sm:$0x1] %v1031_v61  ;;  %v7643_v15 = vadd.f32 %v7524_v26, %v324_v57  ;;  %v7649_v29 = vadd.f32 %v7524_v26, %v325_v2 }
  0x83   : > { %v1059_v62 = vld [vmem:[#allocation2 + $0x1c] sm:$0xf]  ;;  %v1126_v1 = vld [vmem:[#allocation2 + $0x20] sm:$0x1]  ;;  %v6291_v14 = vpack.c.bf16 %v374_v55, %v374_v55  ;;  %v654_v21 = vshrl.u32 %v7634_v56, 16  ;;  %v265_v22 = vld [vmem:[%s7490_s17 + $0x30] sm:$0xff] }
  0x84   : > { %v1125_v63 = vld [vmem:[#allocation2 + $0x1c] sm:$0xf]  ;;  %1091 = vst [vmem:[#allocation3 + $0xb4] sm:$0xf] %v1059_v62  ;;  %v1220_v4 = vrot.slane %v1218_v58, 4  ;;  %v1223_v5 = vrot.slane %v1221_v59, 5  ;;  %v7652_v30 = vmul.f32 %v7519_v25, %v265_v22 }
  0x85   : > { %v1227_v6 = vshll.u32 %v1125_v63, 16  ;;  %v1231_v7 = vshrl.u32 %v1125_v63, 16  ;;  %v1237_v13 = vshll.u32 %v1126_v1, 16  ;;  %v657_v28 = vshll.u32 %v7634_v56, 16  ;;  %v6948_v31 = vld [vmem:[#allocation7 + $0xb0] sm:$0xff]   ;;  %v6954_v37 = vld [vmem:[#allocation7 + $0xe8] sm:$0xff]  }
  0x86   : > { %v6942_v12 = vld [vmem:[#allocation3 + $0x364] ss:$36 sps:$4 sm:$0xff]   ;;  %v1224_v18 = vor.u32 %v1223_v5, %v1220_v4  ;;  %v266_v38 = vld [vmem:[%s7490_s17 + $0x38] sm:$0xff]  ;;  %v656_v39 = vrot.slane %v654_v21, 7  ;;  %v662_v40 = vshrl.u32 %v6291_v14, 16  ;;  %v665_v41 = vshll.u32 %v6291_v14, 16 }
  0x87   : > { %v1229_v19 = vrot.slane %v1227_v6, 5  ;;  %v1233_v20 = vrot.slane %v1231_v7, 4  ;;  %5164 = vmatprep.mubr.bf16.mxu1 %v6942_v12  ;;  %v1239_v23 = vrot.slane %v1237_v13, 5  ;;  %v1080_v24 = vld [vmem:[#allocation2 + $0x9c] sm:$0xf]  ;;  %v395_v43 = vmax.f32 %v7643_v15, 0.0 }
  0x88   : > { %v1157_v27 = vld [vmem:[#allocation2 + $0x9c] sm:$0xf]  ;;  %5165 = vmatmul.mubr.bf16.vlgmr.msra.gmra.mxu1 %v6940_v10  ;;  %v1225_v32 = vrot.slane %v1224_v18, 4  ;;  %1112 = vst [vmem:[#allocation3 + $0x3a8] sm:$0xf] %v1080_v24  ;;  %v305_v50 = vmul.f32 %v7519_v25, %v266_v38  ;;  %v659_v54 = vor.u32 %v657_v28, %v656_v39  ;;  %v660_v57 = vrot.slane %v656_v39, 4 }
  0x89   : > { %v1234_v34 = vor.u32 %v1233_v20, %v1229_v19  ;;  %v1482_v35 = vshrl.u32 %v1157_v27, 16  ;;  %v1485_v36 = vshll.u32 %v1157_v27, 16  ;;  %6432 = vmatpush3.bf16.msra.mxu1 %v6945_v3  ;;  %v956_v42 = vld [vmem:[#allocation2 + $0x24] sm:$0xf]  ;;  %v1081_v46 = vld [vmem:[#allocation2 + $0xa0] sm:$0xf]  ;;  %v6312_v21 = vpack.c.bf16 %v395_v43, %v395_v43 }
  0x8a   : > { %6433 = vmatprep.subr.bf16.mxu1 %v6946_v17  ;;  %v1230_v44 = vsel %vm7549_vm9, %v1225_v32, %v1229_v19  ;;  %v1158_v47 = vld [vmem:[#allocation2 + $0xa0] sm:$0xf]  ;;  %v453_v49 = vld [vmem:[#allocation2 + $0xa8] sm:$0x1]  ;;  %1113 = vst [vmem:[#allocation3 + $0x3cc] sm:$0xf] %v1081_v46  ;;  %v957_v1 = vsel %vm7561_vm11, %v659_v54, %v956_v42 }
  0x8b   : > { %v1235_v45 = vrot.slane %v1234_v34, 4  ;;  %v1484_v48 = vrot.slane %v1482_v35, 4  ;;  %1589 = vst [vmem:[#allocation3 + $0x94] sm:$0xf] %v1230_v44  ;;  %v1159_v51 = vld [vmem:[#allocation2 + $0xa4] sm:$0x1] }
  0x8c   : > { %v1487_v33 = vrot.slane %v1485_v36, 5  ;;  %v1491_v52 = vshll.u32 %v1158_v47, 16  ;;  %v1495_v53 = vshrl.u32 %v1158_v47, 16  ;;  %v1501_v56 = vshll.u32 %v1159_v51, 16  ;;  %v509_v59 = vld [vmem:[#allocation2 + $0xb0] sm:$0x1] }
  0x8d   : > { %v1240_v55 = vsel %vm7549_vm9, %v1235_v45, %v1239_v23  ;;  %v664_v58 = vrot.slane %v662_v40, 7  ;;  %6434 = vmatpush3.bf16.msra.mxu1 %v6948_v31  ;;  %v6957_v63 = vld [vmem:[#allocation7 + $0xa8] sm:$0xff]   ;;  %v960_v2 = vld [vmem:[#allocation2 + $0x2c] sm:$0x1]  ;;  %v6958_v4 = vld [vmem:[#allocation7 + $0xe0] sm:$0xff]   ;;  %v396_v7 = vmax.f32 %v7649_v29, 0.0  ;;  %v343_v29 = vadd.f32 %v7524_v26, %v7652_v30 }
  0x8e   : > { %1590 = vst [vmem:[#allocation3 + $0xb8] sm:$0xf] %v1240_v55  ;;  %v1488_v60 = vor.u32 %v1487_v33, %v1484_v48  ;;  %v1493_v61 = vrot.slane %v1491_v52, 5  ;;  %v1497_v62 = vrot.slane %v1495_v53, 4  ;;  %v1503_v3 = vrot.slane %v1501_v56, 5  ;;  %6435 = vmatprep.subr.bf16.mxu1 %v6954_v37  ;;  %v6959_v14 = vld [vmem:[#allocation7 + $0xa0] sm:$0xff]  }
  0x8f   : > { %v667_v5 = vor.u32 %v665_v41, %v664_v58  ;;  %v669_v6 = vrot.slane %v664_v58, 4  ;;  %958 = vst [vmem:[#allocation2 + $0x24] sm:$0xf] %v957_v1  ;;  %v423_v10 = vld [vmem:[#allocation2 + $0x30] sm:$0x1]  ;;  %v454_v15 = vsel %vm7501_vm2, 0, %v453_v49  ;;  %v6313_v22 = vpack.c.bf16 %v396_v7, %v396_v7 }
  0x90   : > { %v1489_v12 = vrot.slane %v1488_v60, 4  ;;  %v1498_v13 = vor.u32 %v1497_v62, %v1493_v61  ;;  %v510_v17 = vsel %vm7506_vm4, 0, %v509_v59  ;;  %v287_v18 = vld [vmem:[%s7490_s17 + $0xe0] sm:$0xff]  ;;  %455 = vst [vmem:[#allocation2 + $0xa8] sm:$0x1] %v454_v15  ;;  %v6964_v23 = vld [vmem:[#allocation7 + $0xd8] sm:$0xff]   ;;  %v344_v31 = vadd.f32 %v7524_v26, %v305_v50 }
  0x91   : > { %v668_v19 = vsel %vm7555_vm10, %v660_v57, %v667_v5  ;;  %v961_v20 = vsel %vm7501_vm2, %v669_v6, %v960_v2  ;;  %511 = vst [vmem:[#allocation2 + $0xb0] sm:$0x1] %v510_v17  ;;  %v479_v24 = vld [vmem:[#allocation2 + $0x38] sm:$0x1]  ;;  %6436 = vmatpush3.bf16.msra.mxu1 %v6957_v63  ;;  %v288_v32 = vld [vmem:[%s7490_s17 + $0xe8] sm:$0xff]  ;;  %v841_v34 = vshrl.u32 %v6312_v21, 16  ;;  %v326_v47 = vmul.f32 %v7519_v25, %v287_v18 }
  0x92   : > { %v1494_v27 = vsel %vm7549_vm9, %v1489_v12, %v1493_v61  ;;  %v1499_v28 = vrot.slane %v1498_v13, 4  ;;  %959 = vst [vmem:[#allocation2 + $0x28] sm:$0xf] %v668_v19  ;;  %962 = vst [vmem:[#allocation2 + $0x2c] sm:$0x1] %v961_v20  ;;  %6437 = vmatprep.subr.bf16.mxu1 %v6958_v4  ;;  %v844_v35 = vshll.u32 %v6312_v21, 16  ;;  %v327_v48 = vmul.f32 %v7519_v25, %v288_v32 }
  0x93   : > { %1611 = vst [vmem:[#allocation3 + $0x3ac] sm:$0xf] %v1494_v27  ;;  %v849_v36 = vshrl.u32 %v6313_v22, 16  ;;  %v852_v37 = vshll.u32 %v6313_v22, 16  ;;  %v6981_v38 = vld [vmem:[#allocation7 + $0x168] sm:$0xff]   ;;  %v6968_v40 = vld [vmem:[#allocation7 + $0x98] sm:$0xff]   ;;  %v365_v6 = vadd.f32 %v7524_v26, %v326_v47 }
  0x94   : > { %v1504_v39 = vsel %vm7549_vm9, %v1499_v28, %v1503_v3  ;;  %v375_v41 = vmax.f32 %v343_v29, 0.0  ;;  %v376_v42 = vmax.f32 %v344_v31, 0.0  ;;  %v424_v43 = vsel %vm7501_vm2, 0, %v423_v10  ;;  %v6955_v44 = vld [vmem:[#allocation3 + $0x90] ss:$36 sps:$4 sm:$0xff]   ;;  %6547 = vmatprep.subr.bf16.mxu0 %v6981_v38  ;;  %v6983_v57 = vld [vmem:[#allocation7 + $0x128] sm:$0xff]  }
  0x95   : > { %v6950_v30 = vld [vmem:[#allocation3 + $0x94] ss:$36 sps:$4 sm:$0xff]   ;;  %1612 = vst [vmem:[#allocation3 + $0x3d0] sm:$0xf] %v1504_v39  ;;  %v843_v45 = vrot.slane %v841_v34, 7  ;;  %6438 = vmatpush3.bf16.msra.mxu1 %v6959_v14  ;;  %v851_v51 = vrot.slane %v849_v36, 7  ;;  %v7693_v7 = vadd.f32 %v7524_v26, %v327_v48  ;;  %6548 = vmatpush3.bf16.msra.mxu0 %v6983_v57 }
  0x96   : > { %v6970_v46 = vld [vmem:[#allocation7 + $0xd0] sm:$0xff]   ;;  %425 = vst [vmem:[#allocation2 + $0x30] sm:$0x1] %v424_v43  ;;  %v1060_v49 = vld [vmem:[#allocation2 + $0x24] sm:$0xf]  ;;  %v480_v33 = vsel %vm7506_vm4, 0, %v479_v24  ;;  %v6292_v52 = vpack.c.bf16 %v375_v41, %v375_v41  ;;  %5084 = vmatprep.mubr.bf16.mxu0 %v6950_v30  ;;  %6439 = vmatprep.subr.bf16.mxu1 %v6964_v23  ;;  %v7689_v5 = vpack.c.bf16 %v376_v42, %v376_v42 }
  0x97   : > { %v1127_v50 = vld [vmem:[#allocation2 + $0x24] sm:$0xf]  ;;  %1092 = vst [vmem:[#allocation3 + $0xd8] sm:$0xf] %v1060_v49  ;;  %v846_v55 = vor.u32 %v844_v35, %v843_v45  ;;  %v847_v56 = vrot.slane %v843_v45, 4  ;;  %5085 = vmatmul.mubr.bf16.gmra.mxu0 %v6955_v44  ;;  %v854_v58 = vor.u32 %v852_v37, %v851_v51  ;;  %v856_v59 = vrot.slane %v851_v51, 4 }
  0x98   : > { %v1242_v53 = vshrl.u32 %v1127_v50, 16  ;;  %v1245_v54 = vshll.u32 %v1127_v50, 16  ;;  %481 = vst [vmem:[#allocation2 + $0x38] sm:$0x1] %v480_v33  ;;  %v1033_v60 = vld [vmem:[#allocation2 + $0xa8] sm:$0xf] }
  0x99   : > { %v1037_v61 = vld [vmem:[#allocation2 + $0xb0] sm:$0x1]  ;;  %v6971_v62 = vld [vmem:[#allocation7 + $0x90] sm:$0xff]   ;;  %v671_v63 = vshrl.u32 %v6292_v52, 16  ;;  %v1034_v4 = vsel %vm7561_vm11, %v846_v55, %v1033_v60  ;;  %v6976_v10 = vld [vmem:[#allocation7 + $0xc8] sm:$0xff]   ;;  %6440 = vmatpush3.bf16.msra.mxu1 %v6968_v40  ;;  %v855_v20 = vsel %vm7555_vm10, %v847_v56, %v854_v58  ;;  %v674_v31 = vshll.u32 %v6292_v52, 16 }
  0x9a   : > { %v1061_v1 = vld [vmem:[#allocation2 + $0x28] sm:$0xf]  ;;  %v1129_v3 = vld [vmem:[#allocation2 + $0x2c] sm:$0x1]  ;;  %v1244_v12 = vrot.slane %v1242_v53, 4  ;;  %v1247_v13 = vrot.slane %v1245_v54, 5  ;;  %v1038_v21 = vsel %vm7501_vm2, %v856_v59, %v1037_v61  ;;  %6441 = vmatprep.subr.bf16.mxu1 %v6970_v46 }
  0x9b   : > { %v1128_v2 = vld [vmem:[#allocation2 + $0x28] sm:$0xf]  ;;  %1093 = vst [vmem:[#allocation3 + $0xfc] sm:$0xf] %v1061_v1  ;;  %1035 = vst [vmem:[#allocation2 + $0xa8] sm:$0xf] %v1034_v4 }
  0x9c   : > { %v1251_v14 = vshll.u32 %v1128_v2, 16  ;;  %v1255_v15 = vshrl.u32 %v1128_v2, 16  ;;  %v456_v17 = vld [vmem:[#allocation2 + $0xb4] sm:$0x1]  ;;  %v267_v18 = vld [vmem:[%s7490_s17 + $0x40] sm:$0xff]  ;;  %v1261_v19 = vshll.u32 %v1129_v3, 16  ;;  %v1248_v24 = vor.u32 %v1247_v13, %v1244_v12 }
  0x9d   : > { %v7700_v26 = vrot.slane %v671_v63, 7  ;;  %v6952_v22 = vld [vmem:[#allocation3 + $0x3ac] ss:$36 sps:$4 sm:$0xff]   ;;  %1036 = vst [vmem:[#allocation2 + $0xac] sm:$0xf] %v855_v20  ;;  %v306_v35 = vmul.f32 %v7519_v25, %v267_v18  ;;  %6442 = vmatpush3.bf16.msra.mxu1 %v6971_v62  ;;  %v679_v37 = vshrl.u32 %v7689_v5, 16 }
  0x9e   : > { %v6956_v23 = vld [vmem:[#allocation3 + $0x3a8] ss:$36 sps:$4 sm:$0xff]   ;;  %v1253_v27 = vrot.slane %v1251_v14, 5  ;;  %1039 = vst [vmem:[#allocation2 + $0xb0] sm:$0x1] %v1038_v21  ;;  %v1257_v28 = vrot.slane %v1255_v15, 4  ;;  %5172 = vmatprep.mubr.bf16.mxu1 %v6952_v22  ;;  %6443 = vmatprep.subr.bf16.mxu1 %v6976_v10 }
  0x9f   : > { %v1263_v29 = vrot.slane %v1261_v19, 5  ;;  %v512_v32 = vld [vmem:[#allocation2 + $0xbc] sm:$0x1]  ;;  %v6979_v34 = vld [vmem:[#allocation7 + $0x88] sm:$0xff]   ;;  %v1249_v36 = vrot.slane %v1248_v24, 4  ;;  %v682_v38 = vshll.u32 %v7689_v5, 16  ;;  %5173 = vmatmul.mubr.bf16.gmra.mxu1 %v6956_v23  ;;  %v676_v42 = vor.u32 %v674_v31, %v7700_v26 }
  0xa0   : > { %v963_v39 = vld [vmem:[#allocation2 + $0x30] sm:$0xf]  ;;  %v397_v40 = vmax.f32 %v365_v6, 0.0  ;;  %v1258_v41 = vor.u32 %v1257_v28, %v1253_v27  ;;  %v398_v43 = vmax.f32 %v7693_v7, 0.0  ;;  %v457_v30 = vsel %vm7501_vm2, 0, %v456_v17  ;;  %v6980_v25 = vld [vmem:[#allocation7 + $0xc0] sm:$0xff]  }
  0xa1   : > { %v268_v44 = vld [vmem:[%s7490_s17 + $0x48] sm:$0xff]  ;;  %v1254_v45 = vsel %vm7549_vm9, %v1249_v36, %v1253_v27  ;;  %v677_v46 = vrot.slane %v7700_v26, 4  ;;  %v681_v47 = vrot.slane %v679_v37, 7  ;;  %458 = vst [vmem:[#allocation2 + $0xb4] sm:$0x1] %v457_v30  ;;  %v513_v48 = vsel %vm7506_vm4, 0, %v512_v32  ;;  %6444 = vmatpush3.bf16.msra.mxu1 %v6979_v34 }
  0xa2   : > { %v1259_v49 = vrot.slane %v1258_v41, 4  ;;  %1591 = vst [vmem:[#allocation3 + $0xdc] sm:$0xf] %v1254_v45  ;;  %v1082_v50 = vld [vmem:[#allocation2 + $0xa8] sm:$0xf]  ;;  %v964_v33 = vsel %vm7561_vm11, %v676_v42, %v963_v39  ;;  %v6314_v52 = vpack.c.bf16 %v397_v40, %v397_v40  ;;  %v6982_v53 = vld [vmem:[#allocation7 + $0x80] sm:$0xff]   ;;  %v6315_v3 = vpack.c.bf16 %v398_v43, %v398_v43  ;;  %6445 = vmatprep.subr.bf16.mxu1 %v6980_v25 }
  0xa3   : > { %v1160_v51 = vld [vmem:[#allocation2 + $0xa8] sm:$0xf]  ;;  %514 = vst [vmem:[#allocation2 + $0xbc] sm:$0x1] %v513_v48  ;;  %v7720_v54 = vld [vmem:[%s9001_s1] ss:$0 sm:$0xff]  ;;  %v684_v58 = vor.u32 %v682_v38, %v681_v47 }
  0xa4   : > { %v307_v55 = vmul.f32 %v7720_v54, %v268_v44  ;;  %1114 = vst [vmem:[#allocation3 + $0x3f0] sm:$0xf] %v1082_v50  ;;  %v1506_v56 = vshrl.u32 %v1160_v51, 16  ;;  %v1509_v57 = vshll.u32 %v1160_v51, 16  ;;  %v686_v59 = vrot.slane %v681_v47, 4  ;;  %v6989_v61 = vld [vmem:[#allocation7 + $0x1f8] sm:$0xff]  }
  0xa5   : > { %965 = vst [vmem:[#allocation2 + $0x30] sm:$0xf] %v964_v33  ;;  %v967_v60 = vld [vmem:[#allocation2 + $0x38] sm:$0x1]  ;;  %v1264_v62 = vsel %vm7549_vm9, %v1259_v49, %v1263_v29  ;;  %v1083_v63 = vld [vmem:[#allocation2 + $0xac] sm:$0xf]  ;;  %v685_v15 = vsel %vm7555_vm10, %v677_v46, %v684_v58  ;;  %6446 = vmatpush3.bf16.msra.mxu1 %v6982_v53 }
  0xa6   : > { %v1161_v1 = vld [vmem:[#allocation2 + $0xac] sm:$0xf]  ;;  %v1162_v2 = vld [vmem:[#allocation2 + $0xb0] sm:$0x1]  ;;  %v7728_v4 = vld [vmem:[%s9002_s2] ss:$0 sm:$0xff]  ;;  %v968_v17 = vsel %vm7501_vm2, %v686_v59, %v967_v60  ;;  %6655 = vmatprep.subr.bf16.mxu1 %v6989_v61 }
  0xa7   : > { %v345_v5 = vadd.f32 %v7728_v4, %v306_v35  ;;  %v7732_v6 = vadd.f32 %v7728_v4, %v307_v55  ;;  %1592 = vst [vmem:[#allocation3 + $0x100] sm:$0xf] %v1264_v62  ;;  %1115 = vst [vmem:[#allocation3 + $0x414] sm:$0xf] %v1083_v63  ;;  %v1508_v7 = vrot.slane %v1506_v56, 4  ;;  %v1511_v10 = vrot.slane %v1509_v57, 5 }
  0xa8   : > { %v1515_v12 = vshll.u32 %v1161_v1, 16  ;;  %v1519_v13 = vshrl.u32 %v1161_v1, 16  ;;  %v1525_v14 = vshll.u32 %v1162_v2, 16  ;;  %v858_v18 = vshrl.u32 %v6314_v52, 16  ;;  %v1892_v19 = vld [vmem:[#allocation2 + $0xc] sm:$0xf] }
  0xa9   : > { %v1512_v20 = vor.u32 %v1511_v10, %v1508_v7  ;;  %966 = vst [vmem:[#allocation2 + $0x34] sm:$0xf] %v685_v15  ;;  %969 = vst [vmem:[#allocation2 + $0x38] sm:$0x1] %v968_v17  ;;  %v861_v22 = vshll.u32 %v6314_v52, 16  ;;  %v269_v24 = vld [vmem:[%s7490_s17 + $0x50] sm:$0xff] }
  0xaa   : > { %v1517_v21 = vrot.slane %v1515_v12, 5  ;;  %v1521_v26 = vrot.slane %v1519_v13, 4  ;;  %v1893_v23 = vld [vmem:[#allocation2 + $0x10] sm:$0xf]  ;;  %1924 = vst [vmem:[#allocation3 + $0xc] sm:$0xf] %v1892_v19  ;;  %v7742_v44 = vmul.f32 %v7720_v54, %v269_v24 }
  0xab   : > { %v1527_v27 = vrot.slane %v1525_v14, 5  ;;  %v860_v28 = vrot.slane %v858_v18, 7  ;;  %v866_v29 = vshrl.u32 %v6315_v3, 16  ;;  %v869_v31 = vshll.u32 %v6315_v3, 16  ;;  %v1040_v32 = vld [vmem:[#allocation2 + $0xb4] sm:$0xf] }
  0xac   : > { %v426_v34 = vld [vmem:[#allocation2 + $0x3c] sm:$0x1]  ;;  %1925 = vst [vmem:[#allocation3 + $0x30] sm:$0xf] %v1893_v23  ;;  %v1513_v35 = vrot.slane %v1512_v20, 4  ;;  %v1522_v36 = vor.u32 %v1521_v26, %v1517_v21  ;;  %v377_v38 = vmax.f32 %v345_v5, 0.0 }
  0xad   : > { %v1044_v37 = vld [vmem:[#allocation2 + $0xbc] sm:$0x1]  ;;  %v378_v39 = vmax.f32 %v7732_v6, 0.0  ;;  %v270_v40 = vld [vmem:[%s7490_s17 + $0x58] sm:$0xff]  ;;  %v863_v43 = vor.u32 %v861_v22, %v860_v28  ;;  %v864_v30 = vrot.slane %v860_v28, 4  ;;  %v868_v25 = vrot.slane %v866_v29, 7 }
  0xae   : > { %v1062_v41 = vld [vmem:[#allocation2 + $0x30] sm:$0xf]  ;;  %v1518_v45 = vsel %vm7549_vm9, %v1513_v35, %v1517_v21  ;;  %v1523_v46 = vrot.slane %v1522_v36, 4  ;;  %v482_v49 = vld [vmem:[#allocation2 + $0x44] sm:$0x1]  ;;  %v6996_v50 = vld [vmem:[#allocation7 + $0x160] sm:$0xff]   ;;  %v6294_v56 = vpack.c.bf16 %v377_v38, %v377_v38  ;;  %v309_v12 = vmul.f32 %v7720_v54, %v270_v40 }
  0xaf   : > { %v1130_v42 = vld [vmem:[#allocation2 + $0x30] sm:$0xf]  ;;  %1094 = vst [vmem:[#allocation3 + $0x120] sm:$0xf] %v1062_v41  ;;  %v6960_v51 = vld [vmem:[#allocation3 + $0xdc] ss:$36 sps:$4 sm:$0xff]   ;;  %v871_v52 = vor.u32 %v869_v31, %v868_v25  ;;  %v1041_v55 = vsel %vm7561_vm11, %v863_v43, %v1040_v32  ;;  %6549 = vmatprep.subr.bf16.mxu0 %v6996_v50  ;;  %v6295_v6 = vpack.c.bf16 %v378_v39, %v378_v39 }
  0xb0   : > { %v1266_v47 = vshrl.u32 %v1130_v42, 16  ;;  %v1269_v48 = vshll.u32 %v1130_v42, 16  ;;  %1613 = vst [vmem:[#allocation3 + $0x3f4] sm:$0xf] %v1518_v45  ;;  %v6966_v33 = vld [vmem:[#allocation3 + $0xd8] ss:$36 sps:$4 sm:$0xff]   ;;  %v1528_v57 = vsel %vm7549_vm9, %v1523_v46, %v1527_v27  ;;  %5092 = vmatprep.mubr.bf16.mxu0 %v6960_v51 }
  0xb1   : > { %v873_v53 = vrot.slane %v868_v25, 4  ;;  %1042 = vst [vmem:[#allocation2 + $0xb4] sm:$0xf] %v1041_v55  ;;  %v427_v60 = vsel %vm7501_vm2, 0, %v426_v34  ;;  %v1617_v61 = vld [vmem:[#allocation2] sm:$0xe]  ;;  %v872_v3 = vsel %vm7555_vm10, %v864_v30, %v871_v52  ;;  %5093 = vmatmul.mubr.bf16.gmra.mxu0 %v6966_v33 }
  0xb2   : > { %v1268_v58 = vrot.slane %v1266_v47, 4  ;;  %v1271_v59 = vrot.slane %v1269_v48, 5  ;;  %v6999_v62 = vld [vmem:[#allocation7 + $0x120] sm:$0xff]   ;;  %1614 = vst [vmem:[#allocation3 + $0x418] sm:$0xf] %v1528_v57  ;;  %v483_v18 = vsel %vm7506_vm4, 0, %v482_v49  ;;  %v347_v49 = vadd.f32 %v7728_v4, %v7742_v44 }
  0xb3   : > { %v1063_v63 = vld [vmem:[#allocation2 + $0x34] sm:$0xf]  ;;  %v1132_v2 = vld [vmem:[#allocation2 + $0x38] sm:$0x1]  ;;  %v1045_v5 = vsel %vm7501_vm2, %v873_v53, %v1044_v37  ;;  %428 = vst [vmem:[#allocation2 + $0x3c] sm:$0x1] %v427_v60  ;;  %6550 = vmatpush3.bf16.msra.mxu0 %v6999_v62  ;;  %v348_v53 = vadd.f32 %v7728_v4, %v309_v12 }
  0xb4   : > { %v1131_v1 = vld [vmem:[#allocation2 + $0x34] sm:$0xf]  ;;  %v7756_v7 = vld [vmem:[#allocation2 + $0x4] sm:$0xf]  ;;  %v7758_v10 = vld [vmem:[#allocation2 + $0x8] sm:$0x1]  ;;  %v1272_v13 = vor.u32 %v1271_v59, %v1268_v58 }
  0xb5   : > { %1095 = vst [vmem:[#allocation3 + $0x144] sm:$0xf] %v1063_v63  ;;  %v1275_v14 = vshll.u32 %v1131_v1, 16  ;;  %v1279_v15 = vshrl.u32 %v1131_v1, 16  ;;  %v1285_v17 = vshll.u32 %v1132_v2, 16  ;;  %v688_v19 = vshrl.u32 %v6294_v56, 16 }
  0xb6   : > { %1043 = vst [vmem:[#allocation2 + $0xb8] sm:$0xf] %v872_v3  ;;  %1046 = vst [vmem:[#allocation2 + $0xbc] sm:$0x1] %v1045_v5  ;;  %v691_v20 = vshll.u32 %v6294_v56, 16  ;;  %v696_v21 = vshrl.u32 %v6295_v6, 16 }
  0xb7   : > { %v1273_v26 = vrot.slane %v1272_v13, 4  ;;  %v1277_v22 = vrot.slane %v1275_v14, 5  ;;  %v1281_v23 = vrot.slane %v1279_v15, 4  ;;  %v1287_v24 = vrot.slane %v1285_v17, 5  ;;  %484 = vst [vmem:[#allocation2 + $0x44] sm:$0x1] %v483_v18 }
  0xb8   : > { %v690_v27 = vrot.slane %v688_v19, 7  ;;  %v698_v28 = vrot.slane %v696_v21, 7  ;;  %v699_v29 = vshll.u32 %v6295_v6, 16  ;;  %v6015_v32 = vrot.slane %v1617_v61, 9  ;;  %v271_v38 = vld [vmem:[%s7490_s17 + $0x60] sm:$0xff]  ;;  %v272_v39 = vld [vmem:[%s7490_s17 + $0x68] sm:$0xff] }
  0xb9   : > { %v1278_v34 = vsel %vm7549_vm9, %v1273_v26, %v1277_v22  ;;  %v1282_v35 = vor.u32 %v1281_v23, %v1277_v22  ;;  %v1718_v36 = vrot.slane %v7756_v7, 5  ;;  %v1721_v37 = vrot.slane %v7758_v10, 5  ;;  %v1084_v40 = vld [vmem:[#allocation2 + $0xb4] sm:$0xf]  ;;  %v6962_v45 = vld [vmem:[#allocation3 + $0x3f4] ss:$36 sps:$4 sm:$0xff]  }
  0xba   : > { %1593 = vst [vmem:[#allocation3 + $0x124] sm:$0xf] %v1278_v34  ;;  %v1163_v41 = vld [vmem:[#allocation2 + $0xb4] sm:$0xf]  ;;  %v693_v42 = vor.u32 %v691_v20, %v690_v27  ;;  %v694_v43 = vrot.slane %v690_v27, 4  ;;  %v701_v30 = vor.u32 %v699_v29, %v698_v28  ;;  %v703_v25 = vrot.slane %v698_v28, 4  ;;  %5180 = vmatprep.mubr.bf16.mxu1 %v6962_v45 }
  0xbb   : > { %v6967_v46 = vld [vmem:[#allocation3 + $0x3f0] ss:$36 sps:$4 sm:$0xff]   ;;  %v1283_v47 = vrot.slane %v1282_v35, 4  ;;  %1116 = vst [vmem:[#allocation3 + $0x438] sm:$0xf] %v1084_v40  ;;  %v1719_v48 = vsel %vm7765_vm14, %v6015_v32, %v1718_v36  ;;  %v7783_v57 = vmul.f32 %v7720_v54, %v271_v38  ;;  %v7786_v58 = vmul.f32 %v7720_v54, %v272_v39  ;;  %v7008_v15 = vld [vmem:[#allocation7 + $0x158] sm:$0xff]  }
  0xbc   : > { %v702_v52 = vsel %vm7555_vm10, %v694_v43, %v701_v30  ;;  %1860 = vst [vmem:[#allocation3 + $0x8] sm:$0xf] %v1719_v48  ;;  %v429_v55 = vld [vmem:[#allocation2 + $0x48] sm:$0x1]  ;;  %v485_v56 = vld [vmem:[#allocation2 + $0x50] sm:$0x1]  ;;  %5181 = vmatmul.mubr.bf16.gmra.mxu1 %v6967_v46  ;;  %6551 = vmatprep.subr.bf16.mxu0 %v7008_v15 }
  0xbd   : > { %v1085_v50 = vld [vmem:[#allocation2 + $0xb8] sm:$0xf]  ;;  %v1165_v33 = vld [vmem:[#allocation2 + $0xbc] sm:$0x1]  ;;  %v1288_v44 = vsel %vm7549_vm9, %v1283_v47, %v1287_v24  ;;  %v1530_v59 = vshrl.u32 %v1163_v41, 16  ;;  %v1533_v60 = vshll.u32 %v1163_v41, 16 }
  0xbe   : > { %v1164_v51 = vld [vmem:[#allocation2 + $0xb8] sm:$0xf]  ;;  %1117 = vst [vmem:[#allocation3 + $0x45c] sm:$0xf] %v1085_v50  ;;  %v970_v62 = vld [vmem:[#allocation2 + $0x3c] sm:$0xf] }
  0xbf   : > { %v1539_v61 = vshll.u32 %v1164_v51, 16  ;;  %973 = vst [vmem:[#allocation2 + $0x40] sm:$0xf] %v702_v52  ;;  %v1620_v63 = vld [vmem:[#allocation2 + $0xc] sm:$0xe]  ;;  %v1543_v1 = vshrl.u32 %v1164_v51, 16  ;;  %v971_v3 = vsel %vm7561_vm11, %v693_v42, %v970_v62 }
  0xc0   : > { %1594 = vst [vmem:[#allocation3 + $0x148] sm:$0xf] %v1288_v44  ;;  %v1549_v2 = vshll.u32 %v1165_v33, 16  ;;  %v974_v5 = vld [vmem:[#allocation2 + $0x44] sm:$0x1]  ;;  %v1720_v6 = vrot.slane %v1718_v36, 4 }
  0xc1   : > { %v1532_v7 = vrot.slane %v1530_v59, 4  ;;  %v1535_v10 = vrot.slane %v1533_v60, 5  ;;  %v1541_v12 = vrot.slane %v1539_v61, 5  ;;  %972 = vst [vmem:[#allocation2 + $0x3c] sm:$0xf] %v971_v3  ;;  %v975_v13 = vsel %vm7501_vm2, %v703_v25, %v974_v5  ;;  %v7009_v26 = vld [vmem:[#allocation7 + $0x118] sm:$0xff]  }
  0xc2   : > { %v7794_v14 = vld [vmem:[#allocation2 + $0x10] sm:$0xf]  ;;  %v1545_v17 = vrot.slane %v1543_v1, 4  ;;  %v1551_v18 = vrot.slane %v1549_v2, 5  ;;  %976 = vst [vmem:[#allocation2 + $0x44] sm:$0x1] %v975_v13  ;;  %v1722_v19 = vsel %vm7765_vm14, %v1720_v6, %v1721_v37  ;;  %6552 = vmatpush3.bf16.msra.mxu0 %v7009_v26 }
  0xc3   : > { %v379_v20 = vmax.f32 %v347_v49, 0.0  ;;  %v7798_v21 = vld [vmem:[#allocation2 + $0x14] sm:$0x1]  ;;  %v1536_v22 = vor.u32 %v1535_v10, %v1532_v7  ;;  %1861 = vst [vmem:[#allocation3 + $0x2c] sm:$0xf] %v1722_v19  ;;  %v380_v23 = vmax.f32 %v348_v53, 0.0  ;;  %v349_v49 = vadd.f32 %v7728_v4, %v7783_v57 }
  0xc4   : > { %v430_v24 = vsel %vm7501_vm2, 0, %v429_v55  ;;  %v486_v27 = vsel %vm7506_vm4, 0, %v485_v56  ;;  %v1894_v28 = vld [vmem:[#allocation2 + $0x18] sm:$0xf]  ;;  %v1546_v29 = vor.u32 %v1545_v17, %v1541_v12  ;;  %v6016_v34 = vrot.slane %v1620_v63, 9  ;;  %v273_v39 = vld [vmem:[%s7490_s17 + $0x70] sm:$0xff] }
  0xc5   : > { %431 = vst [vmem:[#allocation2 + $0x48] sm:$0x1] %v430_v24  ;;  %487 = vst [vmem:[#allocation2 + $0x50] sm:$0x1] %v486_v27  ;;  %v6296_v32 = vpack.c.bf16 %v379_v20, %v379_v20  ;;  %v1725_v35 = vrot.slane %v7794_v14, 5  ;;  %v1537_v37 = vrot.slane %v1536_v22, 4  ;;  %v6297_v43 = vpack.c.bf16 %v380_v23, %v380_v23 }
  0xc6   : > { %v1895_v36 = vld [vmem:[#allocation2 + $0x1c] sm:$0xf]  ;;  %1926 = vst [vmem:[#allocation3 + $0x54] sm:$0xf] %v1894_v28  ;;  %v1728_v38 = vrot.slane %v7798_v21, 5  ;;  %v1547_v40 = vrot.slane %v1546_v29, 4  ;;  %v312_v50 = vmul.f32 %v7720_v54, %v273_v39  ;;  %v350_v56 = vadd.f32 %v7728_v4, %v7786_v58 }
  0xc7   : > { %1927 = vst [vmem:[#allocation3 + $0x78] sm:$0xf] %v1895_v36  ;;  %v1065_v41 = vld [vmem:[#allocation2 + $0x40] sm:$0xf]  ;;  %v705_v30 = vshrl.u32 %v6296_v32, 16  ;;  %v1726_v25 = vsel %vm7765_vm14, %v6016_v34, %v1725_v35  ;;  %v1542_v46 = vsel %vm7549_vm9, %v1537_v37, %v1541_v12  ;;  %v708_v61 = vshll.u32 %v6296_v32, 16 }
  0xc8   : > { %v1134_v42 = vld [vmem:[#allocation2 + $0x40] sm:$0xf]  ;;  %v6977_v47 = vld [vmem:[#allocation3 + $0x120] ss:$36 sps:$4 sm:$0xff]   ;;  %1097 = vst [vmem:[#allocation3 + $0x18c] sm:$0xf] %v1065_v41  ;;  %v1552_v51 = vsel %vm7549_vm9, %v1547_v40, %v1551_v18  ;;  %v7819_v2 = vadd.f32 %v7728_v4, %v312_v50 }
  0xc9   : > { %v6972_v45 = vld [vmem:[#allocation3 + $0x124] ss:$36 sps:$4 sm:$0xff]   ;;  %v1299_v48 = vshll.u32 %v1134_v42, 16  ;;  %1862 = vst [vmem:[#allocation3 + $0x50] sm:$0xf] %v1726_v25  ;;  %v1303_v53 = vshrl.u32 %v1134_v42, 16 }
  0xca   : > { %1615 = vst [vmem:[#allocation3 + $0x43c] sm:$0xf] %v1542_v46  ;;  %v1064_v33 = vld [vmem:[#allocation2 + $0x3c] sm:$0xf]  ;;  %v707_v55 = vrot.slane %v705_v30, 7  ;;  %5100 = vmatprep.mubr.bf16.mxu0 %v6972_v45  ;;  %v713_v58 = vshrl.u32 %v6297_v43, 16 }
  0xcb   : > { %v1133_v52 = vld [vmem:[#allocation2 + $0x3c] sm:$0xf]  ;;  %1616 = vst [vmem:[#allocation3 + $0x460] sm:$0xf] %v1552_v51  ;;  %1096 = vst [vmem:[#allocation3 + $0x168] sm:$0xf] %v1064_v33  ;;  %5101 = vmatmul.mubr.bf16.gmra.mxu0 %v6977_v47 }
  0xcc   : > { %v1135_v44 = vld [vmem:[#allocation2 + $0x44] sm:$0x1]  ;;  %v1290_v59 = vshrl.u32 %v1133_v52, 16  ;;  %v1293_v57 = vshll.u32 %v1133_v52, 16  ;;  %v1301_v60 = vrot.slane %v1299_v48, 5  ;;  %v1305_v62 = vrot.slane %v1303_v53, 4 }
  0xcd   : > { %v1309_v63 = vshll.u32 %v1135_v44, 16  ;;  %v711_v1 = vrot.slane %v707_v55, 4  ;;  %v710_v6 = vor.u32 %v708_v61, %v707_v55  ;;  %v274_v7 = vld [vmem:[%s7490_s17 + $0x78] sm:$0xff]  ;;  %v716_v13 = vshll.u32 %v6297_v43, 16  ;;  %v977_v14 = vld [vmem:[#allocation2 + $0x48] sm:$0xf] }
  0xce   : > { %v1292_v3 = vrot.slane %v1290_v59, 4  ;;  %v1295_v5 = vrot.slane %v1293_v57, 5  ;;  %v1306_v10 = vor.u32 %v1305_v62, %v1301_v60  ;;  %v981_v15 = vld [vmem:[#allocation2 + $0x50] sm:$0x1]  ;;  %v313_v17 = vmul.f32 %v7720_v54, %v274_v7  ;;  %v6988_v23 = vld [vmem:[#allocation3 + $0xc] ss:$36 sps:$4 sm:$0xff]  }
  0xcf   : > { %v1311_v12 = vrot.slane %v1309_v63, 5  ;;  %v715_v19 = vrot.slane %v713_v58, 7  ;;  %v978_v20 = vsel %vm7561_vm11, %v710_v6, %v977_v14  ;;  %v1727_v26 = vrot.slane %v1725_v35, 4  ;;  %v432_v28 = vld [vmem:[#allocation2 + $0x54] sm:$0x1]  ;;  %s7262_s28 = sshll.u32 %s7335_s22, 4  ;;  %s7263_s28 = int_to_ptr.vmem [resolvable:$false] %s7262_s28 }
  0xd0   : > { %v1296_v18 = vor.u32 %v1295_v5, %v1292_v3  ;;  %v1307_v22 = vrot.slane %v1306_v10, 4  ;;  %979 = vst [vmem:[#allocation2 + $0x48] sm:$0xf] %v978_v20  ;;  %v381_v24 = vmax.f32 %v349_v49, 0.0  ;;  %v382_v27 = vmax.f32 %v350_v56, 0.0  ;;  %v6991_v6 = vld [vmem:[#allocation7 + $0x1b8] sm:$0xff]   ;;  %p7265_p10 = scmp.lt.s32.totalorder %s8956_s6, %s7263_s28 }
  0xd1   : > { %v7826_v29 = vadd.f32 %v7728_v4, %v313_v17  ;;  %v718_v34 = vor.u32 %v716_v13, %v715_v19  ;;  %v720_v36 = vrot.slane %v715_v19, 4  ;;  %v1729_v37 = vsel %vm7765_vm14, %v1727_v26, %v1728_v38  ;;  %v488_v39 = vld [vmem:[#allocation2 + $0x5c] sm:$0x1]  ;;  %v6978_v35 = vld [vmem:[#allocation3 + $0x438] ss:$36 sps:$4 sm:$0xff]   ;;  %v7004_v19 = vld [vmem:[#allocation7 + $0x1f0] sm:$0xff]  }
  0xd2   : > { %v1297_v32 = vrot.slane %v1296_v18, 4  ;;  %v6974_v40 = vld [vmem:[#allocation3 + $0x43c] ss:$36 sps:$4 sm:$0xff]   ;;  %v1312_v41 = vsel %vm7549_vm9, %v1307_v22, %v1311_v12  ;;  %1863 = vst [vmem:[#allocation3 + $0x74] sm:$0xf] %v1729_v37  ;;  %v433_v42 = vsel %vm7501_vm2, 0, %v432_v28  ;;  %v6298_v43 = vpack.c.bf16 %v381_v24, %v381_v24 }
  0xd3   : > { %v6299_v30 = vpack.c.bf16 %v382_v27, %v382_v27  ;;  %1596 = vst [vmem:[#allocation3 + $0x190] sm:$0xf] %v1312_v41  ;;  %v719_v21 = vsel %vm7555_vm10, %v711_v1, %v718_v34  ;;  %v982_v38 = vsel %vm7501_vm2, %v720_v36, %v981_v15  ;;  %434 = vst [vmem:[#allocation2 + $0x54] sm:$0x1] %v433_v42  ;;  %v489_v45 = vsel %vm7506_vm4, 0, %v488_v39  ;;  %v7020_v12 = vld [vmem:[#allocation7 + $0x150] sm:$0xff]  }
  0xd4   : > { %v1302_v25 = vsel %vm7549_vm9, %v1297_v32, %v1301_v60  ;;  %v1623_v46 = vld [vmem:[#allocation2 + $0x18] sm:$0xe]  ;;  %v1624_v47 = vld [vmem:[#allocation2 + $0x1c] sm:$0xf]  ;;  %5188 = vmatprep.mubr.bf16.mxu1 %v6974_v40  ;;  %980 = vst [vmem:[#allocation2 + $0x4c] sm:$0xf] %v719_v21  ;;  %6553 = vmatprep.subr.bf16.mxu0 %v7020_v12 }
  0xd5   : > { %1595 = vst [vmem:[#allocation3 + $0x16c] sm:$0xf] %v1302_v25  ;;  %983 = vst [vmem:[#allocation2 + $0x50] sm:$0x1] %v982_v38  ;;  %v722_v48 = vshrl.u32 %v6298_v43, 16  ;;  %v725_v49 = vshll.u32 %v6298_v43, 16  ;;  %5189 = vmatmul.mubr.bf16.gmra.mxu1 %v6978_v35 }
  0xd6   : > { %490 = vst [vmem:[#allocation2 + $0x5c] sm:$0x1] %v489_v45  ;;  %v730_v50 = vshrl.u32 %v6299_v30, 16  ;;  %v733_v51 = vshll.u32 %v6299_v30, 16  ;;  %v1625_v33 = vld [vmem:[#allocation2 + $0x20] sm:$0x1]  ;;  %5229 = vmatprep.mubr.bf16.mxu1 %v6988_v23 }
  0xd7   : > { %v6017_v52 = vrot.slane %v1623_v46, 9  ;;  %v1732_v53 = vrot.slane %v1624_v47, 5  ;;  %v1735_v55 = vrot.slane %v1625_v33, 5  ;;  %v1896_v56 = vld [vmem:[#allocation2 + $0x24] sm:$0xf]  ;;  %v383_v44 = vmax.f32 %v7819_v2, 0.0 }
  0xd8   : > { %v724_v59 = vrot.slane %v722_v48, 7  ;;  %v732_v57 = vrot.slane %v730_v50, 7  ;;  %v1897_v60 = vld [vmem:[#allocation2 + $0x28] sm:$0xf]  ;;  %1928 = vst [vmem:[#allocation3 + $0x9c] sm:$0xf] %v1896_v56 }
  0xd9   : > { %v1066_v61 = vld [vmem:[#allocation2 + $0x48] sm:$0xf]  ;;  %v1733_v63 = vsel %vm7765_vm14, %v6017_v52, %v1732_v53  ;;  %v1734_v1 = vrot.slane %v1732_v53, 4  ;;  %1929 = vst [vmem:[#allocation3 + $0xc0] sm:$0xf] %v1897_v60  ;;  %v384_v3 = vmax.f32 %v7826_v29, 0.0  ;;  %v7848_v5 = vpack.c.bf16 %v383_v44, %v383_v44 }
  0xda   : > { %v1136_v62 = vld [vmem:[#allocation2 + $0x48] sm:$0xf]  ;;  %1098 = vst [vmem:[#allocation3 + $0x1b0] sm:$0xf] %v1066_v61  ;;  %v727_v7 = vor.u32 %v725_v49, %v724_v59  ;;  %v728_v10 = vrot.slane %v724_v59, 4  ;;  %v735_v15 = vor.u32 %v733_v51, %v732_v57  ;;  %v737_v17 = vrot.slane %v732_v57, 4 }
  0xdb   : > { %v1314_v58 = vshrl.u32 %v1136_v62, 16  ;;  %v1317_v2 = vshll.u32 %v1136_v62, 16  ;;  %1864 = vst [vmem:[#allocation3 + $0x98] sm:$0xf] %v1733_v63  ;;  %v6986_v13 = vld [vmem:[#allocation3 + $0x8] ss:$36 sps:$4 sm:$0xff]   ;;  %v1736_v18 = vsel %vm7765_vm14, %v1734_v1, %v1735_v55  ;;  %v6301_v23 = vpack.c.bf16 %v384_v3, %v384_v3 }
  0xdc   : > { %v6994_v14 = vld [vmem:[#allocation3 + $0x54] ss:$36 sps:$4 sm:$0xff]   ;;  %v984_v22 = vld [vmem:[#allocation2 + $0x54] sm:$0xf]  ;;  %1865 = vst [vmem:[#allocation3 + $0xbc] sm:$0xf] %v1736_v18  ;;  %v736_v32 = vsel %vm7555_vm10, %v728_v10, %v735_v15 }
  0xdd   : > { %v1316_v20 = vrot.slane %v1314_v58, 4  ;;  %v1319_v26 = vrot.slane %v1317_v2, 5  ;;  %v739_v24 = vshrl.u32 %v7848_v5, 16  ;;  %v275_v27 = vld [vmem:[%s7490_s17 + $0x80] sm:$0xff]  ;;  %v6984_v28 = vld [vmem:[#allocation3 + $0x16c] ss:$36 sps:$4 sm:$0xff]   ;;  %v985_v34 = vsel %vm7561_vm11, %v727_v7, %v984_v22  ;;  %5230 = vmatmul.mubr.bf16.vlgmr.msra.gmra.mxu1 %v6986_v13 }
  0xde   : > { %v6990_v29 = vld [vmem:[#allocation3 + $0x168] ss:$36 sps:$4 sm:$0xff]   ;;  %v1067_v37 = vld [vmem:[#allocation2 + $0x4c] sm:$0xf]  ;;  %v1138_v40 = vld [vmem:[#allocation2 + $0x50] sm:$0x1]  ;;  %5108 = vmatprep.mubr.bf16.mxu0 %v6984_v28  ;;  %6656 = vmatpush3.bf16.msra.mxu1 %v6991_v6  ;;  %v314_v51 = vmul.f32 %v7720_v54, %v275_v27 }
  0xdf   : > { %v276_v36 = vld [vmem:[%s7490_s17 + $0x88] sm:$0xff]  ;;  %v1137_v39 = vld [vmem:[#allocation2 + $0x4c] sm:$0xf]  ;;  %v1320_v35 = vor.u32 %v1319_v26, %v1316_v20  ;;  %986 = vst [vmem:[#allocation2 + $0x54] sm:$0xf] %v985_v34  ;;  %v1333_v30 = vshll.u32 %v1138_v40, 16  ;;  %5109 = vmatmul.mubr.bf16.gmra.mxu0 %v6990_v29  ;;  %5237 = vmatprep.mubr.bf16.mxu1 %v6994_v14 }
  0xe0   : > { %987 = vst [vmem:[#allocation2 + $0x58] sm:$0xf] %v736_v32  ;;  %v7007_v41 = vld [vmem:[#allocation7 + $0x1b0] sm:$0xff]   ;;  %1099 = vst [vmem:[#allocation3 + $0x1d4] sm:$0xf] %v1067_v37  ;;  %v1323_v42 = vshll.u32 %v1137_v39, 16  ;;  %6657 = vmatprep.subr.bf16.mxu1 %v7004_v19  ;;  %v315_v33 = vmul.f32 %v7720_v54, %v276_v36 }
  0xe1   : > { %v1327_v43 = vshrl.u32 %v1137_v39, 16  ;;  %v988_v25 = vld [vmem:[#allocation2 + $0x5c] sm:$0x1]  ;;  %v741_v21 = vrot.slane %v739_v24, 7  ;;  %v1321_v38 = vrot.slane %v1320_v35, 4  ;;  %v747_v46 = vshrl.u32 %v6301_v23, 16 }
  0xe2   : > { %v989_v45 = vsel %vm7501_vm2, %v737_v17, %v988_v25  ;;  %v1325_v47 = vrot.slane %v1323_v42, 5  ;;  %v6998_v49 = vld [vmem:[#allocation3 + $0x50] ss:$36 sps:$4 sm:$0xff]   ;;  %v742_v50 = vshll.u32 %v7848_v5, 16  ;;  %v1335_v55 = vrot.slane %v1333_v30, 5  ;;  %6658 = vmatpush3.bf16.msra.mxu1 %v7007_v41  ;;  %v7021_v19 = vld [vmem:[#allocation7 + $0x1e8] sm:$0xff]  }
  0xe3   : > { %v1329_v48 = vrot.slane %v1327_v43, 4  ;;  %990 = vst [vmem:[#allocation2 + $0x5c] sm:$0x1] %v989_v45  ;;  %v7002_v56 = vld [vmem:[#allocation3 + $0x9c] ss:$36 sps:$4 sm:$0xff]   ;;  %v745_v44 = vrot.slane %v741_v21, 4  ;;  %v353_v5 = vadd.f32 %v7728_v4, %v314_v51  ;;  %v354_v12 = vadd.f32 %v7728_v4, %v315_v33  ;;  %6659 = vmatprep.subr.bf16.mxu1 %v7021_v19 }
  0xe4   : > { %v1326_v52 = vsel %vm7549_vm9, %v1321_v38, %v1325_v47  ;;  %v435_v59 = vld [vmem:[#allocation2 + $0x60] sm:$0x1]  ;;  %v491_v57 = vld [vmem:[#allocation2 + $0x68] sm:$0x1]  ;;  %v7866_v60 = vrot.slane %v747_v46, 7  ;;  %v750_v61 = vshll.u32 %v6301_v23, 16  ;;  %v744_v22 = vor.u32 %v742_v50, %v741_v21 }
  0xe5   : > { %v1330_v53 = vor.u32 %v1329_v48, %v1325_v47  ;;  %1597 = vst [vmem:[#allocation3 + $0x1b4] sm:$0xf] %v1326_v52  ;;  %v436_v3 = vsel %vm7501_vm2, 0, %v435_v59  ;;  %v492_v2 = vsel %vm7506_vm4, 0, %v491_v57  ;;  %5238 = vmatmul.mubr.bf16.gmra.mxu1 %v6998_v49  ;;  %v1626_v18 = vld [vmem:[#allocation2 + $0x24] sm:$0xe] }
  0xe6   : > { %v1068_v63 = vld [vmem:[#allocation2 + $0x54] sm:$0xf]  ;;  %437 = vst [vmem:[#allocation2 + $0x60] sm:$0x1] %v436_v3  ;;  %v752_v7 = vor.u32 %v750_v61, %v7866_v60  ;;  %v754_v10 = vrot.slane %v7866_v60, 4  ;;  %5245 = vmatprep.mubr.bf16.mxu1 %v7002_v56  ;;  %v6018_v27 = vrot.slane %v1626_v18, 9 }
  0xe7   : > { %v1331_v62 = vrot.slane %v1330_v53, 4  ;;  %v1069_v1 = vld [vmem:[#allocation2 + $0x58] sm:$0xf]  ;;  %1100 = vst [vmem:[#allocation3 + $0x1f8] sm:$0xf] %v1068_v63  ;;  %v385_v42 = vmax.f32 %v353_v5, 0.0 }
  0xe8   : > { %1101 = vst [vmem:[#allocation3 + $0x21c] sm:$0xf] %v1069_v1  ;;  %v1139_v6 = vld [vmem:[#allocation2 + $0x54] sm:$0xf]  ;;  %v1140_v58 = vld [vmem:[#allocation2 + $0x58] sm:$0xf]  ;;  %v753_v23 = vsel %vm7555_vm10, %v745_v44, %v752_v7 }
  0xe9   : > { %v1336_v13 = vsel %vm7549_vm9, %v1331_v62, %v1335_v55  ;;  %v1338_v14 = vshrl.u32 %v1139_v6, 16  ;;  %v1341_v15 = vshll.u32 %v1139_v6, 16  ;;  %v1347_v17 = vshll.u32 %v1140_v58, 16  ;;  %493 = vst [vmem:[#allocation2 + $0x68] sm:$0x1] %v492_v2  ;;  %v7024_v38 = vld [vmem:[#allocation7 + $0x110] sm:$0xff]  }
  0xea   : > { %1598 = vst [vmem:[#allocation3 + $0x1d8] sm:$0xf] %v1336_v13  ;;  %v1141_v20 = vld [vmem:[#allocation2 + $0x5c] sm:$0x1]  ;;  %v1351_v26 = vshrl.u32 %v1140_v58, 16  ;;  %v386_v21 = vmax.f32 %v354_v12, 0.0  ;;  %v6302_v50 = vpack.c.bf16 %v385_v42, %v385_v42  ;;  %6554 = vmatpush3.bf16.msra.mxu0 %v7024_v38 }
  0xeb   : > { %v1627_v24 = vld [vmem:[#allocation2 + $0x28] sm:$0xf]  ;;  %v1340_v28 = vrot.slane %v1338_v14, 4  ;;  %v1343_v29 = vrot.slane %v1341_v15, 5  ;;  %v1349_v32 = vrot.slane %v1347_v17, 5  ;;  %v1357_v34 = vshll.u32 %v1141_v20, 16 }
  0xec   : > { %v7006_v36 = vld [vmem:[#allocation3 + $0x98] ss:$36 sps:$4 sm:$0xff]   ;;  %994 = vst [vmem:[#allocation2 + $0x64] sm:$0xf] %v753_v23  ;;  %v1628_v37 = vld [vmem:[#allocation2 + $0x2c] sm:$0x1]  ;;  %v6303_v56 = vpack.c.bf16 %v386_v21, %v386_v21 }
  0xed   : > { %v1353_v39 = vrot.slane %v1351_v26, 4  ;;  %v1739_v40 = vrot.slane %v1627_v24, 5  ;;  %v1742_v35 = vrot.slane %v1628_v37, 5  ;;  %v1898_v41 = vld [vmem:[#allocation2 + $0x30] sm:$0xf]  ;;  %v1344_v43 = vor.u32 %v1343_v29, %v1340_v28  ;;  %v7025_v51 = vld [vmem:[#allocation7 + $0x1a8] sm:$0xff]   ;;  %5246 = vmatmul.mubr.bf16.gmra.mxu1 %v7006_v36 }
  0xee   : > { %v1359_v30 = vrot.slane %v1357_v34, 5  ;;  %v1899_v25 = vld [vmem:[#allocation2 + $0x34] sm:$0xf]  ;;  %1930 = vst [vmem:[#allocation3 + $0xe4] sm:$0xf] %v1898_v41  ;;  %v277_v44 = vld [vmem:[%s7490_s17 + $0x90] sm:$0xff]  ;;  %6660 = vmatpush3.bf16.msra.mxu1 %v7025_v51 }
  0xef   : > { %v1354_v45 = vor.u32 %v1353_v39, %v1349_v32  ;;  %v1740_v46 = vsel %vm7765_vm14, %v6018_v27, %v1739_v40  ;;  %v1741_v47 = vrot.slane %v1739_v40, 4  ;;  %1931 = vst [vmem:[#allocation3 + $0x108] sm:$0xf] %v1899_v25  ;;  %v438_v48 = vld [vmem:[#allocation2 + $0x6c] sm:$0x1]  ;;  %v1345_v33 = vrot.slane %v1344_v43, 4 }
  0xf0   : > { %v494_v49 = vld [vmem:[#allocation2 + $0x74] sm:$0x1]  ;;  %v991_v52 = vld [vmem:[#allocation2 + $0x60] sm:$0xf]  ;;  %1866 = vst [vmem:[#allocation3 + $0xe0] sm:$0xf] %v1740_v46  ;;  %v316_v17 = vmul.f32 %v7720_v54, %v277_v44 }
  0xf1   : > { %v439_v53 = vsel %vm7501_vm2, 0, %v438_v48  ;;  %v495_v55 = vsel %vm7506_vm4, 0, %v494_v49  ;;  %v1355_v59 = vrot.slane %v1354_v45, 4  ;;  %v992_v57 = vsel %vm7561_vm11, %v744_v22, %v991_v52  ;;  %v995_v61 = vld [vmem:[#allocation2 + $0x68] sm:$0x1]  ;;  %v278_v28 = vld [vmem:[%s7490_s17 + $0x98] sm:$0xff] }
  0xf2   : > { %v1743_v62 = vsel %vm7765_vm14, %v1741_v47, %v1742_v35  ;;  %440 = vst [vmem:[#allocation2 + $0x6c] sm:$0x1] %v439_v53  ;;  %496 = vst [vmem:[#allocation2 + $0x74] sm:$0x1] %v495_v55  ;;  %v756_v63 = vshrl.u32 %v6302_v50, 16  ;;  %v1350_v6 = vsel %vm7549_vm9, %v1345_v33, %v1349_v32  ;;  %v996_v58 = vsel %vm7501_vm2, %v754_v10, %v995_v61  ;;  %v7032_v39 = vld [vmem:[#allocation7 + $0x148] sm:$0xff]  }
  0xf3   : > { %v1629_v1 = vld [vmem:[#allocation2 + $0x30] sm:$0xe]  ;;  %v6997_v5 = vld [vmem:[#allocation3 + $0x1b0] ss:$36 sps:$4 sm:$0xff]   ;;  %993 = vst [vmem:[#allocation2 + $0x60] sm:$0xf] %v992_v57  ;;  %v1360_v7 = vsel %vm7549_vm9, %v1355_v59, %v1359_v30  ;;  %v317_v37 = vmul.f32 %v7720_v54, %v278_v28  ;;  %v355_v45 = vadd.f32 %v7728_v4, %v316_v17  ;;  %6555 = vmatprep.subr.bf16.mxu0 %v7032_v39 }
  0xf4   : > { %v6992_v3 = vld [vmem:[#allocation3 + $0x1b4] ss:$36 sps:$4 sm:$0xff]   ;;  %1867 = vst [vmem:[#allocation3 + $0x104] sm:$0xf] %v1743_v62  ;;  %v759_v2 = vshll.u32 %v6302_v50, 16  ;;  %v758_v14 = vrot.slane %v756_v63, 7 }
  0xf5   : > { %1599 = vst [vmem:[#allocation3 + $0x1fc] sm:$0xf] %v1350_v6  ;;  %997 = vst [vmem:[#allocation2 + $0x68] sm:$0x1] %v996_v58  ;;  %v1071_v12 = vld [vmem:[#allocation2 + $0x64] sm:$0xf]  ;;  %5116 = vmatprep.mubr.bf16.mxu0 %v6992_v3 }
  0xf6   : > { %v1143_v13 = vld [vmem:[#allocation2 + $0x64] sm:$0xf]  ;;  %v764_v15 = vshrl.u32 %v6303_v56, 16  ;;  %1600 = vst [vmem:[#allocation3 + $0x220] sm:$0xf] %v1360_v7  ;;  %v767_v10 = vshll.u32 %v6303_v56, 16  ;;  %5117 = vmatmul.mubr.bf16.gmra.mxu0 %v6997_v5  ;;  %v761_v26 = vor.u32 %v759_v2, %v758_v14 }
  0xf7   : > { %1103 = vst [vmem:[#allocation3 + $0x264] sm:$0xf] %v1071_v12  ;;  %v1371_v60 = vshll.u32 %v1143_v13, 16  ;;  %v1375_v18 = vshrl.u32 %v1143_v13, 16  ;;  %v1630_v19 = vld [vmem:[#allocation2 + $0x34] sm:$0xf] }
  0xf8   : > { %v6019_v20 = vrot.slane %v1629_v1, 9  ;;  %v762_v22 = vrot.slane %v758_v14, 4  ;;  %v766_v23 = vrot.slane %v764_v15, 7  ;;  %v1631_v24 = vld [vmem:[#allocation2 + $0x38] sm:$0x1]  ;;  %v1746_v27 = vrot.slane %v1630_v19, 5 }
  0xf9   : > { %v7901_v29 = vrot.slane %v1371_v60, 5  ;;  %v1377_v32 = vrot.slane %v1375_v18, 4  ;;  %v1749_v34 = vrot.slane %v1631_v24, 5  ;;  %v1900_v36 = vld [vmem:[#allocation2 + $0x3c] sm:$0xf]  ;;  %v7033_v30 = vld [vmem:[#allocation7 + $0x108] sm:$0xff]  }
  0xfa   : > { %v769_v40 = vor.u32 %v767_v10, %v766_v23  ;;  %v771_v35 = vrot.slane %v766_v23, 4  ;;  %v1747_v41 = vsel %vm7765_vm14, %v6019_v20, %v1746_v27  ;;  %v1748_v42 = vrot.slane %v1746_v27, 4  ;;  %v1901_v43 = vld [vmem:[#allocation2 + $0x40] sm:$0xf]  ;;  %1932 = vst [vmem:[#allocation3 + $0x12c] sm:$0xf] %v1900_v36  ;;  %6556 = vmatpush3.bf16.msra.mxu0 %v7033_v30 }
  0xfb   : > { %v1378_v25 = vor.u32 %v1377_v32, %v7901_v29  ;;  %v998_v21 = vld [vmem:[#allocation2 + $0x6c] sm:$0xf]  ;;  %v1002_v38 = vld [vmem:[#allocation2 + $0x74] sm:$0x1]  ;;  %1868 = vst [vmem:[#allocation3 + $0x128] sm:$0xf] %v1747_v41 }
  0xfc   : > { %1933 = vst [vmem:[#allocation3 + $0x150] sm:$0xf] %v1901_v43  ;;  %v1070_v54 = vld [vmem:[#allocation2 + $0x60] sm:$0xf]  ;;  %v770_v47 = vsel %vm7555_vm10, %v762_v22, %v769_v40  ;;  %v999_v48 = vsel %vm7561_vm11, %v761_v26, %v998_v21  ;;  %v1003_v49 = vsel %vm7501_vm2, %v771_v35, %v1002_v38  ;;  %v1750_v50 = vsel %vm7765_vm14, %v1748_v42, %v1749_v34  ;;  %v1144_v51 = vld [vmem:[#allocation2 + $0x68] sm:$0x1] }
  0xfd   : > { %v1142_v46 = vld [vmem:[#allocation2 + $0x60] sm:$0xf]  ;;  %1102 = vst [vmem:[#allocation3 + $0x240] sm:$0xf] %v1070_v54  ;;  %v1379_v52 = vrot.slane %v1378_v25, 4  ;;  %v1381_v56 = vshll.u32 %v1144_v51, 16 }
  0xfe   : > { %v1362_v33 = vshrl.u32 %v1142_v46, 16  ;;  %v1365_v4 = vshll.u32 %v1142_v46, 16  ;;  %1000 = vst [vmem:[#allocation2 + $0x6c] sm:$0xf] %v999_v48  ;;  %1001 = vst [vmem:[#allocation2 + $0x70] sm:$0xf] %v770_v47 }
  0xff   : > { %1004 = vst [vmem:[#allocation2 + $0x74] sm:$0x1] %v1003_v49  ;;  %1869 = vst [vmem:[#allocation3 + $0x14c] sm:$0xf] %v1750_v50  ;;  %v7000_v53 = vld [vmem:[#allocation3 + $0x1fc] ss:$36 sps:$4 sm:$0xff]  }
 0x100   : > { %v7005_v55 = vld [vmem:[#allocation3 + $0x1f8] ss:$36 sps:$4 sm:$0xff]   ;;  %v7919_v44 = vld [vmem:[%s9002_s2] ss:$0 sm:$0xff]  ;;  %v1364_v57 = vrot.slane %v1362_v33, 4  ;;  %v1367_v61 = vrot.slane %v1365_v4, 5  ;;  %5124 = vmatprep.mubr.bf16.mxu0 %v7000_v53 }
 0x101   : > { %v356_v59 = vadd.f32 %v7919_v44, %v317_v37  ;;  %v7012_v62 = vld [vmem:[#allocation3 + $0xe4] ss:$36 sps:$4 sm:$0xff]   ;;  %v1383_v1 = vrot.slane %v1381_v56, 5  ;;  %v387_v3 = vmax.f32 %v355_v45, 0.0  ;;  %5125 = vmatmul.mubr.bf16.gmra.mxu0 %v7005_v55  ;;  %v441_v7 = vld [vmem:[#allocation2 + $0x78] sm:$0x1] }
 0x102   : > { %v7015_v63 = vld [vmem:[#allocation3 + $0xe0] ss:$36 sps:$4 sm:$0xff]   ;;  %v1368_v5 = vor.u32 %v1367_v61, %v1364_v57  ;;  %5253 = vmatprep.mubr.bf16.mxu1 %v7012_v62  ;;  %v497_v12 = vld [vmem:[#allocation2 + $0x80] sm:$0x1]  ;;  %v1634_v50 = vld [vmem:[#allocation2 + $0x44] sm:$0x1] }
 0x103   : > { %v1384_v6 = vsel %vm7549_vm9, %v1379_v52, %v1383_v1  ;;  %5254 = vmatmul.mubr.bf16.gmra.mxu1 %v7015_v63  ;;  %v388_v58 = vmax.f32 %v356_v59, 0.0  ;;  %v279_v13 = vld [vmem:[%s7490_s17 + $0xa0] sm:$0xff]  ;;  %v6304_v60 = vpack.c.bf16 %v387_v3, %v387_v3  ;;  %v7928_v18 = vld [vmem:[%s9001_s1] ss:$0 sm:$0xff]  ;;  %v7018_v34 = vld [vmem:[#allocation3 + $0x12c] ss:$36 sps:$4 sm:$0xff]  }
 0x104   : > { %v1369_v2 = vrot.slane %v1368_v5, 4  ;;  %1602 = vst [vmem:[#allocation3 + $0x268] sm:$0xf] %v1384_v6  ;;  %v318_v10 = vmul.f32 %v7928_v18, %v279_v13  ;;  %v498_v35 = vsel %vm7506_vm4, 0, %v497_v12  ;;  %5261 = vmatprep.mubr.bf16.mxu1 %v7018_v34  ;;  %v1632_v25 = vld [vmem:[#allocation2 + $0x3c] sm:$0xe] }
 0x105   : > { %v1072_v14 = vld [vmem:[#allocation2 + $0x6c] sm:$0xf]  ;;  %v1073_v15 = vld [vmem:[#allocation2 + $0x70] sm:$0xf]  ;;  %v6305_v24 = vpack.c.bf16 %v388_v58, %v388_v58  ;;  %499 = vst [vmem:[#allocation2 + $0x80] sm:$0x1] %v498_v35 }
 0x106   : > { %v1145_v17 = vld [vmem:[#allocation2 + $0x6c] sm:$0xf]  ;;  %v1374_v19 = vsel %vm7549_vm9, %v1369_v2, %v7901_v29  ;;  %1104 = vst [vmem:[#allocation3 + $0x288] sm:$0xf] %v1072_v14  ;;  %1105 = vst [vmem:[#allocation3 + $0x2ac] sm:$0xf] %v1073_v15  ;;  %v7935_v36 = vadd.f32 %v7919_v44, %v318_v10 }
 0x107   : > { %v1146_v20 = vld [vmem:[#allocation2 + $0x70] sm:$0xf]  ;;  %v1147_v26 = vld [vmem:[#allocation2 + $0x74] sm:$0x1]  ;;  %v1386_v22 = vshrl.u32 %v1145_v17, 16  ;;  %v1389_v23 = vshll.u32 %v1145_v17, 16 }
 0x108   : > { %1601 = vst [vmem:[#allocation3 + $0x244] sm:$0xf] %v1374_v19  ;;  %v1395_v27 = vshll.u32 %v1146_v20, 16  ;;  %v1399_v28 = vshrl.u32 %v1146_v20, 16  ;;  %v1405_v32 = vshll.u32 %v1147_v26, 16  ;;  %v442_v29 = vsel %vm7501_vm2, 0, %v441_v7 }
 0x109   : > { %v1388_v37 = vrot.slane %v1386_v22, 4  ;;  %v1391_v39 = vrot.slane %v1389_v23, 5  ;;  %v7023_v40 = vld [vmem:[#allocation3 + $0x128] ss:$36 sps:$4 sm:$0xff]   ;;  %443 = vst [vmem:[#allocation2 + $0x78] sm:$0x1] %v442_v29 }
 0x10a   : > { %v1397_v41 = vrot.slane %v1395_v27, 5  ;;  %v1401_v42 = vrot.slane %v1399_v28, 4  ;;  %v1407_v43 = vrot.slane %v1405_v32, 5  ;;  %v773_v30 = vshrl.u32 %v6304_v60, 16  ;;  %v1633_v46 = vld [vmem:[#allocation2 + $0x40] sm:$0xf] }
 0x10b   : > { %v1392_v21 = vor.u32 %v1391_v39, %v1388_v37  ;;  %v776_v38 = vshll.u32 %v6304_v60, 16  ;;  %v781_v45 = vshrl.u32 %v6305_v24, 16  ;;  %v784_v54 = vshll.u32 %v6305_v24, 16  ;;  %v280_v47 = vld [vmem:[%s7490_s17 + $0xa8] sm:$0xff]  ;;  %5262 = vmatmul.mubr.bf16.gmra.mxu1 %v7023_v40  ;;  %v1902_v55 = vld [vmem:[#allocation2 + $0x48] sm:$0xf] }
 0x10c   : > { %v1402_v48 = vor.u32 %v1401_v42, %v1397_v41  ;;  %v775_v49 = vrot.slane %v773_v30, 7  ;;  %v6020_v51 = vrot.slane %v1632_v25, 9  ;;  %v1753_v33 = vrot.slane %v1633_v46, 5  ;;  %v7038_v59 = vld [vmem:[#allocation7 + $0x1e0] sm:$0xff]   ;;  %v1903_v1 = vld [vmem:[#allocation2 + $0x4c] sm:$0xf] }
 0x10d   : > { %v1393_v4 = vrot.slane %v1392_v21, 4  ;;  %v783_v52 = vrot.slane %v781_v45, 7  ;;  %v1756_v53 = vrot.slane %v1634_v50, 5  ;;  %v319_v56 = vmul.f32 %v7928_v18, %v280_v47  ;;  %1934 = vst [vmem:[#allocation3 + $0x174] sm:$0xf] %v1902_v55  ;;  %6661 = vmatprep.subr.bf16.mxu1 %v7038_v59  ;;  %v7041_v24 = vld [vmem:[#allocation7 + $0x1a0] sm:$0xff]  }
 0x10e   : > { %v1403_v57 = vrot.slane %v1402_v48, 4  ;;  %v778_v61 = vor.u32 %v776_v38, %v775_v49  ;;  %v779_v62 = vrot.slane %v775_v49, 4  ;;  %v1754_v63 = vsel %vm7765_vm14, %v6020_v51, %v1753_v33  ;;  %v7014_v5 = vld [vmem:[#allocation3 + $0x240] ss:$36 sps:$4 sm:$0xff]   ;;  %1935 = vst [vmem:[#allocation3 + $0x198] sm:$0xf] %v1903_v1  ;;  %6662 = vmatpush3.bf16.msra.mxu1 %v7041_v24 }
 0x10f   : > { %v7010_v3 = vld [vmem:[#allocation3 + $0x244] ss:$36 sps:$4 sm:$0xff]   ;;  %v1398_v6 = vsel %vm7549_vm9, %v1393_v4, %v1397_v41  ;;  %v786_v58 = vor.u32 %v784_v54, %v783_v52  ;;  %v788_v2 = vrot.slane %v783_v52, 4  ;;  %1870 = vst [vmem:[#allocation3 + $0x170] sm:$0xf] %v1754_v63  ;;  %v358_v7 = vadd.f32 %v7919_v44, %v319_v56  ;;  %s7264_s9 = scalar_lea.vmem %s7263_s28, 8192 }
 0x110   : > { %v1408_v12 = vsel %vm7549_vm9, %v1403_v57, %v1407_v43  ;;  %1603 = vst [vmem:[#allocation3 + $0x28c] sm:$0xf] %v1398_v6  ;;  %v1755_v13 = vrot.slane %v1753_v33, 4  ;;  %v389_v14 = vmax.f32 %v7935_v36, 0.0  ;;  %5132 = vmatprep.mubr.bf16.mxu0 %v7010_v3  ;;  %v1005_v17 = vld [vmem:[#allocation2 + $0x78] sm:$0xf]  ;;  %p7266_p2 = scmp.lt.s32.totalorder %s7264_s9, %s7258_s27 }
 0x111   : > { %1604 = vst [vmem:[#allocation3 + $0x2b0] sm:$0xf] %v1408_v12  ;;  %v787_v15 = vsel %vm7555_vm10, %v779_v62, %v786_v58  ;;  %v1009_v60 = vld [vmem:[#allocation2 + $0x80] sm:$0x1]  ;;  %5133 = vmatmul.mubr.bf16.gmra.mxu0 %v7014_v5  ;;  %v1006_v10 = vsel %vm7561_vm11, %v778_v61, %v1005_v17  ;;  %v390_v26 = vmax.f32 %v358_v7, 0.0  ;;  %v7042_v25 = vld [vmem:[#allocation7 + $0x140] sm:$0xff]  }
 0x112   : > { %1008 = vst [vmem:[#allocation2 + $0x7c] sm:$0xf] %v787_v15  ;;  %v1010_v19 = vsel %vm7501_vm2, %v788_v2, %v1009_v60  ;;  %v1757_v20 = vsel %vm7765_vm14, %v1755_v13, %v1756_v53  ;;  %v444_v22 = vld [vmem:[#allocation2 + $0x84] sm:$0x1]  ;;  %v500_v23 = vld [vmem:[#allocation2 + $0x8c] sm:$0x1]  ;;  %v6306_v32 = vpack.c.bf16 %v389_v14, %v389_v14  ;;  %6557 = vmatprep.subr.bf16.mxu0 %v7042_v25  ;;  %p7267_p13 = por %p7266_p2, %p7265_p10 }
 0x113   : > { %1007 = vst [vmem:[#allocation2 + $0x78] sm:$0xf] %v1006_v10  ;;  %1011 = vst [vmem:[#allocation2 + $0x80] sm:$0x1] %v1010_v19  ;;  %v445_v27 = vsel %vm7501_vm2, 0, %v444_v22  ;;  %v501_v28 = vsel %vm7506_vm4, 0, %v500_v23  ;;  %v6307_v37 = vpack.c.bf16 %v390_v26, %v390_v26 }
 0x114   : > { %1871 = vst [vmem:[#allocation3 + $0x194] sm:$0xf] %v1757_v20  ;;  %v1635_v34 = vld [vmem:[#allocation2 + $0x48] sm:$0xe]  ;;  %v1636_v36 = vld [vmem:[#allocation2 + $0x4c] sm:$0xf]  ;;  %p7268_p0 = pnand %p7267_p13, %p7261_p12 }
 0x115   : > { %446 = vst [vmem:[#allocation2 + $0x84] sm:$0x1] %v445_v27  ;;  %502 = vst [vmem:[#allocation2 + $0x8c] sm:$0x1] %v501_v28  ;;  %v1637_v39 = vld [vmem:[#allocation2 + $0x50] sm:$0x1] }
 0x116   : > { %v6021_v40 = vrot.slane %v1635_v34, 9  ;;  %v1760_v29 = vrot.slane %v1636_v36, 5  ;;  %v1904_v35 = vld [vmem:[#allocation2 + $0x54] sm:$0xf]  ;;  %v790_v41 = vshrl.u32 %v6306_v32, 16  ;;  %v793_v42 = vshll.u32 %v6306_v32, 16 }
 0x117   : > { %v1763_v43 = vrot.slane %v1637_v39, 5  ;;  %v1905_v30 = vld [vmem:[#allocation2 + $0x58] sm:$0xf]  ;;  %1936 = vst [vmem:[#allocation3 + $0x1bc] sm:$0xf] %v1904_v35  ;;  %v798_v21 = vshrl.u32 %v6307_v37, 16 }
 0x118   : > { %v801_v38 = vshll.u32 %v6307_v37, 16  ;;  %v1761_v45 = vsel %vm7765_vm14, %v6021_v40, %v1760_v29  ;;  %v1762_v54 = vrot.slane %v1760_v29, 4  ;;  %1937 = vst [vmem:[#allocation3 + $0x1e0] sm:$0xf] %v1905_v30  ;;  %v792_v46 = vrot.slane %v790_v41, 7  ;;  %v7043_v52 = vld [vmem:[#allocation7 + $0x100] sm:$0xff]  }
 0x119   : > { %1872 = vst [vmem:[#allocation3 + $0x1b8] sm:$0xf] %v1761_v45  ;;  %v7016_v47 = vld [vmem:[#allocation3 + $0x28c] ss:$36 sps:$4 sm:$0xff]   ;;  %v800_v49 = vrot.slane %v798_v21, 7  ;;  %v7054_v3 = vld [vmem:[#allocation7 + $0x1d8] sm:$0xff]   ;;  %6558 = vmatpush3.bf16.msra.mxu0 %v7043_v52 }
 0x11a   : > { %v7022_v48 = vld [vmem:[#allocation3 + $0x288] ss:$36 sps:$4 sm:$0xff]   ;;  %v1764_v50 = vsel %vm7765_vm14, %v1762_v54, %v1763_v43  ;;  %v1075_v51 = vld [vmem:[#allocation2 + $0x7c] sm:$0xf]  ;;  %v796_v4 = vrot.slane %v792_v46, 4  ;;  %5140 = vmatprep.mubr.bf16.mxu0 %v7016_v47  ;;  %v795_v59 = vor.u32 %v793_v42, %v792_v46  ;;  %6663 = vmatprep.subr.bf16.mxu1 %v7054_v3  ;;  %v7057_v39 = vld [vmem:[#allocation7 + $0x198] sm:$0xff]  }
 0x11b   : > { %v1149_v33 = vld [vmem:[#allocation2 + $0x7c] sm:$0xf]  ;;  %1873 = vst [vmem:[#allocation3 + $0x1dc] sm:$0xf] %v1764_v50  ;;  %v1074_v53 = vld [vmem:[#allocation2 + $0x78] sm:$0xf]  ;;  %v803_v57 = vor.u32 %v801_v38, %v800_v49  ;;  %5141 = vmatmul.mubr.bf16.gmra.mxu0 %v7022_v48  ;;  %6664 = vmatpush3.bf16.msra.mxu1 %v7057_v39 }
 0x11c   : > { %1107 = vst [vmem:[#allocation3 + $0x2f4] sm:$0xf] %v1075_v51  ;;  %v1148_v55 = vld [vmem:[#allocation2 + $0x78] sm:$0xf]  ;;  %v1150_v56 = vld [vmem:[#allocation2 + $0x80] sm:$0x1] }
 0x11d   : > { %1106 = vst [vmem:[#allocation3 + $0x2d0] sm:$0xf] %v1074_v53  ;;  %v1410_v61 = vshrl.u32 %v1148_v55, 16  ;;  %v1413_v62 = vshll.u32 %v1148_v55, 16  ;;  %v1419_v63 = vshll.u32 %v1149_v33, 16  ;;  %v1423_v1 = vshrl.u32 %v1149_v33, 16 }
 0x11e   : > { %v1429_v5 = vshll.u32 %v1150_v56, 16  ;;  %v7028_v6 = vld [vmem:[#allocation3 + $0x174] ss:$36 sps:$4 sm:$0xff]   ;;  %v804_v2 = vsel %vm7555_vm10, %v796_v4, %v803_v57  ;;  %v805_v7 = vrot.slane %v800_v49, 4  ;;  %v1012_v17 = vld [vmem:[#allocation2 + $0x84] sm:$0xf] }
 0x11f   : > { %v7031_v58 = vld [vmem:[#allocation3 + $0x170] ss:$36 sps:$4 sm:$0xff]   ;;  %v1412_v12 = vrot.slane %v1410_v61, 4  ;;  %v1415_v13 = vrot.slane %v1413_v62, 5  ;;  %v1421_v14 = vrot.slane %v1419_v63, 5  ;;  %v1425_v15 = vrot.slane %v1423_v1, 4  ;;  %5269 = vmatprep.mubr.bf16.mxu1 %v7028_v6 }
 0x120   : > { %1015 = vst [vmem:[#allocation2 + $0x88] sm:$0xf] %v804_v2  ;;  %v1431_v60 = vrot.slane %v1429_v5, 5  ;;  %v1013_v10 = vsel %vm7561_vm11, %v795_v59, %v1012_v17  ;;  %v1016_v19 = vld [vmem:[#allocation2 + $0x8c] sm:$0x1]  ;;  %5270 = vmatmul.mubr.bf16.gmra.mxu1 %v7031_v58  ;;  %v7979_v47 = vld [vmem:[#allocation7 + $0x238] sm:$0xff]  }
 0x121   : > { %v1416_v20 = vor.u32 %v1415_v13, %v1412_v12  ;;  %v1426_v26 = vor.u32 %v1425_v15, %v1421_v14  ;;  %1014 = vst [vmem:[#allocation2 + $0x84] sm:$0xf] %v1013_v10  ;;  %v1017_v22 = vsel %vm7501_vm2, %v805_v7, %v1016_v19  ;;  %v7036_v23 = vld [vmem:[#allocation3 + $0x1bc] ss:$36 sps:$4 sm:$0xff]   ;;  %v1640_v36 = vld [vmem:[#allocation2 + $0x5c] sm:$0x1]  ;;  %6791 = vmatprep.subr.bf16.mxu0 %v7979_v47 }
 0x122   : > { %1018 = vst [vmem:[#allocation2 + $0x8c] sm:$0x1] %v1017_v22  ;;  %v7040_v28 = vld [vmem:[#allocation3 + $0x1b8] ss:$36 sps:$4 sm:$0xff]   ;;  %5277 = vmatprep.mubr.bf16.mxu1 %v7036_v23  ;;  %v1639_v34 = vld [vmem:[#allocation2 + $0x58] sm:$0xf] }
 0x123   : > { %v1417_v24 = vrot.slane %v1416_v20, 4  ;;  %v1427_v27 = vrot.slane %v1426_v26, 4  ;;  %v1638_v32 = vld [vmem:[#allocation2 + $0x54] sm:$0xe]  ;;  %v1767_v35 = vrot.slane %v1639_v34, 5  ;;  %v1770_v25 = vrot.slane %v1640_v36, 5 }
 0x124   : > { %v6022_v37 = vrot.slane %v1638_v32, 9  ;;  %v1906_v41 = vld [vmem:[#allocation2 + $0x60] sm:$0xf]  ;;  %v1907_v42 = vld [vmem:[#allocation2 + $0x64] sm:$0xf]  ;;  %v7069_v63 = vld [vmem:[#allocation7 + $0x1d0] sm:$0xff]  }
 0x125   : > { %v1422_v40 = vsel %vm7549_vm9, %v1417_v24, %v1421_v14  ;;  %v1432_v29 = vsel %vm7549_vm9, %v1427_v27, %v1431_v60  ;;  %1938 = vst [vmem:[#allocation3 + $0x204] sm:$0xf] %v1906_v41  ;;  %1939 = vst [vmem:[#allocation3 + $0x228] sm:$0xf] %v1907_v42  ;;  %v1769_v54 = vrot.slane %v1767_v35, 4  ;;  %v7072_v2 = vld [vmem:[#allocation7 + $0x190] sm:$0xff]   ;;  %6665 = vmatprep.subr.bf16.mxu1 %v7069_v63 }
 0x126   : > { %1605 = vst [vmem:[#allocation3 + $0x2d4] sm:$0xf] %v1422_v40  ;;  %1606 = vst [vmem:[#allocation3 + $0x2f8] sm:$0xf] %v1432_v29  ;;  %v1768_v45 = vsel %vm7765_vm14, %v6022_v37, %v1767_v35  ;;  %v1956_v46 = vld [vmem:[#allocation2 + $0xc] sm:$0xf]  ;;  %6666 = vmatpush3.bf16.msra.mxu1 %v7072_v2 }
 0x127   : > { %v1077_v43 = vld [vmem:[#allocation2 + $0x88] sm:$0xf]  ;;  %1874 = vst [vmem:[#allocation3 + $0x200] sm:$0xf] %v1768_v45  ;;  %v1957_v50 = vld [vmem:[#allocation2 + $0x10] sm:$0xf]  ;;  %v1771_v59 = vsel %vm7765_vm14, %v1769_v54, %v1770_v25 }
 0x128   : > { %v1152_v30 = vld [vmem:[#allocation2 + $0x88] sm:$0xf]  ;;  %1109 = vst [vmem:[#allocation3 + $0x33c] sm:$0xf] %v1077_v43  ;;  %v1076_v48 = vld [vmem:[#allocation2 + $0x84] sm:$0xf]  ;;  %5278 = vmatmul.mubr.bf16.gmra.mxu1 %v7040_v28 }
 0x129   : > { %v1443_v21 = vshll.u32 %v1152_v30, 16  ;;  %v1447_v38 = vshrl.u32 %v1152_v30, 16  ;;  %v1151_v49 = vld [vmem:[#allocation2 + $0x84] sm:$0xf]  ;;  %1108 = vst [vmem:[#allocation3 + $0x318] sm:$0xf] %v1076_v48 }
 0x12a   : > { %v1153_v51 = vld [vmem:[#allocation2 + $0x8c] sm:$0x1]  ;;  %v1434_v33 = vshrl.u32 %v1151_v49, 16  ;;  %v1437_v4 = vshll.u32 %v1151_v49, 16  ;;  %v1958_v55 = vld [vmem:[#allocation2 + $0x14] sm:$0x1] }
 0x12b   : > { %v1445_v52 = vrot.slane %v1443_v21, 5  ;;  %v1449_v53 = vrot.slane %v1447_v38, 4  ;;  %v1453_v56 = vshll.u32 %v1153_v51, 16  ;;  %v2005_v57 = vshrl.u32 %v1956_v46, 16  ;;  %v2452_v62 = vld [vmem:[#allocation2 + $0xc] sm:$0xe] }
 0x12c   : > { %v2008_v61 = vshll.u32 %v1956_v46, 16  ;;  %v1436_v1 = vrot.slane %v1434_v33, 4  ;;  %v1439_v3 = vrot.slane %v1437_v4, 5  ;;  %1875 = vst [vmem:[#allocation3 + $0x224] sm:$0xf] %v1771_v59  ;;  %v2014_v6 = vshll.u32 %v1957_v50, 16 }
 0x12d   : > { %v1450_v5 = vor.u32 %v1449_v53, %v1445_v52  ;;  %v2453_v58 = vld [vmem:[#allocation2 + $0x10] sm:$0xf]  ;;  %v1455_v7 = vrot.slane %v1453_v56, 5  ;;  %v2007_v12 = vrot.slane %v2005_v57, 4  ;;  %v2018_v14 = vshrl.u32 %v1957_v50, 16  ;;  %v7084_v59 = vld [vmem:[#allocation7 + $0x1c8] sm:$0xff]  }
 0x12e   : > { %v2010_v13 = vrot.slane %v2008_v61, 5  ;;  %v2454_v15 = vld [vmem:[#allocation2 + $0x14] sm:$0x1]  ;;  %v7026_v17 = vld [vmem:[#allocation3 + $0x2d4] ss:$36 sps:$4 sm:$0xff]   ;;  %v1440_v60 = vor.u32 %v1439_v3, %v1436_v1  ;;  %v2016_v19 = vrot.slane %v2014_v6, 5  ;;  %6667 = vmatprep.subr.bf16.mxu1 %v7084_v59 }
 0x12f   : > { %v1451_v10 = vrot.slane %v1450_v5, 4  ;;  %v7030_v20 = vld [vmem:[#allocation3 + $0x2d0] ss:$36 sps:$4 sm:$0xff]   ;;  %v2020_v22 = vrot.slane %v2018_v14, 4  ;;  %v2024_v23 = vshll.u32 %v1958_v55, 16  ;;  %v6031_v24 = vrot.slane %v2452_v62, 9  ;;  %5148 = vmatprep.mubr.bf16.mxu0 %v7026_v17 }
 0x130   : > { %v2011_v26 = vor.u32 %v2010_v13, %v2007_v12  ;;  %v1441_v27 = vrot.slane %v1440_v60, 4  ;;  %v2550_v32 = vrot.slane %v2453_v58, 5  ;;  %v2553_v34 = vrot.slane %v2454_v15, 5  ;;  %v1641_v36 = vld [vmem:[#allocation2 + $0x60] sm:$0xe]  ;;  %5149 = vmatmul.mubr.bf16.gmra.mxu0 %v7030_v20  ;;  %v7073_v59 = vld [vmem:[#allocation7 + $0x230] sm:$0xff]  }
 0x131   : > { %v1456_v28 = vsel %vm7549_vm9, %v1451_v10, %v1455_v7  ;;  %v2021_v39 = vor.u32 %v2020_v22, %v2016_v19  ;;  %v2026_v40 = vrot.slane %v2024_v23, 5  ;;  %v1642_v29 = vld [vmem:[#allocation2 + $0x64] sm:$0xf]  ;;  %v1643_v35 = vld [vmem:[#allocation2 + $0x68] sm:$0x1]  ;;  %v6023_v30 = vrot.slane %v1641_v36, 9 }
 0x132   : > { %1608 = vst [vmem:[#allocation3 + $0x340] sm:$0xf] %v1456_v28  ;;  %v2012_v37 = vrot.slane %v2011_v26, 4  ;;  %v1446_v41 = vsel %vm7549_vm9, %v1441_v27, %v1445_v52  ;;  %v2551_v42 = vsel %vm7765_vm14, %v6031_v24, %v2550_v32  ;;  %v2552_v43 = vrot.slane %v2550_v32, 4  ;;  %v1908_v25 = vld [vmem:[#allocation2 + $0x6c] sm:$0xf] }
 0x133   : > { %v1909_v21 = vld [vmem:[#allocation2 + $0x70] sm:$0xf]  ;;  %1607 = vst [vmem:[#allocation3 + $0x31c] sm:$0xf] %v1446_v41  ;;  %v7044_v38 = vld [vmem:[#allocation3 + $0x204] ss:$36 sps:$4 sm:$0xff]  }
 0x134   : > { %v2017_v45 = vsel %vm7549_vm9, %v2012_v37, %v2016_v19  ;;  %v2022_v54 = vrot.slane %v2021_v39, 4  ;;  %2692 = vst [vmem:[#allocation3 + $0x14] sm:$0xf] %v2551_v42  ;;  %v7049_v46 = vld [vmem:[#allocation3 + $0x200] ss:$36 sps:$4 sm:$0xff]   ;;  %v2554_v48 = vsel %vm7765_vm14, %v2552_v43, %v2553_v34  ;;  %v1774_v49 = vrot.slane %v1642_v29, 5  ;;  %5285 = vmatprep.mubr.bf16.mxu1 %v7044_v38 }
 0x135   : > { %1940 = vst [vmem:[#allocation3 + $0x24c] sm:$0xf] %v1908_v25  ;;  %1941 = vst [vmem:[#allocation3 + $0x270] sm:$0xf] %v1909_v21  ;;  %v1777_v50 = vrot.slane %v1643_v35, 5  ;;  %5286 = vmatmul.mubr.bf16.gmra.mxu1 %v7049_v46  ;;  %v7087_v3 = vld [vmem:[#allocation7 + $0x188] sm:$0xff]  }
 0x136   : > { %2420 = vst [vmem:[#allocation3 + $0x10] sm:$0xf] %v2017_v45  ;;  %v1959_v51 = vld [vmem:[#allocation2 + $0x18] sm:$0xf]  ;;  %v1960_v33 = vld [vmem:[#allocation2 + $0x1c] sm:$0xf]  ;;  %v2027_v4 = vsel %vm7549_vm9, %v2022_v54, %v2026_v40  ;;  %v1775_v57 = vsel %vm7765_vm14, %v6023_v30, %v1774_v49  ;;  %6668 = vmatpush3.bf16.msra.mxu1 %v7087_v3 }
 0x137   : > { %2693 = vst [vmem:[#allocation3 + $0x38] sm:$0xf] %v2554_v48  ;;  %v1961_v52 = vld [vmem:[#allocation2 + $0x20] sm:$0x1]  ;;  %v2029_v53 = vshrl.u32 %v1959_v51, 16  ;;  %v2032_v55 = vshll.u32 %v1959_v51, 16 }
 0x138   : > { %v2038_v56 = vshll.u32 %v1960_v33, 16  ;;  %2421 = vst [vmem:[#allocation3 + $0x34] sm:$0xf] %v2027_v4  ;;  %v1776_v61 = vrot.slane %v1774_v49, 4  ;;  %v2042_v62 = vshrl.u32 %v1960_v33, 16  ;;  %v2048_v63 = vshll.u32 %v1961_v52, 16 }
 0x139   : > { %v2455_v1 = vld [vmem:[#allocation2 + $0x18] sm:$0xe]  ;;  %1876 = vst [vmem:[#allocation3 + $0x248] sm:$0xf] %v1775_v57  ;;  %v2031_v5 = vrot.slane %v2029_v53, 4  ;;  %v2034_v6 = vrot.slane %v2032_v55, 5 }
 0x13a   : > { %v2040_v58 = vrot.slane %v2038_v56, 5  ;;  %v2456_v2 = vld [vmem:[#allocation2 + $0x1c] sm:$0xf]  ;;  %v6032_v7 = vrot.slane %v2455_v1, 9  ;;  %v1778_v12 = vsel %vm7765_vm14, %v1776_v61, %v1777_v50  ;;  %v2044_v13 = vrot.slane %v2042_v62, 4 }
 0x13b   : > { %v2457_v14 = vld [vmem:[#allocation2 + $0x20] sm:$0x1]  ;;  %v2557_v15 = vrot.slane %v2456_v2, 5  ;;  %1877 = vst [vmem:[#allocation3 + $0x26c] sm:$0xf] %v1778_v12  ;;  %v2035_v17 = vor.u32 %v2034_v6, %v2031_v5  ;;  %v2050_v60 = vrot.slane %v2048_v63, 5 }
 0x13c   : > { %v2560_v10 = vrot.slane %v2457_v14, 5  ;;  %v7034_v19 = vld [vmem:[#allocation3 + $0x31c] ss:$36 sps:$4 sm:$0xff]   ;;  %v2045_v26 = vor.u32 %v2044_v13, %v2040_v58  ;;  %v1644_v39 = vld [vmem:[#allocation2 + $0x6c] sm:$0xe]  ;;  %v8014_v13 = vld [vmem:[#allocation7 + $0x228] sm:$0xff]  }
 0x13d   : > { %v7039_v20 = vld [vmem:[#allocation3 + $0x318] ss:$36 sps:$4 sm:$0xff]   ;;  %v2558_v22 = vsel %vm7765_vm14, %v6032_v7, %v2557_v15  ;;  %v2559_v23 = vrot.slane %v2557_v15, 4  ;;  %v2036_v24 = vrot.slane %v2035_v17, 4  ;;  %5156 = vmatprep.mubr.bf16.mxu0 %v7034_v19  ;;  %v7099_v32 = vld [vmem:[#allocation7 + $0x1c0] sm:$0xff]   ;;  %v6024_v41 = vrot.slane %v1644_v39, 9 }
 0x13e   : > { %2694 = vst [vmem:[#allocation3 + $0x5c] sm:$0xf] %v2558_v22  ;;  %v2046_v27 = vrot.slane %v2045_v26, 4  ;;  %5157 = vmatmul.mubr.bf16.gmra.mxu0 %v7039_v20  ;;  %v7048_v34 = vld [vmem:[#allocation3 + $0x14] ss:$36 sps:$4 sm:$0xff]   ;;  %6669 = vmatprep.subr.bf16.mxu1 %v7099_v32  ;;  %v7102_v48 = vld [vmem:[#allocation7 + $0x180] sm:$0xff]  }
 0x13f   : > { %v2561_v28 = vsel %vm7765_vm14, %v2559_v23, %v2560_v10  ;;  %v2041_v36 = vsel %vm7549_vm9, %v2036_v24, %v2040_v58  ;;  %v1645_v40 = vld [vmem:[#allocation2 + $0x70] sm:$0xf]  ;;  %v7046_v29 = vld [vmem:[#allocation3 + $0x10] ss:$36 sps:$4 sm:$0xff]   ;;  %5390 = vmatprep.mubr.bf16.mxu0 %v7048_v34  ;;  %v1646_v35 = vld [vmem:[#allocation2 + $0x74] sm:$0x1]  ;;  %6670 = vmatpush3.bf16.msra.mxu1 %v7102_v48 }
 0x140   : > { %2695 = vst [vmem:[#allocation3 + $0x80] sm:$0xf] %v2561_v28  ;;  %v2051_v37 = vsel %vm7549_vm9, %v2046_v27, %v2050_v60  ;;  %2422 = vst [vmem:[#allocation3 + $0x58] sm:$0xf] %v2041_v36  ;;  %v1781_v42 = vrot.slane %v1645_v40, 5  ;;  %v1784_v21 = vrot.slane %v1646_v35, 5 }
 0x141   : > { %2423 = vst [vmem:[#allocation3 + $0x7c] sm:$0xf] %v2051_v37  ;;  %v1910_v43 = vld [vmem:[#allocation2 + $0x78] sm:$0xf]  ;;  %v7050_v30 = vld [vmem:[#allocation3 + $0x24c] ss:$36 sps:$4 sm:$0xff]  }
 0x142   : > { %v7055_v25 = vld [vmem:[#allocation3 + $0x248] ss:$36 sps:$4 sm:$0xff]   ;;  %1942 = vst [vmem:[#allocation3 + $0x294] sm:$0xf] %v1910_v43  ;;  %v1782_v38 = vsel %vm7765_vm14, %v6024_v41, %v1781_v42  ;;  %v1783_v45 = vrot.slane %v1781_v42, 4  ;;  %5293 = vmatprep.mubr.bf16.mxu1 %v7050_v30  ;;  %v289_v6 = vld [vmem:[%s7490_s17 + $0xf0] sm:$0xff]  ;;  %v6335_v43 = vpop.f32.mrf.mxu0 }
 0x143   : > { %v1911_v54 = vld [vmem:[#allocation2 + $0x7c] sm:$0xf]  ;;  %v1962_v46 = vld [vmem:[#allocation2 + $0x24] sm:$0xf]  ;;  %1878 = vst [vmem:[#allocation3 + $0x290] sm:$0xf] %v1782_v38  ;;  %5294 = vmatmul.mubr.bf16.gmra.mxu1 %v7055_v25  ;;  %v328_v14 = vmul.f32 %v7928_v18, %v289_v6 }
 0x144   : > { %1943 = vst [vmem:[#allocation3 + $0x2b8] sm:$0xf] %v1911_v54  ;;  %v1963_v49 = vld [vmem:[#allocation2 + $0x28] sm:$0xf]  ;;  %v1964_v50 = vld [vmem:[#allocation2 + $0x2c] sm:$0x1]  ;;  %v1785_v4 = vsel %vm7765_vm14, %v1783_v45, %v1784_v21 }
 0x145   : > { %v2053_v51 = vshrl.u32 %v1962_v46, 16  ;;  %v2056_v33 = vshll.u32 %v1962_v46, 16  ;;  %v2062_v52 = vshll.u32 %v1963_v49, 16  ;;  %v2066_v53 = vshrl.u32 %v1963_v49, 16  ;;  %v2458_v56 = vld [vmem:[#allocation2 + $0x24] sm:$0xe] }
 0x146   : > { %v2072_v55 = vshll.u32 %v1964_v50, 16  ;;  %1879 = vst [vmem:[#allocation3 + $0x2b4] sm:$0xf] %v1785_v4  ;;  %v2459_v62 = vld [vmem:[#allocation2 + $0x28] sm:$0xf]  ;;  %5391 = vmatmul.mubr.bf16.vlgmr.msra.gmra.mxu0 %v7046_v29  ;;  %v6033_v5 = vrot.slane %v2458_v56, 9  ;;  %v367_v42 = vadd.f32 %v7919_v44, %v328_v14 }
 0x147   : > { %v2055_v57 = vrot.slane %v2053_v51, 4  ;;  %v2058_v61 = vrot.slane %v2056_v33, 5  ;;  %v2460_v63 = vld [vmem:[#allocation2 + $0x2c] sm:$0x1]  ;;  %v2064_v1 = vrot.slane %v2062_v52, 5  ;;  %v2068_v3 = vrot.slane %v2066_v53, 4  ;;  %6792 = vmatpush3.bf16.msra.mxu0 %v7979_v47  ;;  %v6336_v51 = vpop.f32.mrf.mxu0 }
 0x148   : > { %v7052_v58 = vld [vmem:[#allocation3 + $0x5c] ss:$36 sps:$4 sm:$0xff]   ;;  %v2074_v7 = vrot.slane %v2072_v55, 5  ;;  %v2564_v12 = vrot.slane %v2459_v62, 5  ;;  %v2567_v60 = vrot.slane %v2460_v63, 5  ;;  %6793 = vmatprep.subr.bf16.mxu0 %v7073_v59  ;;  %v399_v55 = vmax.f32 %v367_v42, 0.0 }
 0x149   : > { %v2059_v2 = vor.u32 %v2058_v61, %v2055_v57  ;;  %v7056_v15 = vld [vmem:[#allocation3 + $0x58] ss:$36 sps:$4 sm:$0xff]   ;;  %v2069_v17 = vor.u32 %v2068_v3, %v2064_v1  ;;  %v1647_v10 = vld [vmem:[#allocation2 + $0x78] sm:$0xe]  ;;  %v1648_v19 = vld [vmem:[#allocation2 + $0x7c] sm:$0xf]  ;;  %5398 = vmatprep.mubr.bf16.mxu0 %v7052_v58 }
 0x14a   : > { %v290_v20 = vld [vmem:[%s7490_s17 + $0xf8] sm:$0xff]  ;;  %v2565_v22 = vsel %vm7765_vm14, %v6033_v5, %v2564_v12  ;;  %v2566_v47 = vrot.slane %v2564_v12, 4  ;;  %v1649_v23 = vld [vmem:[#allocation2 + $0x80] sm:$0x1]  ;;  %v6025_v24 = vrot.slane %v1647_v10, 9  ;;  %v1788_v28 = vrot.slane %v1648_v19, 5 }
 0x14b   : > { %v2060_v26 = vrot.slane %v2059_v2, 4  ;;  %v2070_v27 = vrot.slane %v2069_v17, 4  ;;  %2696 = vst [vmem:[#allocation3 + $0xa4] sm:$0xf] %v2565_v22  ;;  %v1791_v32 = vrot.slane %v1649_v23, 5  ;;  %v7103_v36 = vld [vmem:[#allocation7 + $0x220] sm:$0xff]   ;;  %v329_v37 = vmul.f32 %v7928_v18, %v290_v20  ;;  %6794 = vmatpush3.bf16.msra.mxu0 %v7073_v59 }
 0x14c   : > { %v1912_v34 = vld [vmem:[#allocation2 + $0x84] sm:$0xf]  ;;  %v2568_v40 = vsel %vm7765_vm14, %v2566_v47, %v2567_v60  ;;  %v1913_v29 = vld [vmem:[#allocation2 + $0x88] sm:$0xf]  ;;  %v1965_v35 = vld [vmem:[#allocation2 + $0x30] sm:$0xf]  ;;  %v1789_v21 = vsel %vm7765_vm14, %v6025_v24, %v1788_v28  ;;  %6795 = vmatprep.subr.bf16.mxu0 %v8014_v13  ;;  %v8034_v59 = vadd.f32 %v6336_v51, %v6335_v43 }
 0x14d   : > { %v2065_v39 = vsel %vm7549_vm9, %v2060_v26, %v2064_v1  ;;  %1944 = vst [vmem:[#allocation3 + $0x2dc] sm:$0xf] %v1912_v34  ;;  %v1966_v41 = vld [vmem:[#allocation2 + $0x34] sm:$0xf]  ;;  %v7059_v30 = vld [vmem:[#allocation3 + $0x294] ss:$36 sps:$4 sm:$0xff]   ;;  %v2075_v25 = vsel %vm7549_vm9, %v2070_v27, %v2074_v7  ;;  %v368_v45 = vadd.f32 %v7919_v44, %v329_v37  ;;  %v8037_v7 = vpack.c.bf16 %v399_v55, %v399_v55 }
 0x14e   : > { %2424 = vst [vmem:[#allocation3 + $0xa0] sm:$0xf] %v2065_v39  ;;  %2697 = vst [vmem:[#allocation3 + $0xc8] sm:$0xf] %v2568_v40  ;;  %v7063_v18 = vld [vmem:[#allocation3 + $0x290] ss:$36 sps:$4 sm:$0xff]   ;;  %5399 = vmatmul.mubr.bf16.gmra.mxu0 %v7056_v15  ;;  %5301 = vmatprep.mubr.bf16.mxu1 %v7059_v30 }
 0x14f   : > { %v1790_v38 = vrot.slane %v1788_v28, 4  ;;  %1945 = vst [vmem:[#allocation3 + $0x300] sm:$0xf] %v1913_v29  ;;  %2425 = vst [vmem:[#allocation3 + $0xc4] sm:$0xf] %v2075_v25  ;;  %v2077_v46 = vshrl.u32 %v1965_v35, 16  ;;  %5302 = vmatmul.mubr.bf16.gmra.mxu1 %v7063_v18  ;;  %6796 = vmatpush3.bf16.msra.mxu0 %v8014_v13 }
 0x150   : > { %1880 = vst [vmem:[#allocation3 + $0x2d8] sm:$0xf] %v1789_v21  ;;  %v1967_v54 = vld [vmem:[#allocation2 + $0x38] sm:$0x1]  ;;  %v2080_v48 = vshll.u32 %v1965_v35, 16  ;;  %v2086_v49 = vshll.u32 %v1966_v41, 16  ;;  %6797 = vmatprep.subr.bf16.mxu0 %v7103_v36 }
 0x151   : > { %v2090_v50 = vshrl.u32 %v1966_v41, 16  ;;  %v1792_v33 = vsel %vm7765_vm14, %v1790_v38, %v1791_v32  ;;  %v2096_v4 = vshll.u32 %v1967_v54, 16  ;;  %v2461_v52 = vld [vmem:[#allocation2 + $0x30] sm:$0xe]  ;;  %v2462_v53 = vld [vmem:[#allocation2 + $0x34] sm:$0xf]  ;;  %v8050_v32 = vpop.f32.mrf.mxu0 }
 0x152   : > { %v7116_v56 = vld [vmem:[#allocation7 + $0x218] sm:$0xff]   ;;  %1881 = vst [vmem:[#allocation3 + $0x2fc] sm:$0xf] %v1792_v33  ;;  %v2079_v44 = vrot.slane %v2077_v46, 4  ;;  %v2082_v57 = vrot.slane %v2080_v48, 5  ;;  %v2088_v61 = vrot.slane %v2086_v49, 5 }
 0x153   : > { %v2092_v62 = vrot.slane %v2090_v50, 4  ;;  %v2463_v63 = vld [vmem:[#allocation2 + $0x38] sm:$0x1]  ;;  %v2098_v1 = vrot.slane %v2096_v4, 5  ;;  %v6034_v3 = vrot.slane %v2461_v52, 9  ;;  %v2571_v5 = vrot.slane %v2462_v53, 5  ;;  %6798 = vmatpush3.bf16.msra.mxu0 %v7103_v36  ;;  %v8055_v46 = vpop.f32.mrf.mxu0 }
 0x154   : > { %v2574_v6 = vrot.slane %v2463_v63, 5  ;;  %v2083_v58 = vor.u32 %v2082_v57, %v2079_v44  ;;  %v400_v15 = vmax.f32 %v368_v45, 0.0  ;;  %v1650_v10 = vld [vmem:[#allocation2 + $0x84] sm:$0xe]  ;;  %v875_v13 = vshrl.u32 %v8037_v7, 16  ;;  %6799 = vmatprep.subr.bf16.mxu0 %v7116_v56 }
 0x155   : > { %v2093_v2 = vor.u32 %v2092_v62, %v2088_v61  ;;  %v2572_v12 = vsel %vm7765_vm14, %v6034_v3, %v2571_v5  ;;  %v2573_v14 = vrot.slane %v2571_v5, 4  ;;  %v7061_v19 = vld [vmem:[#allocation3 + $0xa4] ss:$36 sps:$4 sm:$0xff]   ;;  %v6026_v22 = vrot.slane %v1650_v10, 9  ;;  %v1651_v24 = vld [vmem:[#allocation2 + $0x88] sm:$0xf] }
 0x156   : > { %v2084_v17 = vrot.slane %v2083_v58, 4  ;;  %2698 = vst [vmem:[#allocation3 + $0xec] sm:$0xf] %v2572_v12  ;;  %v7064_v20 = vld [vmem:[#allocation3 + $0xa0] ss:$36 sps:$4 sm:$0xff]   ;;  %v8048_v28 = vrot.slane %v875_v13, 7  ;;  %5406 = vmatprep.mubr.bf16.mxu0 %v7061_v19  ;;  %v6317_v39 = vpack.c.bf16 %v400_v15, %v400_v15 }
 0x157   : > { %v2094_v60 = vrot.slane %v2093_v2, 4  ;;  %v2575_v26 = vsel %vm7765_vm14, %v2573_v14, %v2574_v6  ;;  %v1652_v27 = vld [vmem:[#allocation2 + $0x8c] sm:$0x1]  ;;  %v7065_v34 = vld [vmem:[#allocation3 + $0x2dc] ss:$36 sps:$4 sm:$0xff]   ;;  %v1795_v37 = vrot.slane %v1651_v24, 5  ;;  %5407 = vmatmul.mubr.bf16.gmra.mxu0 %v7064_v20  ;;  %v6341_v2 = vpop.f32.mrf.mxu0 }
 0x158   : > { %v2089_v47 = vsel %vm7549_vm9, %v2084_v17, %v2088_v61  ;;  %2699 = vst [vmem:[#allocation3 + $0x110] sm:$0xf] %v2575_v26  ;;  %v1798_v40 = vrot.slane %v1652_v27, 5  ;;  %v1914_v29 = vld [vmem:[#allocation2 + $0x90] sm:$0xf]  ;;  %5309 = vmatprep.mubr.bf16.mxu1 %v7065_v34  ;;  %v881_v25 = vrot.slane %v8048_v28, 4  ;;  %6800 = vmatpush3.bf16.msra.mxu0 %v7116_v56 }
 0x159   : > { %v2099_v23 = vsel %vm7549_vm9, %v2094_v60, %v2098_v1  ;;  %2426 = vst [vmem:[#allocation3 + $0xe8] sm:$0xf] %v2089_v47  ;;  %v7070_v36 = vld [vmem:[#allocation3 + $0x2d8] ss:$36 sps:$4 sm:$0xff]   ;;  %v1796_v41 = vsel %vm7765_vm14, %v6026_v22, %v1795_v37  ;;  %v1797_v42 = vrot.slane %v1795_v37, 4  ;;  %v883_v33 = vshrl.u32 %v6317_v39, 16  ;;  %v6342_v26 = vpop.f32.mrf.mxu0 }
 0x15a   : > { %2427 = vst [vmem:[#allocation3 + $0x10c] sm:$0xf] %v2099_v23  ;;  %v1915_v35 = vld [vmem:[#allocation2 + $0x94] sm:$0xf]  ;;  %1946 = vst [vmem:[#allocation3 + $0x324] sm:$0xf] %v1914_v29  ;;  %5310 = vmatmul.mubr.bf16.gmra.mxu1 %v7070_v36  ;;  %v8066_v34 = vadd.f32 %v6342_v26, %v6341_v2 }
 0x15b   : > { %1947 = vst [vmem:[#allocation3 + $0x348] sm:$0xf] %v1915_v35  ;;  %v1968_v43 = vld [vmem:[#allocation2 + $0x3c] sm:$0xf]  ;;  %v1969_v30 = vld [vmem:[#allocation2 + $0x40] sm:$0xf]  ;;  %v1799_v48 = vsel %vm7765_vm14, %v1797_v42, %v1798_v40 }
 0x15c   : > { %1882 = vst [vmem:[#allocation3 + $0x320] sm:$0xf] %v1796_v41  ;;  %v1970_v18 = vld [vmem:[#allocation2 + $0x44] sm:$0x1]  ;;  %v2101_v21 = vshrl.u32 %v1968_v43, 16  ;;  %v2104_v38 = vshll.u32 %v1968_v43, 16 }
 0x15d   : > { %v2110_v45 = vshll.u32 %v1969_v30, 16  ;;  %v2114_v54 = vshrl.u32 %v1969_v30, 16  ;;  %v2120_v49 = vshll.u32 %v1970_v18, 16  ;;  %v2464_v50 = vld [vmem:[#allocation2 + $0x3c] sm:$0xe]  ;;  %v8059_v58 = vrot.slane %v883_v33, 7 }
 0x15e   : > { %v2465_v51 = vld [vmem:[#allocation2 + $0x40] sm:$0xf]  ;;  %1883 = vst [vmem:[#allocation3 + $0x344] sm:$0xf] %v1799_v48  ;;  %v2103_v4 = vrot.slane %v2101_v21, 4  ;;  %v2106_v52 = vrot.slane %v2104_v38, 5  ;;  %v6407_v21 = vpop.f32.mrf.mxu1 }
 0x15f   : > { %v2112_v53 = vrot.slane %v2110_v45, 5  ;;  %v2116_v55 = vrot.slane %v2114_v54, 4  ;;  %v2466_v56 = vld [vmem:[#allocation2 + $0x44] sm:$0x1]  ;;  %v2122_v44 = vrot.slane %v2120_v49, 5  ;;  %v6035_v57 = vrot.slane %v2464_v50, 9 }
 0x160   : > { %v2578_v61 = vrot.slane %v2465_v51, 5  ;;  %v2581_v62 = vrot.slane %v2466_v56, 5  ;;  %v1653_v63 = vld [vmem:[#allocation2 + $0x90] sm:$0xe]  ;;  %v7067_v1 = vld [vmem:[#allocation3 + $0xec] ss:$36 sps:$4 sm:$0xff]   ;;  %v2107_v3 = vor.u32 %v2106_v52, %v2103_v4  ;;  %v6408_v9 = vpop.f32.mrf.mxu1 }
 0x161   : > { %v2117_v5 = vor.u32 %v2116_v55, %v2112_v53  ;;  %v6027_v6 = vrot.slane %v1653_v63, 9  ;;  %v7071_v12 = vld [vmem:[#allocation3 + $0xe8] ss:$36 sps:$4 sm:$0xff]   ;;  %v1654_v17 = vld [vmem:[#allocation2 + $0x94] sm:$0xf]  ;;  %v886_v60 = vshll.u32 %v6317_v39, 16  ;;  %5414 = vmatprep.mubr.bf16.mxu0 %v7067_v1  ;;  %v8080_v63 = vadd.f32 %v6408_v9, %v6407_v21 }
 0x162   : > { %v2579_v14 = vsel %vm7765_vm14, %v6035_v57, %v2578_v61  ;;  %v2580_v15 = vrot.slane %v2578_v61, 4  ;;  %v2108_v10 = vrot.slane %v2107_v3, 4  ;;  %v1655_v19 = vld [vmem:[#allocation2 + $0x98] sm:$0x1]  ;;  %v1802_v20 = vrot.slane %v1654_v17, 5  ;;  %5415 = vmatmul.mubr.bf16.gmra.mxu0 %v7071_v12  ;;  %v7129_v41 = vld [vmem:[#allocation7 + $0x210] sm:$0xff]  }
 0x163   : > { %v2118_v13 = vrot.slane %v2117_v5, 4  ;;  %2700 = vst [vmem:[#allocation3 + $0x134] sm:$0xf] %v2579_v14  ;;  %v1805_v47 = vrot.slane %v1655_v19, 5  ;;  %v1916_v23 = vld [vmem:[#allocation2 + $0x9c] sm:$0xf]  ;;  %v888_v27 = vor.u32 %v886_v60, %v8059_v58  ;;  %6801 = vmatprep.subr.bf16.mxu0 %v7129_v41 }
 0x164   : > { %v2582_v22 = vsel %vm7765_vm14, %v2580_v15, %v2581_v62  ;;  %v1917_v24 = vld [vmem:[#allocation2 + $0xa0] sm:$0xf]  ;;  %v2113_v36 = vsel %vm7549_vm9, %v2108_v10, %v2112_v53  ;;  %v1803_v39 = vsel %vm7765_vm14, %v6027_v6, %v1802_v20  ;;  %v1804_v40 = vrot.slane %v1802_v20, 4  ;;  %1948 = vst [vmem:[#allocation3 + $0x36c] sm:$0xf] %v1916_v23  ;;  %6802 = vmatpush3.bf16.msra.mxu0 %v7129_v41  ;;  %v8084_v15 = vpop.f32.mrf.mxu0 }
 0x165   : > { %v2123_v37 = vsel %vm7549_vm9, %v2118_v13, %v2122_v44  ;;  %2701 = vst [vmem:[#allocation3 + $0x158] sm:$0xf] %v2582_v22  ;;  %1949 = vst [vmem:[#allocation3 + $0x390] sm:$0xf] %v1917_v24  ;;  %v1971_v29 = vld [vmem:[#allocation2 + $0x48] sm:$0xf]  ;;  %v889_v18 = vsel %vm7555_vm10, %v881_v25, %v888_v27 }
 0x166   : > { %v1972_v35 = vld [vmem:[#allocation2 + $0x4c] sm:$0xf]  ;;  %v7074_v42 = vld [vmem:[#allocation3 + $0x324] ss:$36 sps:$4 sm:$0xff]   ;;  %2428 = vst [vmem:[#allocation3 + $0x130] sm:$0xf] %v2113_v36  ;;  %v1806_v38 = vsel %vm7765_vm14, %v1804_v40, %v1805_v47  ;;  %v8092_v40 = vpop.f32.mrf.mxu0 }
 0x167   : > { %2429 = vst [vmem:[#allocation3 + $0x154] sm:$0xf] %v2123_v37  ;;  %v7078_v43 = vld [vmem:[#allocation3 + $0x320] ss:$36 sps:$4 sm:$0xff]   ;;  %1884 = vst [vmem:[#allocation3 + $0x368] sm:$0xf] %v1803_v39  ;;  %5317 = vmatprep.mubr.bf16.mxu1 %v7074_v42 }
 0x168   : > { %v2125_v30 = vshrl.u32 %v1971_v29, 16  ;;  %v1973_v45 = vld [vmem:[#allocation2 + $0x50] sm:$0x1]  ;;  %v2128_v54 = vshll.u32 %v1971_v29, 16  ;;  %v2134_v48 = vshll.u32 %v1972_v35, 16  ;;  %v2138_v49 = vshrl.u32 %v1972_v35, 16  ;;  %5318 = vmatmul.mubr.bf16.gmra.mxu1 %v7078_v43 }
 0x169   : > { %1050 = vst [vmem:[#allocation2 + $0xc4] sm:$0xf] %v889_v18  ;;  %v7142_v50 = vld [vmem:[#allocation7 + $0x208] sm:$0xff]   ;;  %1885 = vst [vmem:[#allocation3 + $0x38c] sm:$0xf] %v1806_v38  ;;  %v2144_v33 = vshll.u32 %v1973_v45, 16 }
 0x16a   : > { %v2127_v51 = vrot.slane %v2125_v30, 4  ;;  %v2467_v4 = vld [vmem:[#allocation2 + $0x48] sm:$0xe]  ;;  %v2468_v52 = vld [vmem:[#allocation2 + $0x4c] sm:$0xf]  ;;  %v2130_v25 = vrot.slane %v2128_v54, 5  ;;  %6803 = vmatprep.subr.bf16.mxu0 %v7142_v50 }
 0x16b   : > { %v2136_v53 = vrot.slane %v2134_v48, 5  ;;  %v2140_v55 = vrot.slane %v2138_v49, 4  ;;  %v2469_v56 = vld [vmem:[#allocation2 + $0x50] sm:$0x1]  ;;  %v6036_v44 = vrot.slane %v2467_v4, 9  ;;  %v2146_v57 = vrot.slane %v2144_v33, 5  ;;  %6804 = vmatpush3.bf16.msra.mxu0 %v7142_v50  ;;  %v8096_v33 = vpop.f32.mrf.mxu1 }
 0x16c   : > { %v2585_v61 = vrot.slane %v2468_v52, 5  ;;  %v2588_v62 = vrot.slane %v2469_v56, 5  ;;  %9035 = vst [vmem:[#allocation14_spill] sm:$0xff] %v8080_v63  ;;  %v2131_v1 = vor.u32 %v2130_v25, %v2127_v51  ;;  %v7076_v2 = vld [vmem:[#allocation3 + $0x134] ss:$36 sps:$4 sm:$0xff]   ;;  %v7155_v45 = vld [vmem:[#allocation7 + $0x200] sm:$0xff]  }
 0x16d   : > { %v2141_v3 = vor.u32 %v2140_v55, %v2136_v53  ;;  %v1656_v10 = vld [vmem:[#allocation2 + $0x9c] sm:$0xe]  ;;  %5422 = vmatprep.mubr.bf16.mxu0 %v7076_v2  ;;  %v7080_v13 = vld [vmem:[#allocation3 + $0x36c] ss:$36 sps:$4 sm:$0xff]   ;;  %v1657_v47 = vld [vmem:[#allocation2 + $0xa0] sm:$0xf]  ;;  %v6347_v55 = vpop.f32.mrf.mxu0  ;;  %6805 = vmatprep.subr.bf16.mxu0 %v7155_v45 }
 0x16e   : > { %v2586_v5 = vsel %vm7765_vm14, %v6036_v44, %v2585_v61  ;;  %v2587_v6 = vrot.slane %v2585_v61, 4  ;;  %v2132_v12 = vrot.slane %v2131_v1, 4  ;;  %v7079_v17 = vld [vmem:[#allocation3 + $0x130] ss:$36 sps:$4 sm:$0xff]   ;;  %v6028_v22 = vrot.slane %v1656_v10, 9  ;;  %5325 = vmatprep.mubr.bf16.mxu1 %v7080_v13  ;;  %9036 = vst [vmem:[#allocation15_spill] sm:$0xff] %v8096_v33  ;;  %v8102_v13 = vpop.f32.mrf.mxu1 }
 0x16f   : > { %v2142_v14 = vrot.slane %v2141_v3, 4  ;;  %2702 = vst [vmem:[#allocation3 + $0x17c] sm:$0xf] %v2586_v5  ;;  %5423 = vmatmul.mubr.bf16.gmra.mxu0 %v7079_v17  ;;  %v1658_v23 = vld [vmem:[#allocation2 + $0xa4] sm:$0x1]  ;;  %v1809_v27 = vrot.slane %v1657_v47, 5 }
 0x170   : > { %v2589_v60 = vsel %vm7765_vm14, %v2587_v6, %v2588_v62  ;;  %v2137_v19 = vsel %vm7549_vm9, %v2132_v12, %v2136_v53  ;;  %v7085_v26 = vld [vmem:[#allocation3 + $0x368] ss:$36 sps:$4 sm:$0xff]   ;;  %v1918_v24 = vld [vmem:[#allocation2 + $0xa8] sm:$0xf]  ;;  %v1812_v36 = vrot.slane %v1658_v23, 5  ;;  %6806 = vmatpush3.bf16.msra.mxu0 %v7155_v45  ;;  %v6348_v12 = vpop.f32.mrf.mxu0  ;;  %9037 = vst [vmem:[#allocation16_spill] sm:$0xff] %v8102_v13 }
 0x171   : > { %v2147_v20 = vsel %vm7549_vm9, %v2142_v14, %v2146_v57  ;;  %2703 = vst [vmem:[#allocation3 + $0x1a0] sm:$0xf] %v2589_v60  ;;  %2430 = vst [vmem:[#allocation3 + $0x178] sm:$0xf] %v2137_v19  ;;  %v1919_v37 = vld [vmem:[#allocation2 + $0xac] sm:$0xf]  ;;  %5326 = vmatmul.mubr.bf16.gmra.mxu1 %v7085_v26  ;;  %v1810_v43 = vsel %vm7765_vm14, %v6028_v22, %v1809_v27  ;;  %v8104_v19 = vadd.f32 %v6348_v12, %v6347_v55 }
 0x172   : > { %2431 = vst [vmem:[#allocation3 + $0x19c] sm:$0xf] %v2147_v20  ;;  %1950 = vst [vmem:[#allocation3 + $0x3b4] sm:$0xf] %v1918_v24  ;;  %v1974_v39 = vld [vmem:[#allocation2 + $0x54] sm:$0xf] }
 0x173   : > { %1951 = vst [vmem:[#allocation3 + $0x3d8] sm:$0xf] %v1919_v37  ;;  %v1975_v29 = vld [vmem:[#allocation2 + $0x58] sm:$0xf]  ;;  %v1976_v35 = vld [vmem:[#allocation2 + $0x5c] sm:$0x1] }
 0x174   : > { %v2149_v41 = vshrl.u32 %v1974_v39, 16  ;;  %v2152_v42 = vshll.u32 %v1974_v39, 16  ;;  %v1811_v30 = vrot.slane %v1809_v27, 4  ;;  %v2158_v18 = vshll.u32 %v1975_v29, 16  ;;  %v2470_v38 = vld [vmem:[#allocation2 + $0x54] sm:$0xe] }
 0x175   : > { %v2162_v21 = vshrl.u32 %v1975_v29, 16  ;;  %1886 = vst [vmem:[#allocation3 + $0x3b0] sm:$0xf] %v1810_v43  ;;  %v2168_v49 = vshll.u32 %v1976_v35, 16  ;;  %v2471_v50 = vld [vmem:[#allocation2 + $0x58] sm:$0xf] }
 0x176   : > { %v2151_v54 = vrot.slane %v2149_v41, 4  ;;  %v2154_v48 = vrot.slane %v2152_v42, 5  ;;  %v6037_v51 = vrot.slane %v2470_v38, 9  ;;  %v1813_v4 = vsel %vm7765_vm14, %v1811_v30, %v1812_v36  ;;  %v2472_v25 = vld [vmem:[#allocation2 + $0x5c] sm:$0x1] }
 0x177   : > { %v2160_v52 = vrot.slane %v2158_v18, 5  ;;  %v2164_v9 = vrot.slane %v2162_v21, 4  ;;  %v2592_v53 = vrot.slane %v2471_v50, 5  ;;  %1887 = vst [vmem:[#allocation3 + $0x3d4] sm:$0xf] %v1813_v4  ;;  %v2170_v44 = vrot.slane %v2168_v49, 5 }
 0x178   : > { %v2155_v56 = vor.u32 %v2154_v48, %v2151_v54  ;;  %v2595_v57 = vrot.slane %v2472_v25, 5  ;;  %v1659_v61 = vld [vmem:[#allocation2 + $0xa8] sm:$0xe]  ;;  %v1660_v62 = vld [vmem:[#allocation2 + $0xac] sm:$0xf]  ;;  %v6413_v54 = vpop.f32.mrf.mxu1 }
 0x179   : > { %v7082_v1 = vld [vmem:[#allocation3 + $0x17c] ss:$36 sps:$4 sm:$0xff]   ;;  %v2165_v3 = vor.u32 %v2164_v9, %v2160_v52  ;;  %v2593_v5 = vsel %vm7765_vm14, %v6037_v51, %v2592_v53  ;;  %v2594_v6 = vrot.slane %v2592_v53, 4  ;;  %v6029_v2 = vrot.slane %v1659_v61, 9  ;;  %v1661_v60 = vld [vmem:[#allocation2 + $0xb0] sm:$0x1] }
 0x17a   : > { %v7086_v14 = vld [vmem:[#allocation3 + $0x178] ss:$36 sps:$4 sm:$0xff]   ;;  %v2156_v17 = vrot.slane %v2155_v56, 4  ;;  %2704 = vst [vmem:[#allocation3 + $0x1c4] sm:$0xf] %v2593_v5  ;;  %v1816_v10 = vrot.slane %v1660_v62, 5  ;;  %5430 = vmatprep.mubr.bf16.mxu0 %v7082_v1  ;;  %v6414_v53 = vpop.f32.mrf.mxu1 }
 0x17b   : > { %v2166_v20 = vrot.slane %v2165_v3, 4  ;;  %v2596_v26 = vsel %vm7765_vm14, %v2594_v6, %v2595_v57  ;;  %v1819_v22 = vrot.slane %v1661_v60, 5  ;;  %v1920_v47 = vld [vmem:[#allocation2 + $0xb4] sm:$0xf]  ;;  %v1921_v23 = vld [vmem:[#allocation2 + $0xb8] sm:$0xf]  ;;  %5431 = vmatmul.mubr.bf16.gmra.mxu0 %v7086_v14  ;;  %v8116_v57 = vadd.f32 %v6414_v53, %v6413_v54 }
 0x17c   : > { %v2161_v24 = vsel %vm7549_vm9, %v2156_v17, %v2160_v52  ;;  %2705 = vst [vmem:[#allocation3 + $0x1e8] sm:$0xf] %v2596_v26  ;;  %v1817_v27 = vsel %vm7765_vm14, %v6029_v2, %v1816_v10  ;;  %v1818_v36 = vrot.slane %v1816_v10, 4  ;;  %1952 = vst [vmem:[#allocation3 + $0x3fc] sm:$0xf] %v1920_v47  ;;  %v878_v5 = vshll.u32 %v8037_v7, 16 }
 0x17d   : > { %1953 = vst [vmem:[#allocation3 + $0x420] sm:$0xf] %v1921_v23  ;;  %v1977_v37 = vld [vmem:[#allocation2 + $0x60] sm:$0xf]  ;;  %v1978_v39 = vld [vmem:[#allocation2 + $0x64] sm:$0xf]  ;;  %v2171_v29 = vsel %vm7549_vm9, %v2166_v20, %v2170_v44  ;;  %v8125_v20 = vpop.f32.mrf.mxu0 }
 0x17e   : > { %2432 = vst [vmem:[#allocation3 + $0x1c0] sm:$0xf] %v2161_v24  ;;  %1888 = vst [vmem:[#allocation3 + $0x3f8] sm:$0xf] %v1817_v27  ;;  %v1979_v35 = vld [vmem:[#allocation2 + $0x68] sm:$0x1]  ;;  %v1820_v30 = vsel %vm7765_vm14, %v1818_v36, %v1819_v22 }
 0x17f   : > { %v2173_v41 = vshrl.u32 %v1977_v37, 16  ;;  %v2176_v42 = vshll.u32 %v1977_v37, 16  ;;  %v2182_v43 = vshll.u32 %v1978_v39, 16  ;;  %2433 = vst [vmem:[#allocation3 + $0x1e4] sm:$0xf] %v2171_v29  ;;  %v2186_v18 = vshrl.u32 %v1978_v39, 16 }
 0x180   : > { %v2192_v21 = vshll.u32 %v1979_v35, 16  ;;  %v2473_v38 = vld [vmem:[#allocation2 + $0x60] sm:$0xe]  ;;  %v2474_v45 = vld [vmem:[#allocation2 + $0x64] sm:$0xf]  ;;  %9038 = vst [vmem:[#allocation17_spill] sm:$0xff] %v8116_v57  ;;  %v880_v35 = vor.u32 %v878_v5, %v8048_v28 }
 0x181   : > { %v7089_v48 = vld [vmem:[#allocation3 + $0x3b4] ss:$36 sps:$4 sm:$0xff]   ;;  %1889 = vst [vmem:[#allocation3 + $0x41c] sm:$0xf] %v1820_v30  ;;  %v2175_v50 = vrot.slane %v2173_v41, 4  ;;  %v2178_v51 = vrot.slane %v2176_v42, 5  ;;  %v8132_v30 = vpop.f32.mrf.mxu0 }
 0x182   : > { %v7093_v49 = vld [vmem:[#allocation3 + $0x3b0] ss:$36 sps:$4 sm:$0xff]   ;;  %v2184_v4 = vrot.slane %v2182_v43, 5  ;;  %v2188_v52 = vrot.slane %v2186_v18, 4  ;;  %v2194_v9 = vrot.slane %v2192_v21, 5  ;;  %5333 = vmatprep.mubr.bf16.mxu1 %v7089_v48  ;;  %v6038_v55 = vrot.slane %v2473_v38, 9 }
 0x183   : > { %v2475_v25 = vld [vmem:[#allocation2 + $0x68] sm:$0x1]  ;;  %v2599_v56 = vrot.slane %v2474_v45, 5  ;;  %5334 = vmatmul.mubr.bf16.gmra.mxu1 %v7093_v49  ;;  %v2179_v61 = vor.u32 %v2178_v51, %v2175_v50  ;;  %v459_v12 = vld [vmem:[#allocation2 + $0xc0] sm:$0x1] }
 0x184   : > { %v2602_v44 = vrot.slane %v2475_v25, 5  ;;  %v2189_v62 = vor.u32 %v2188_v52, %v2184_v4  ;;  %v7091_v14 = vld [vmem:[#allocation3 + $0x1c4] ss:$36 sps:$4 sm:$0xff]   ;;  %v460_v10 = vsel %vm7501_vm2, 0, %v459_v12  ;;  %v7095_v26 = vld [vmem:[#allocation3 + $0x3fc] ss:$36 sps:$4 sm:$0xff]  }
 0x185   : > { %v2600_v1 = vsel %vm7765_vm14, %v6038_v55, %v2599_v56  ;;  %v2601_v3 = vrot.slane %v2599_v56, 4  ;;  %v2180_v6 = vrot.slane %v2179_v61, 4  ;;  %461 = vst [vmem:[#allocation2 + $0xc0] sm:$0x1] %v460_v10  ;;  %5438 = vmatprep.mubr.bf16.mxu0 %v7091_v14  ;;  %v1662_v23 = vld [vmem:[#allocation2 + $0xb4] sm:$0xe]  ;;  %5341 = vmatprep.mubr.bf16.mxu1 %v7095_v26  ;;  %v8142_v14 = vpop.f32.mrf.mxu1 }
 0x186   : > { %v2190_v2 = vrot.slane %v2189_v62, 4  ;;  %2706 = vst [vmem:[#allocation3 + $0x20c] sm:$0xf] %v2600_v1  ;;  %v7094_v17 = vld [vmem:[#allocation3 + $0x1c0] ss:$36 sps:$4 sm:$0xff]   ;;  %v6030_v36 = vrot.slane %v1662_v23, 9  ;;  %v6353_v1 = vpop.f32.mrf.mxu0 }
 0x187   : > { %v2603_v60 = vsel %vm7765_vm14, %v2601_v3, %v2602_v44  ;;  %v2185_v22 = vsel %vm7549_vm9, %v2180_v6, %v2184_v4  ;;  %v1663_v24 = vld [vmem:[#allocation2 + $0xb8] sm:$0xf]  ;;  %v1664_v27 = vld [vmem:[#allocation2 + $0xbc] sm:$0x1]  ;;  %5439 = vmatmul.mubr.bf16.gmra.mxu0 %v7094_v17  ;;  %v1923_v29 = vld [vmem:[#allocation2 + $0xc4] sm:$0xf] }
 0x188   : > { %v2195_v7 = vsel %vm7549_vm9, %v2190_v2, %v2194_v9  ;;  %2707 = vst [vmem:[#allocation3 + $0x230] sm:$0xf] %v2603_v60  ;;  %v7100_v47 = vld [vmem:[#allocation3 + $0x3f8] ss:$36 sps:$4 sm:$0xff]   ;;  %2434 = vst [vmem:[#allocation3 + $0x208] sm:$0xf] %v2185_v22 }
 0x189   : > { %2435 = vst [vmem:[#allocation3 + $0x22c] sm:$0xf] %v2195_v7  ;;  %v1823_v37 = vrot.slane %v1663_v24, 5  ;;  %v1826_v39 = vrot.slane %v1664_v27, 5  ;;  %1955 = vst [vmem:[#allocation3 + $0x468] sm:$0xf] %v1923_v29  ;;  %v6354_v29 = vpop.f32.mrf.mxu0 }
 0x18a   : > { %v1980_v41 = vld [vmem:[#allocation2 + $0x6c] sm:$0xf]  ;;  %v1981_v42 = vld [vmem:[#allocation2 + $0x70] sm:$0xf]  ;;  %v1982_v43 = vld [vmem:[#allocation2 + $0x74] sm:$0x1] }
 0x18b   : > { %5342 = vmatmul.mubr.bf16.gmra.mxu1 %v7100_v47  ;;  %v1824_v18 = vsel %vm7765_vm14, %v6030_v36, %v1823_v37  ;;  %v1825_v21 = vrot.slane %v1823_v37, 4  ;;  %v2197_v38 = vshrl.u32 %v1980_v41, 16  ;;  %v2200_v45 = vshll.u32 %v1980_v41, 16  ;;  %v2476_v54 = vld [vmem:[#allocation2 + $0x6c] sm:$0xe]  ;;  %9039 = vst [vmem:[#allocation18_spill] sm:$0xff] %v8142_v14 }
 0x18c   : > { %1890 = vst [vmem:[#allocation3 + $0x440] sm:$0xf] %v1824_v18  ;;  %v2206_v48 = vshll.u32 %v1981_v42, 16  ;;  %v2210_v49 = vshrl.u32 %v1981_v42, 16  ;;  %v2216_v50 = vshll.u32 %v1982_v43, 16  ;;  %v6039_v28 = vrot.slane %v2476_v54, 9 }
 0x18d   : > { %v2477_v51 = vld [vmem:[#allocation2 + $0x70] sm:$0xf]  ;;  %v1827_v4 = vsel %vm7765_vm14, %v1825_v21, %v1826_v39  ;;  %v2199_v52 = vrot.slane %v2197_v38, 4  ;;  %v2202_v9 = vrot.slane %v2200_v45, 5  ;;  %v2478_v25 = vld [vmem:[#allocation2 + $0x74] sm:$0x1]  ;;  %v8148_v21 = vpop.f32.mrf.mxu1  ;;  %v8150_v38 = vadd.f32 %v6354_v29, %v6353_v1 }
 0x18e   : > { %v2606_v53 = vrot.slane %v2477_v51, 5  ;;  %v1047_v55 = vld [vmem:[#allocation2 + $0xc0] sm:$0xf]  ;;  %1891 = vst [vmem:[#allocation3 + $0x464] sm:$0xf] %v1827_v4  ;;  %v2208_v56 = vrot.slane %v2206_v48, 5 }
 0x18f   : > { %v2212_v44 = vrot.slane %v2210_v49, 4  ;;  %v2218_v61 = vrot.slane %v2216_v50, 5  ;;  %v2609_v62 = vrot.slane %v2478_v25, 5  ;;  %v7097_v3 = vld [vmem:[#allocation3 + $0x20c] ss:$36 sps:$4 sm:$0xff]   ;;  %v1048_v5 = vsel %vm7561_vm11, %v880_v35, %v1047_v55  ;;  %9040 = vst [vmem:[#allocation19_spill] sm:$0xff] %v8148_v21 }
 0x190   : > { %v2203_v6 = vor.u32 %v2202_v9, %v2199_v52  ;;  %v2607_v2 = vsel %vm7765_vm14, %v6039_v28, %v2606_v53  ;;  %v2608_v12 = vrot.slane %v2606_v53, 4  ;;  %v7101_v17 = vld [vmem:[#allocation3 + $0x208] ss:$36 sps:$4 sm:$0xff]   ;;  %1049 = vst [vmem:[#allocation2 + $0xc0] sm:$0xf] %v1048_v5  ;;  %5446 = vmatprep.mubr.bf16.mxu0 %v7097_v3  ;;  %v6419_v5 = vpop.f32.mrf.mxu1 }
 0x191   : > { %v2213_v60 = vor.u32 %v2212_v44, %v2208_v56  ;;  %2708 = vst [vmem:[#allocation3 + $0x254] sm:$0xf] %v2607_v2  ;;  %v1983_v10 = vld [vmem:[#allocation2 + $0x78] sm:$0xf]  ;;  %v1984_v26 = vld [vmem:[#allocation2 + $0x7c] sm:$0xf]  ;;  %5447 = vmatmul.mubr.bf16.gmra.mxu0 %v7101_v17 }
 0x192   : > { %v2204_v22 = vrot.slane %v2203_v6, 4  ;;  %v2610_v7 = vsel %vm7765_vm14, %v2608_v12, %v2609_v62  ;;  %v1985_v16 = vld [vmem:[#allocation2 + $0x80] sm:$0x1]  ;;  %v2221_v47 = vshrl.u32 %v1983_v10, 16  ;;  %v2224_v23 = vshll.u32 %v1983_v10, 16 }
 0x193   : > { %v2214_v24 = vrot.slane %v2213_v60, 4  ;;  %2709 = vst [vmem:[#allocation3 + $0x278] sm:$0xf] %v2610_v7  ;;  %v2230_v27 = vshll.u32 %v1984_v26, 16  ;;  %v2234_v36 = vshrl.u32 %v1984_v26, 16  ;;  %v2240_v37 = vshll.u32 %v1985_v16, 16  ;;  %v6420_v16 = vpop.f32.mrf.mxu1 }
 0x194   : > { %v2479_v39 = vld [vmem:[#allocation2 + $0x78] sm:$0xe]  ;;  %v2209_v35 = vsel %vm7549_vm9, %v2204_v22, %v2208_v56  ;;  %v2223_v41 = vrot.slane %v2221_v47, 4  ;;  %v2226_v42 = vrot.slane %v2224_v23, 5  ;;  %v2480_v43 = vld [vmem:[#allocation2 + $0x7c] sm:$0xf]  ;;  %v8160_v47 = vpop.f32.mrf.mxu0 }
 0x195   : > { %v2481_v18 = vld [vmem:[#allocation2 + $0x80] sm:$0x1]  ;;  %v2219_v45 = vsel %vm7549_vm9, %v2214_v24, %v2218_v61  ;;  %2436 = vst [vmem:[#allocation3 + $0x250] sm:$0xf] %v2209_v35  ;;  %v2232_v54 = vrot.slane %v2230_v27, 5  ;;  %v2236_v48 = vrot.slane %v2234_v36, 4 }
 0x196   : > { %v2242_v49 = vrot.slane %v2240_v37, 5  ;;  %v2725_v50 = vld [vmem:[#allocation2 + $0x18] sm:$0xf]  ;;  %2437 = vst [vmem:[#allocation3 + $0x274] sm:$0xf] %v2219_v45  ;;  %v2227_v51 = vor.u32 %v2226_v42, %v2223_v41  ;;  %v6040_v28 = vrot.slane %v2479_v39, 9  ;;  %v8164_v42 = vadd.f32 %v6420_v16, %v6419_v5 }
 0x197   : > { %v2613_v4 = vrot.slane %v2480_v43, 5  ;;  %v2616_v52 = vrot.slane %v2481_v18, 5  ;;  %v2726_v9 = vld [vmem:[#allocation2 + $0x1c] sm:$0xf]  ;;  %2757 = vst [vmem:[#allocation3 + $0x18] sm:$0xf] %v2725_v50  ;;  %v2237_v25 = vor.u32 %v2236_v48, %v2232_v54 }
 0x198   : > { %2758 = vst [vmem:[#allocation3 + $0x3c] sm:$0xf] %v2726_v9  ;;  %v2789_v53 = vld [vmem:[#allocation2 + $0x18] sm:$0xf]  ;;  %v2790_v55 = vld [vmem:[#allocation2 + $0x1c] sm:$0xf] }
 0x199   : > { %v2791_v56 = vld [vmem:[#allocation2 + $0x20] sm:$0x1]  ;;  %v2228_v62 = vrot.slane %v2227_v51, 4  ;;  %v2614_v61 = vsel %vm7765_vm14, %v6040_v28, %v2613_v4  ;;  %v2615_v1 = vrot.slane %v2613_v4, 4  ;;  %v2838_v3 = vshrl.u32 %v2789_v53, 16  ;;  %9041 = vst [vmem:[#allocation20_spill] sm:$0xff] %v8164_v42 }
 0x19a   : > { %v1922_v44 = vld [vmem:[#allocation2 + $0xc0] sm:$0xf]  ;;  %v2238_v6 = vrot.slane %v2237_v25, 4  ;;  %2710 = vst [vmem:[#allocation3 + $0x29c] sm:$0xf] %v2614_v61  ;;  %v2841_v2 = vshll.u32 %v2789_v53, 16 }
 0x19b   : > { %1954 = vst [vmem:[#allocation3 + $0x444] sm:$0xf] %v1922_v44  ;;  %v2847_v12 = vshll.u32 %v2790_v55, 16  ;;  %v2851_v17 = vshrl.u32 %v2790_v55, 16  ;;  %v2233_v60 = vsel %vm7549_vm9, %v2228_v62, %v2232_v54  ;;  %v2617_v10 = vsel %vm7765_vm14, %v2615_v1, %v2616_v52  ;;  %v1986_v7 = vld [vmem:[#allocation2 + $0x84] sm:$0xf]  ;;  %v8166_v52 = vpop.f32.mrf.mxu0 }
 0x19c   : > { %v2840_v26 = vrot.slane %v2838_v3, 4  ;;  %v2857_v22 = vshll.u32 %v2791_v56, 16  ;;  %v2243_v23 = vsel %vm7549_vm9, %v2238_v6, %v2242_v49  ;;  %2438 = vst [vmem:[#allocation3 + $0x298] sm:$0xf] %v2233_v60  ;;  %2711 = vst [vmem:[#allocation3 + $0x2c0] sm:$0xf] %v2617_v10 }
 0x19d   : > { %v2843_v24 = vrot.slane %v2841_v2, 5  ;;  %v2849_v27 = vrot.slane %v2847_v12, 5  ;;  %v2853_v36 = vrot.slane %v2851_v17, 4  ;;  %v1987_v37 = vld [vmem:[#allocation2 + $0x88] sm:$0xf]  ;;  %v2245_v35 = vshrl.u32 %v1986_v7, 16 }
 0x19e   : > { %2439 = vst [vmem:[#allocation3 + $0x2bc] sm:$0xf] %v2243_v23  ;;  %v2859_v39 = vrot.slane %v2857_v22, 5  ;;  %v1988_v29 = vld [vmem:[#allocation2 + $0x8c] sm:$0x1]  ;;  %v2248_v41 = vshll.u32 %v1986_v7, 16  ;;  %v6359_v7 = vpop.f32.mrf.mxu0 }
 0x19f   : > { %v7106_v43 = vld [vmem:[#allocation3 + $0x254] ss:$36 sps:$4 sm:$0xff]   ;;  %v2844_v45 = vor.u32 %v2843_v24, %v2840_v26  ;;  %v2854_v54 = vor.u32 %v2853_v36, %v2849_v27  ;;  %v2254_v48 = vshll.u32 %v1987_v37, 16  ;;  %v2247_v50 = vrot.slane %v2245_v35, 4  ;;  %v2482_v4 = vld [vmem:[#allocation2 + $0x84] sm:$0xe]  ;;  %v8174_v36 = vpop.f32.mrf.mxu1 }
 0x1a0   : > { %v7109_v18 = vld [vmem:[#allocation3 + $0x250] ss:$36 sps:$4 sm:$0xff]   ;;  %v2250_v49 = vrot.slane %v2248_v41, 5  ;;  %v2258_v51 = vshrl.u32 %v1987_v37, 16  ;;  %v2264_v28 = vshll.u32 %v1988_v29, 16  ;;  %5454 = vmatprep.mubr.bf16.mxu0 %v7106_v43  ;;  %v6041_v56 = vrot.slane %v2482_v4, 9 }
 0x1a1   : > { %v2845_v9 = vrot.slane %v2844_v45, 4  ;;  %v2855_v25 = vrot.slane %v2854_v54, 4  ;;  %v2256_v53 = vrot.slane %v2254_v48, 5  ;;  %v2483_v55 = vld [vmem:[#allocation2 + $0x88] sm:$0xf]  ;;  %5455 = vmatmul.mubr.bf16.gmra.mxu0 %v7109_v18  ;;  %9042 = vst [vmem:[#allocation21_spill] sm:$0xff] %v8174_v36  ;;  %v6360_v48 = vpop.f32.mrf.mxu0 }
 0x1a2   : > { %v7104_v44 = vld [vmem:[#allocation3 + $0x444] ss:$36 sps:$4 sm:$0xff]   ;;  %v2251_v61 = vor.u32 %v2250_v49, %v2247_v50  ;;  %v2260_v1 = vrot.slane %v2258_v51, 4  ;;  %v2484_v6 = vld [vmem:[#allocation2 + $0x8c] sm:$0x1]  ;;  %v2620_v2 = vrot.slane %v2483_v55, 5 }
 0x1a3   : > { %v7108_v62 = vld [vmem:[#allocation3 + $0x440] ss:$36 sps:$4 sm:$0xff]   ;;  %v2850_v3 = vsel %vm7549_vm9, %v2845_v9, %v2849_v27  ;;  %v2860_v5 = vsel %vm7549_vm9, %v2855_v25, %v2859_v39  ;;  %v2727_v12 = vld [vmem:[#allocation2 + $0x24] sm:$0xf]  ;;  %5349 = vmatprep.mubr.bf16.mxu1 %v7104_v44  ;;  %v2266_v10 = vrot.slane %v2264_v28, 5  ;;  %v2623_v26 = vrot.slane %v2484_v6, 5 }
 0x1a4   : > { %3253 = vst [vmem:[#allocation3 + $0x1c] sm:$0xf] %v2850_v3  ;;  %3254 = vst [vmem:[#allocation3 + $0x40] sm:$0xf] %v2860_v5  ;;  %v2252_v17 = vrot.slane %v2251_v61, 4  ;;  %v2261_v60 = vor.u32 %v2260_v1, %v2256_v53  ;;  %5350 = vmatmul.mubr.bf16.gmra.mxu1 %v7108_v62  ;;  %v2621_v24 = vsel %vm7765_vm14, %v6041_v56, %v2620_v2  ;;  %v2622_v27 = vrot.slane %v2620_v2, 4  ;;  %v8184_v62 = vpop.f32.mrf.mxu1 }
 0x1a5   : > { %v2728_v22 = vld [vmem:[#allocation2 + $0x28] sm:$0xf]  ;;  %2759 = vst [vmem:[#allocation3 + $0x60] sm:$0xf] %v2727_v12  ;;  %v7110_v16 = vld [vmem:[#allocation3 + $0x29c] ss:$36 sps:$4 sm:$0xff]   ;;  %v8182_v9 = vadd.f32 %v6360_v48, %v6359_v7 }
 0x1a6   : > { %v7115_v23 = vld [vmem:[#allocation3 + $0x298] ss:$36 sps:$4 sm:$0xff]   ;;  %2760 = vst [vmem:[#allocation3 + $0x84] sm:$0xf] %v2728_v22  ;;  %v2257_v37 = vsel %vm7549_vm9, %v2252_v17, %v2256_v53  ;;  %v2262_v39 = vrot.slane %v2261_v60, 4  ;;  %5462 = vmatprep.mubr.bf16.mxu0 %v7110_v16  ;;  %v2624_v41 = vsel %vm7765_vm14, %v2622_v27, %v2623_v26  ;;  %9043 = vst [vmem:[#allocation22_spill] sm:$0xff] %v8184_v62 }
 0x1a7   : > { %2712 = vst [vmem:[#allocation3 + $0x2e4] sm:$0xf] %v2621_v24  ;;  %v2792_v29 = vld [vmem:[#allocation2 + $0x24] sm:$0xf]  ;;  %v2793_v35 = vld [vmem:[#allocation2 + $0x28] sm:$0xf] }
 0x1a8   : > { %2440 = vst [vmem:[#allocation3 + $0x2e0] sm:$0xf] %v2257_v37  ;;  %v2794_v43 = vld [vmem:[#allocation2 + $0x2c] sm:$0x1]  ;;  %v2862_v18 = vshrl.u32 %v2792_v29, 16  ;;  %v2865_v45 = vshll.u32 %v2792_v29, 16  ;;  %v2267_v50 = vsel %vm7549_vm9, %v2262_v39, %v2266_v10  ;;  %v6425_v29 = vpop.f32.mrf.mxu1 }
 0x1a9   : > { %v2871_v54 = vshll.u32 %v2793_v35, 16  ;;  %2713 = vst [vmem:[#allocation3 + $0x308] sm:$0xf] %v2624_v41  ;;  %v2875_v49 = vshrl.u32 %v2793_v35, 16  ;;  %v2881_v51 = vshll.u32 %v2794_v43, 16  ;;  %5463 = vmatmul.mubr.bf16.gmra.mxu0 %v7115_v23 }
 0x1aa   : > { %v1989_v28 = vld [vmem:[#allocation2 + $0x90] sm:$0xf]  ;;  %v1990_v4 = vld [vmem:[#allocation2 + $0x94] sm:$0xf]  ;;  %2441 = vst [vmem:[#allocation3 + $0x304] sm:$0xf] %v2267_v50 }
 0x1ab   : > { %v2864_v25 = vrot.slane %v2862_v18, 4  ;;  %v2867_v53 = vrot.slane %v2865_v45, 5  ;;  %v2873_v55 = vrot.slane %v2871_v54, 5  ;;  %v1991_v56 = vld [vmem:[#allocation2 + $0x98] sm:$0x1]  ;;  %v2269_v44 = vshrl.u32 %v1989_v28, 16  ;;  %v8186_v45 = vpop.f32.mrf.mxu0 }
 0x1ac   : > { %v2877_v61 = vrot.slane %v2875_v49, 4  ;;  %v2883_v1 = vrot.slane %v2881_v51, 5  ;;  %v2272_v3 = vshll.u32 %v1989_v28, 16  ;;  %v2278_v5 = vshll.u32 %v1990_v4, 16  ;;  %v2485_v6 = vld [vmem:[#allocation2 + $0x90] sm:$0xe] }
 0x1ad   : > { %v7112_v2 = vld [vmem:[#allocation3 + $0x18] ss:$36 sps:$4 sm:$0xff]   ;;  %v2868_v12 = vor.u32 %v2867_v53, %v2864_v25  ;;  %v2271_v17 = vrot.slane %v2269_v44, 4  ;;  %v2282_v60 = vshrl.u32 %v1990_v4, 16  ;;  %v2288_v16 = vshll.u32 %v1991_v56, 16  ;;  %v6426_v4 = vpop.f32.mrf.mxu1 }
 0x1ae   : > { %v7114_v10 = vld [vmem:[#allocation3 + $0x1c] ss:$36 sps:$4 sm:$0xff]   ;;  %v2878_v26 = vor.u32 %v2877_v61, %v2873_v55  ;;  %v2274_v22 = vrot.slane %v2272_v3, 5  ;;  %v2280_v7 = vrot.slane %v2278_v5, 5  ;;  %v6042_v43 = vrot.slane %v2485_v6, 9 }
 0x1af   : > { %v2869_v24 = vrot.slane %v2868_v12, 4  ;;  %v2284_v27 = vrot.slane %v2282_v60, 4  ;;  %v2486_v37 = vld [vmem:[#allocation2 + $0x94] sm:$0xf]  ;;  %v2487_v39 = vld [vmem:[#allocation2 + $0x98] sm:$0x1]  ;;  %5551 = vmatprep.mubr.bf16.mxu1 %v7114_v10  ;;  %v8192_v61 = vadd.f32 %v6426_v4, %v6425_v29  ;;  %v8196_v12 = vpop.f32.mrf.mxu1 }
 0x1b0   : > { %v2879_v23 = vrot.slane %v2878_v26, 4  ;;  %v2275_v35 = vor.u32 %v2274_v22, %v2271_v17  ;;  %v2290_v41 = vrot.slane %v2288_v16, 5  ;;  %v2729_v18 = vld [vmem:[#allocation2 + $0x30] sm:$0xf]  ;;  %5552 = vmatmul.mubr.bf16.vlgmr.msra.gmra.mxu1 %v7112_v2  ;;  %v2627_v50 = vrot.slane %v2486_v37, 5  ;;  %9045 = vst [vmem:[#allocation24_spill] sm:$0xff] %v8196_v12  ;;  %v8200_v26 = vpop.f32.mrf.mxu0 }
 0x1b1   : > { %v2874_v54 = vsel %vm7549_vm9, %v2869_v24, %v2873_v55  ;;  %v2285_v48 = vor.u32 %v2284_v27, %v2280_v7  ;;  %v2630_v49 = vrot.slane %v2487_v39, 5  ;;  %v2730_v51 = vld [vmem:[#allocation2 + $0x34] sm:$0xf]  ;;  %2761 = vst [vmem:[#allocation3 + $0xa8] sm:$0xf] %v2729_v18  ;;  %9044 = vst [vmem:[#allocation23_spill] sm:$0xff] %v8192_v61  ;;  %v8206_v39 = vpop.f32.mrf.mxu1 }
 0x1b2   : > { %v2795_v28 = vld [vmem:[#allocation2 + $0x30] sm:$0xf]  ;;  %v7117_v25 = vld [vmem:[#allocation3 + $0x2e4] ss:$36 sps:$4 sm:$0xff]   ;;  %v2884_v53 = vsel %vm7549_vm9, %v2879_v23, %v2883_v1  ;;  %3255 = vst [vmem:[#allocation3 + $0x64] sm:$0xf] %v2874_v54  ;;  %v2628_v55 = vsel %vm7765_vm14, %v6042_v43, %v2627_v50 }
 0x1b3   : > { %v7121_v56 = vld [vmem:[#allocation3 + $0x2e0] ss:$36 sps:$4 sm:$0xff]   ;;  %v2276_v44 = vrot.slane %v2275_v35, 4  ;;  %2762 = vst [vmem:[#allocation3 + $0xcc] sm:$0xf] %v2730_v51  ;;  %v2286_v3 = vrot.slane %v2285_v48, 4  ;;  %5470 = vmatprep.mubr.bf16.mxu0 %v7117_v25  ;;  %v6447_v51 = vpop.f32.mrf.mxu1 }
 0x1b4   : > { %3256 = vst [vmem:[#allocation3 + $0x88] sm:$0xf] %v2884_v53  ;;  %v2629_v5 = vrot.slane %v2627_v50, 4  ;;  %v2796_v6 = vld [vmem:[#allocation2 + $0x34] sm:$0xf]  ;;  %v2886_v17 = vshrl.u32 %v2795_v28, 16  ;;  %5471 = vmatmul.mubr.bf16.gmra.mxu0 %v7121_v56  ;;  %v6365_v56 = vpop.f32.mrf.mxu0 }
 0x1b5   : > { %v2797_v2 = vld [vmem:[#allocation2 + $0x38] sm:$0x1]  ;;  %v2281_v1 = vsel %vm7549_vm9, %v2276_v44, %v2280_v7  ;;  %2714 = vst [vmem:[#allocation3 + $0x32c] sm:$0xf] %v2628_v55  ;;  %v2889_v60 = vshll.u32 %v2795_v28, 16  ;;  %v2895_v10 = vshll.u32 %v2796_v6, 16  ;;  %v2291_v22 = vsel %vm7549_vm9, %v2286_v3, %v2290_v41 }
 0x1b6   : > { %2442 = vst [vmem:[#allocation3 + $0x328] sm:$0xf] %v2281_v1  ;;  %v2631_v16 = vsel %vm7765_vm14, %v2629_v5, %v2630_v49  ;;  %v2899_v24 = vshrl.u32 %v2796_v6, 16  ;;  %v2905_v27 = vshll.u32 %v2797_v2, 16  ;;  %v1992_v37 = vld [vmem:[#allocation2 + $0x9c] sm:$0xf]  ;;  %v6448_v2 = vpop.f32.mrf.mxu1 }
 0x1b7   : > { %9046 = vst [vmem:[#allocation25_spill] sm:$0xff] %v8206_v39  ;;  %2443 = vst [vmem:[#allocation3 + $0x34c] sm:$0xf] %v2291_v22  ;;  %v2888_v7 = vrot.slane %v2886_v17, 4  ;;  %v2891_v29 = vrot.slane %v2889_v60, 5  ;;  %v2897_v23 = vrot.slane %v2895_v10, 5  ;;  %v8208_v10 = vadd.f32 %v6448_v2, %v6447_v51 }
 0x1b8   : > { %2715 = vst [vmem:[#allocation3 + $0x350] sm:$0xf] %v2631_v16  ;;  %v1993_v35 = vld [vmem:[#allocation2 + $0xa0] sm:$0xf]  ;;  %v2293_v43 = vshrl.u32 %v1992_v37, 16  ;;  %v2901_v18 = vrot.slane %v2899_v24, 4 }
 0x1b9   : > { %v2907_v54 = vrot.slane %v2905_v27, 5  ;;  %v1994_v48 = vld [vmem:[#allocation2 + $0xa4] sm:$0x1]  ;;  %v2296_v41 = vshll.u32 %v1992_v37, 16  ;;  %v2302_v50 = vshll.u32 %v1993_v35, 16  ;;  %v2892_v28 = vor.u32 %v2891_v29, %v2888_v7  ;;  %v6366_v7 = vpop.f32.mrf.mxu0  ;;  %v8210_v29 = vpop.f32.mrf.mxu1 }
 0x1ba   : > { %v2295_v49 = vrot.slane %v2293_v43, 4  ;;  %v2306_v4 = vshrl.u32 %v1993_v35, 16  ;;  %v2312_v25 = vshll.u32 %v1994_v48, 16  ;;  %v2488_v53 = vld [vmem:[#allocation2 + $0x9c] sm:$0xe]  ;;  %v2902_v44 = vor.u32 %v2901_v18, %v2897_v23 }
 0x1bb   : > { %v2298_v3 = vrot.slane %v2296_v41, 5  ;;  %v2304_v55 = vrot.slane %v2302_v50, 5  ;;  %v2489_v5 = vld [vmem:[#allocation2 + $0xa0] sm:$0xf]  ;;  %v6043_v6 = vrot.slane %v2488_v53, 9  ;;  %v2893_v60 = vrot.slane %v2892_v28, 4 }
 0x1bc   : > { %v7119_v1 = vld [vmem:[#allocation3 + $0x64] ss:$36 sps:$4 sm:$0xff]   ;;  %v2903_v22 = vrot.slane %v2902_v44, 4  ;;  %v2308_v24 = vrot.slane %v2306_v4, 4  ;;  %v2314_v27 = vrot.slane %v2312_v25, 5  ;;  %v2634_v43 = vrot.slane %v2489_v5, 5  ;;  %v8218_v25 = vpop.f32.mrf.mxu1 }
 0x1bd   : > { %v7122_v17 = vld [vmem:[#allocation3 + $0x60] ss:$36 sps:$4 sm:$0xff]   ;;  %v2299_v16 = vor.u32 %v2298_v3, %v2295_v49  ;;  %v2490_v37 = vld [vmem:[#allocation2 + $0xa4] sm:$0x1]  ;;  %5559 = vmatprep.mubr.bf16.mxu1 %v7119_v1  ;;  %v2898_v35 = vsel %vm7549_vm9, %v2893_v60, %v2897_v23  ;;  %v8214_v41 = vadd.f32 %v6366_v7, %v6365_v56  ;;  %v2732_v44 = vld [vmem:[#allocation2 + $0x40] sm:$0xf] }
 0x1be   : > { %v2637_v18 = vrot.slane %v2490_v37, 5  ;;  %v2731_v48 = vld [vmem:[#allocation2 + $0x3c] sm:$0xf]  ;;  %5560 = vmatmul.mubr.bf16.gmra.mxu1 %v7122_v17  ;;  %v2908_v51 = vsel %vm7549_vm9, %v2903_v22, %v2907_v54  ;;  %3257 = vst [vmem:[#allocation3 + $0xac] sm:$0xf] %v2898_v35  ;;  %v2309_v4 = vor.u32 %v2308_v24, %v2304_v55  ;;  %v2635_v23 = vsel %vm7765_vm14, %v6043_v6, %v2634_v43  ;;  %v8224_v17 = vpop.f32.mrf.mxu1 }
 0x1bf   : > { %v7123_v50 = vld [vmem:[#allocation3 + $0x32c] ss:$36 sps:$4 sm:$0xff]   ;;  %v2300_v49 = vrot.slane %v2299_v16, 4  ;;  %2763 = vst [vmem:[#allocation3 + $0xf0] sm:$0xf] %v2731_v48  ;;  %v2636_v53 = vrot.slane %v2634_v43, 4 }
 0x1c0   : > { %v7127_v28 = vld [vmem:[#allocation3 + $0x328] ss:$36 sps:$4 sm:$0xff]   ;;  %3258 = vst [vmem:[#allocation3 + $0xd0] sm:$0xf] %v2908_v51  ;;  %v2798_v56 = vld [vmem:[#allocation2 + $0x3c] sm:$0xf]  ;;  %5478 = vmatprep.mubr.bf16.mxu0 %v7123_v50  ;;  %v8230_v43 = vpop.f32.mrf.mxu1 }
 0x1c1   : > { %v2305_v3 = vsel %vm7549_vm9, %v2300_v49, %v2304_v55  ;;  %v2310_v5 = vrot.slane %v2309_v4, 4  ;;  %2716 = vst [vmem:[#allocation3 + $0x374] sm:$0xf] %v2635_v23  ;;  %2764 = vst [vmem:[#allocation3 + $0x114] sm:$0xf] %v2732_v44  ;;  %v2910_v1 = vshrl.u32 %v2798_v56, 16  ;;  %5479 = vmatmul.mubr.bf16.gmra.mxu0 %v7127_v28  ;;  %v2638_v6 = vsel %vm7765_vm14, %v2636_v53, %v2637_v18  ;;  %v8232_v49 = vpop.f32.mrf.mxu0 }
 0x1c2   : > { %v2799_v54 = vld [vmem:[#allocation2 + $0x40] sm:$0xf]  ;;  %v2800_v2 = vld [vmem:[#allocation2 + $0x44] sm:$0x1]  ;;  %2444 = vst [vmem:[#allocation3 + $0x370] sm:$0xf] %v2305_v3 }
 0x1c3   : > { %v2913_v60 = vshll.u32 %v2798_v56, 16  ;;  %v2919_v22 = vshll.u32 %v2799_v54, 16  ;;  %v2923_v16 = vshrl.u32 %v2799_v54, 16  ;;  %v2315_v24 = vsel %vm7549_vm9, %v2310_v5, %v2314_v27  ;;  %2717 = vst [vmem:[#allocation3 + $0x398] sm:$0xf] %v2638_v6  ;;  %v8234_v27 = vpop.f32.mrf.mxu1 }
 0x1c4   : > { %v2912_v55 = vrot.slane %v2910_v1, 4  ;;  %v2929_v37 = vshll.u32 %v2800_v2, 16  ;;  %v1995_v7 = vld [vmem:[#allocation2 + $0xa8] sm:$0xf]  ;;  %v1996_v35 = vld [vmem:[#allocation2 + $0xac] sm:$0xf] }
 0x1c5   : > { %2445 = vst [vmem:[#allocation3 + $0x394] sm:$0xf] %v2315_v24  ;;  %v2915_v48 = vrot.slane %v2913_v60, 5  ;;  %v2921_v50 = vrot.slane %v2919_v22, 5  ;;  %v2925_v51 = vrot.slane %v2923_v16, 4  ;;  %v2317_v4 = vshrl.u32 %v1995_v7, 16  ;;  %v8236_v22 = vpop.f32.mrf.mxu1 }
 0x1c6   : > { %v1997_v28 = vld [vmem:[#allocation2 + $0xb0] sm:$0x1]  ;;  %v2931_v18 = vrot.slane %v2929_v37, 5  ;;  %v2320_v23 = vshll.u32 %v1995_v7, 16  ;;  %v2326_v53 = vshll.u32 %v1996_v35, 16  ;;  %v2330_v5 = vshrl.u32 %v1996_v35, 16  ;;  %v8238_v7 = vpop.f32.mrf.mxu0 }
 0x1c7   : > { %v2491_v44 = vld [vmem:[#allocation2 + $0xa8] sm:$0xe]  ;;  %v2916_v56 = vor.u32 %v2915_v48, %v2912_v55  ;;  %v2926_v3 = vor.u32 %v2925_v51, %v2921_v50  ;;  %v2336_v54 = vshll.u32 %v1997_v28, 16  ;;  %v2492_v2 = vld [vmem:[#allocation2 + $0xac] sm:$0xf]  ;;  %v2319_v60 = vrot.slane %v2317_v4, 4  ;;  %v8240_v35 = vpop.f32.mrf.mxu1 }
 0x1c8   : > { %v7125_v1 = vld [vmem:[#allocation3 + $0xac] ss:$36 sps:$4 sm:$0xff]   ;;  %v2322_v39 = vrot.slane %v2320_v23, 5  ;;  %v2328_v37 = vrot.slane %v2326_v53, 5  ;;  %v2493_v12 = vld [vmem:[#allocation2 + $0xb0] sm:$0x1] }
 0x1c9   : > { %v7128_v6 = vld [vmem:[#allocation3 + $0xa8] ss:$36 sps:$4 sm:$0xff]   ;;  %v2917_v16 = vrot.slane %v2916_v56, 4  ;;  %v2927_v24 = vrot.slane %v2926_v3, 4  ;;  %5567 = vmatprep.mubr.bf16.mxu1 %v7125_v1  ;;  %v2332_v61 = vrot.slane %v2330_v5, 4  ;;  %v2338_v62 = vrot.slane %v2336_v54, 5  ;;  %v8248_v1 = vpop.f32.mrf.mxu1 }
 0x1ca   : > { %v6044_v55 = vrot.slane %v2491_v44, 9  ;;  %v2641_v48 = vrot.slane %v2492_v2, 5  ;;  %5568 = vmatmul.mubr.bf16.gmra.mxu1 %v7128_v6  ;;  %v2323_v4 = vor.u32 %v2322_v39, %v2319_v60  ;;  %v2644_v23 = vrot.slane %v2493_v12, 5  ;;  %v2733_v53 = vld [vmem:[#allocation2 + $0x48] sm:$0xf]  ;;  %v8255_v60 = vpop.f32.mrf.mxu0 }
 0x1cb   : > { %v2922_v51 = vsel %vm7549_vm9, %v2917_v16, %v2921_v50  ;;  %v2932_v28 = vsel %vm7549_vm9, %v2927_v24, %v2931_v18  ;;  %v2734_v56 = vld [vmem:[#allocation2 + $0x4c] sm:$0xf]  ;;  %v2333_v54 = vor.u32 %v2332_v61, %v2328_v37  ;;  %2765 = vst [vmem:[#allocation3 + $0x138] sm:$0xf] %v2733_v53  ;;  %v8253_v12 = vadd.f32 %v8055_v46, %v8050_v32  ;;  %v2801_v18 = vld [vmem:[#allocation2 + $0x48] sm:$0xf]  ;;  %v8263_v53 = vpop.f32.mrf.mxu1 }
 0x1cc   : > { %v7130_v3 = vld [vmem:[#allocation3 + $0x374] ss:$36 sps:$4 sm:$0xff]   ;;  %3259 = vst [vmem:[#allocation3 + $0xf4] sm:$0xf] %v2922_v51  ;;  %3260 = vst [vmem:[#allocation3 + $0x118] sm:$0xf] %v2932_v28  ;;  %v2642_v44 = vsel %vm7765_vm14, %v6044_v55, %v2641_v48 }
 0x1cd   : > { %v7134_v5 = vld [vmem:[#allocation3 + $0x370] ss:$36 sps:$4 sm:$0xff]   ;;  %v2643_v2 = vrot.slane %v2641_v48, 4  ;;  %2766 = vst [vmem:[#allocation3 + $0x15c] sm:$0xf] %v2734_v56  ;;  %v2324_v39 = vrot.slane %v2323_v4, 4  ;;  %5486 = vmatprep.mubr.bf16.mxu0 %v7130_v3  ;;  %v8261_v4 = vpop.f32.mrf.mxu0 }
 0x1ce   : > { %2718 = vst [vmem:[#allocation3 + $0x3bc] sm:$0xf] %v2642_v44  ;;  %v2802_v6 = vld [vmem:[#allocation2 + $0x4c] sm:$0xf]  ;;  %v2334_v61 = vrot.slane %v2333_v54, 4  ;;  %v2934_v55 = vshrl.u32 %v2801_v18, 16  ;;  %5487 = vmatmul.mubr.bf16.gmra.mxu0 %v7134_v5  ;;  %v8269_v5 = vadd.f32 %v8092_v40, %v8084_v15  ;;  %v8275_v15 = vadd.f32 %v8132_v30, %v8125_v20 }
 0x1cf   : > { %v2645_v16 = vsel %vm7765_vm14, %v2643_v2, %v2644_v23  ;;  %v2803_v24 = vld [vmem:[#allocation2 + $0x50] sm:$0x1]  ;;  %v2937_v48 = vshll.u32 %v2801_v18, 16  ;;  %v2329_v51 = vsel %vm7549_vm9, %v2324_v39, %v2328_v37  ;;  %v2943_v32 = vshll.u32 %v2802_v6, 16  ;;  %v1998_v54 = vld [vmem:[#allocation2 + $0xb4] sm:$0xf] }
 0x1d0   : > { %2719 = vst [vmem:[#allocation3 + $0x3e0] sm:$0xf] %v2645_v16  ;;  %v2947_v46 = vshrl.u32 %v2802_v6, 16  ;;  %v2953_v28 = vshll.u32 %v2803_v24, 16  ;;  %v2339_v56 = vsel %vm7549_vm9, %v2334_v61, %v2338_v62  ;;  %2446 = vst [vmem:[#allocation3 + $0x3b8] sm:$0xf] %v2329_v51  ;;  %v8271_v6 = vpop.f32.mrf.mxu0  ;;  %v8288_v20 = vadd.f32 %v8166_v52, %v8160_v47 }
 0x1d1   : > { %v2936_v23 = vrot.slane %v2934_v55, 4  ;;  %v2939_v3 = vrot.slane %v2937_v48, 5  ;;  %2447 = vst [vmem:[#allocation3 + $0x3dc] sm:$0xf] %v2339_v56  ;;  %v2945_v37 = vrot.slane %v2943_v32, 5  ;;  %v2341_v18 = vshrl.u32 %v1998_v54, 16  ;;  %v8279_v32 = vpop.f32.mrf.mxu1 }
 0x1d2   : > { %v2949_v44 = vrot.slane %v2947_v46, 4  ;;  %v2955_v2 = vrot.slane %v2953_v28, 5  ;;  %v1999_v39 = vld [vmem:[#allocation2 + $0xb8] sm:$0xf]  ;;  %v2000_v24 = vld [vmem:[#allocation2 + $0xbc] sm:$0x1]  ;;  %v8277_v40 = vpop.f32.mrf.mxu0  ;;  %v8292_v30 = vadd.f32 %v8200_v26, %v8186_v45 }
 0x1d3   : > { %v2940_v16 = vor.u32 %v2939_v3, %v2936_v23  ;;  %v2344_v50 = vshll.u32 %v1998_v54, 16  ;;  %v2350_v62 = vshll.u32 %v1999_v39, 16  ;;  %v2354_v61 = vshrl.u32 %v1999_v39, 16  ;;  %v7132_v55 = vld [vmem:[#allocation3 + $0xf4] ss:$36 sps:$4 sm:$0xff]  }
 0x1d4   : > { %v2950_v48 = vor.u32 %v2949_v44, %v2945_v37  ;;  %v2343_v51 = vrot.slane %v2341_v18, 4  ;;  %v2360_v36 = vshll.u32 %v2000_v24, 16  ;;  %v7135_v46 = vld [vmem:[#allocation3 + $0xf0] ss:$36 sps:$4 sm:$0xff]   ;;  %5575 = vmatprep.mubr.bf16.mxu1 %v7132_v55  ;;  %v8284_v54 = vld [vmem:[%s9004_s4] ss:$0 sm:$0xff]  ;;  %v8300_v42 = vpop.f32.mrf.mxu0 }
 0x1d5   : > { %v2941_v28 = vrot.slane %v2940_v16, 4  ;;  %v2346_v56 = vrot.slane %v2344_v50, 5  ;;  %v2352_v23 = vrot.slane %v2350_v62, 5  ;;  %v2356_v3 = vrot.slane %v2354_v61, 4  ;;  %v2494_v39 = vld [vmem:[#allocation2 + $0xb4] sm:$0xe]  ;;  %5576 = vmatmul.mubr.bf16.gmra.mxu1 %v7135_v46 }
 0x1d6   : > { %v2951_v44 = vrot.slane %v2950_v48, 4  ;;  %v2495_v18 = vld [vmem:[#allocation2 + $0xb8] sm:$0xf]  ;;  %v8296_v50 = vadd.f32 %v8218_v25, %v8210_v29  ;;  %v2496_v61 = vld [vmem:[#allocation2 + $0xbc] sm:$0x1]  ;;  %v6045_v55 = vrot.slane %v2494_v39, 9  ;;  %v8304_v25 = vpop.f32.mrf.mxu1  ;;  %v8349_v13 = vadd.f32 %v8104_v19, %v8284_v54 }
 0x1d7   : > { %v2946_v16 = vsel %vm7549_vm9, %v2941_v28, %v2945_v37  ;;  %v2347_v24 = vor.u32 %v2346_v56, %v2343_v51  ;;  %v2357_v62 = vor.u32 %v2356_v3, %v2352_v23  ;;  %v2735_v48 = vld [vmem:[#allocation2 + $0x54] sm:$0xf]  ;;  %v2362_v52 = vrot.slane %v2360_v36, 5  ;;  %v2736_v29 = vld [vmem:[#allocation2 + $0x58] sm:$0xf] }
 0x1d8   : > { %v2956_v47 = vsel %vm7549_vm9, %v2951_v44, %v2955_v2  ;;  %3261 = vst [vmem:[#allocation3 + $0x13c] sm:$0xf] %v2946_v16  ;;  %v2648_v45 = vrot.slane %v2495_v18, 5  ;;  %v2651_v26 = vrot.slane %v2496_v61, 5  ;;  %2767 = vst [vmem:[#allocation3 + $0x180] sm:$0xf] %v2735_v48  ;;  %v5071_v37 = vadd.f32 %v8034_v59, %v8284_v54  ;;  %v8322_v18 = vpop.f32.mrf.mxu0  ;;  %v8324_v16 = vpop.f32.mrf.mxu1 }
 0x1d9   : > { %v8310_v51 = vadd.f32 %v8253_v12, %v8284_v54  ;;  %v7136_v46 = vld [vmem:[#allocation3 + $0x3bc] ss:$36 sps:$4 sm:$0xff]   ;;  %3262 = vst [vmem:[#allocation3 + $0x160] sm:$0xf] %v2956_v47  ;;  %v2348_v56 = vrot.slane %v2347_v24, 4  ;;  %v8314_v36 = vadd.f32 %v8238_v7, %v8232_v49  ;;  %v8318_v2 = vadd.f32 %v8066_v34, %v8284_v54 }
 0x1da   : > { %v7140_v28 = vld [vmem:[#allocation3 + $0x3b8] ss:$36 sps:$4 sm:$0xff]   ;;  %2768 = vst [vmem:[#allocation3 + $0x1a4] sm:$0xf] %v2736_v29  ;;  %v2358_v3 = vrot.slane %v2357_v62, 4  ;;  %v2649_v59 = vsel %vm7765_vm14, %v6045_v55, %v2648_v45  ;;  %v2650_v44 = vrot.slane %v2648_v45, 4  ;;  %5494 = vmatprep.mubr.bf16.mxu0 %v7136_v46  ;;  %v8332_v46 = vpop.f32.mrf.mxu1 }
 0x1db   : > { %v2804_v12 = vld [vmem:[#allocation2 + $0x54] sm:$0xf]  ;;  %v2805_v39 = vld [vmem:[#allocation2 + $0x58] sm:$0xf]  ;;  %v2353_v49 = vsel %vm7549_vm9, %v2348_v56, %v2352_v23  ;;  %2720 = vst [vmem:[#allocation3 + $0x404] sm:$0xf] %v2649_v59  ;;  %5495 = vmatmul.mubr.bf16.gmra.mxu0 %v7140_v28 }
 0x1dc   : > { %v2806_v7 = vld [vmem:[#allocation2 + $0x5c] sm:$0x1]  ;;  %v2958_v24 = vshrl.u32 %v2804_v12, 16  ;;  %v2961_v34 = vshll.u32 %v2804_v12, 16  ;;  %v2967_v61 = vshll.u32 %v2805_v39, 16  ;;  %v2363_v62 = vsel %vm7549_vm9, %v2358_v3, %v2362_v52 }
 0x1dd   : > { %2448 = vst [vmem:[#allocation3 + $0x400] sm:$0xf] %v2353_v49  ;;  %v2652_v55 = vsel %vm7765_vm14, %v2650_v44, %v2651_v26  ;;  %v2971_v48 = vshrl.u32 %v2805_v39, 16  ;;  %v2977_v47 = vshll.u32 %v2806_v7, 16  ;;  %v515_v45 = vld [vmem:[#allocation2 + $0xc8] sm:$0x1]  ;;  %v8336_v39 = vpop.f32.mrf.mxu0 }
 0x1de   : > { %v2001_v29 = vld [vmem:[#allocation2 + $0xc0] sm:$0xf]  ;;  %2449 = vst [vmem:[#allocation3 + $0x424] sm:$0xf] %v2363_v62  ;;  %2721 = vst [vmem:[#allocation3 + $0x428] sm:$0xf] %v2652_v55 }
 0x1df   : > { %v2960_v23 = vrot.slane %v2958_v24, 4  ;;  %v2963_v56 = vrot.slane %v2961_v34, 5  ;;  %v2969_v59 = vrot.slane %v2967_v61, 5  ;;  %v516_v28 = vsel %vm7506_vm4, 0, %v515_v45  ;;  %v2002_v12 = vld [vmem:[#allocation2 + $0xc4] sm:$0xf]  ;;  %v8338_v24 = vpop.f32.mrf.mxu1 }
 0x1e0   : > { %v2973_v52 = vrot.slane %v2971_v48, 4  ;;  %v2979_v3 = vrot.slane %v2977_v47, 5  ;;  %517 = vst [vmem:[#allocation2 + $0xc8] sm:$0x1] %v516_v28  ;;  %v2365_v49 = vshrl.u32 %v2001_v29, 16  ;;  %v2368_v26 = vshll.u32 %v2001_v29, 16 }
 0x1e1   : > { %v2497_v44 = vld [vmem:[#allocation2 + $0xc0] sm:$0xe]  ;;  %v2964_v7 = vor.u32 %v2963_v56, %v2960_v23  ;;  %v2374_v21 = vshll.u32 %v2002_v12, 16  ;;  %v2378_v14 = vshrl.u32 %v2002_v12, 16  ;;  %v2498_v62 = vld [vmem:[#allocation2 + $0xc4] sm:$0xf]  ;;  %v8342_v45 = vadd.f32 %v8269_v5, %v8284_v54 }
 0x1e2   : > { %v6046_v55 = vrot.slane %v2497_v44, 9  ;;  %v7138_v34 = vld [vmem:[#allocation3 + $0x13c] ss:$36 sps:$4 sm:$0xff]   ;;  %v2974_v48 = vor.u32 %v2973_v52, %v2969_v59  ;;  %v2367_v47 = vrot.slane %v2365_v49, 4  ;;  %v8345_v29 = vadd.f32 %v8208_v10, %v5071_v37  ;;  %v2737_v12 = vld [vmem:[#allocation2 + $0x60] sm:$0xf]  ;;  %v8355_v10 = vpop.f32.mrf.mxu0 }
 0x1e3   : > { %v7141_v61 = vld [vmem:[#allocation3 + $0x138] ss:$36 sps:$4 sm:$0xff]   ;;  %v2965_v28 = vrot.slane %v2964_v7, 4  ;;  %v2370_v57 = vrot.slane %v2368_v26, 5  ;;  %v2376_v23 = vrot.slane %v2374_v21, 5  ;;  %v2380_v56 = vrot.slane %v2378_v14, 4  ;;  %5583 = vmatprep.mubr.bf16.mxu1 %v7138_v34  ;;  %v8363_v7 = vpop.f32.mrf.mxu1 }
 0x1e4   : > { %v2975_v44 = vrot.slane %v2974_v48, 4  ;;  %v2655_v33 = vrot.slane %v2498_v62, 5  ;;  %v2738_v63 = vld [vmem:[#allocation2 + $0x64] sm:$0xf]  ;;  %2769 = vst [vmem:[#allocation3 + $0x1c8] sm:$0xf] %v2737_v12  ;;  %v8353_v52 = vadd.f32 %v8296_v50, %v8310_v51  ;;  %5584 = vmatmul.mubr.bf16.gmra.mxu1 %v7141_v61  ;;  %v8361_v21 = vadd.f32 %v8275_v15, %v8284_v54 }
 0x1e5   : > { %v2807_v5 = vld [vmem:[#allocation2 + $0x60] sm:$0xf]  ;;  %v2970_v14 = vsel %vm7549_vm9, %v2965_v28, %v2969_v59  ;;  %v2371_v19 = vor.u32 %v2370_v57, %v2367_v47  ;;  %2770 = vst [vmem:[#allocation3 + $0x1ec] sm:$0xf] %v2738_v63  ;;  %v2808_v37 = vld [vmem:[#allocation2 + $0x64] sm:$0xf]  ;;  %v2381_v34 = vor.u32 %v2380_v56, %v2376_v23  ;;  %v8371_v15 = vadd.f32 %v8261_v4, %v8255_v60  ;;  %v8381_v4 = vpop.f32.mrf.mxu0 }
 0x1e6   : > { %v2809_v49 = vld [vmem:[#allocation2 + $0x68] sm:$0x1]  ;;  %v2982_v26 = vshrl.u32 %v2807_v5, 16  ;;  %v7143_v62 = vld [vmem:[#allocation3 + $0x404] ss:$36 sps:$4 sm:$0xff]   ;;  %v2980_v50 = vsel %vm7549_vm9, %v2975_v44, %v2979_v3  ;;  %v2656_v59 = vsel %vm7765_vm14, %v6046_v55, %v2655_v33  ;;  %v2985_v48 = vshll.u32 %v2807_v5, 16 }
 0x1e7   : > { %3263 = vst [vmem:[#allocation3 + $0x184] sm:$0xf] %v2970_v14  ;;  %v7147_v51 = vld [vmem:[#allocation3 + $0x400] ss:$36 sps:$4 sm:$0xff]   ;;  %3264 = vst [vmem:[#allocation3 + $0x1a8] sm:$0xf] %v2980_v50  ;;  %v8375_v47 = vadd.f32 %v8150_v38, %v8284_v54  ;;  %5502 = vmatprep.mubr.bf16.mxu0 %v7143_v62  ;;  %v8389_v14 = vpop.f32.mrf.mxu1  ;;  %v8393_v50 = vpop.f32.mrf.mxu0 }
 0x1e8   : > { %v1051_v63 = vld [vmem:[#allocation2 + $0xc8] sm:$0x1]  ;;  %v2372_v57 = vrot.slane %v2371_v19, 4  ;;  %2722 = vst [vmem:[#allocation3 + $0x44c] sm:$0xf] %v2656_v59  ;;  %v2984_v61 = vrot.slane %v2982_v26, 4  ;;  %5503 = vmatmul.mubr.bf16.gmra.mxu0 %v7147_v51 }
 0x1e9   : > { %v9047_v3 = vrot.slane %v8059_v58, 4  ;;  %v2991_v28 = vshll.u32 %v2808_v37, 16  ;;  %v2995_v56 = vshrl.u32 %v2808_v37, 16  ;;  %v3001_v60 = vshll.u32 %v2809_v49, 16  ;;  %v2739_v5 = vld [vmem:[#allocation2 + $0x6c] sm:$0xf] }
 0x1ea   : > { %v2377_v12 = vsel %vm7549_vm9, %v2372_v57, %v2376_v23  ;;  %v8385_v44 = vrot.slane %v2655_v33, 4  ;;  %v2987_v38 = vrot.slane %v2985_v48, 5  ;;  %v6455_v58 = vadd.f32 %v8230_v43, %v8224_v17  ;;  %v2740_v62 = vld [vmem:[#allocation2 + $0x70] sm:$0xf]  ;;  %2771 = vst [vmem:[#allocation3 + $0x210] sm:$0xf] %v2739_v5 }
 0x1eb   : > { %v1052_v55 = vsel %vm7501_vm2, %v9047_v3, %v1051_v63  ;;  %v8391_v19 = vrot.slane %v2381_v34, 4  ;;  %2450 = vst [vmem:[#allocation3 + $0x448] sm:$0xf] %v2377_v12  ;;  %v2993_v37 = vrot.slane %v2991_v28, 5  ;;  %v2997_v49 = vrot.slane %v2995_v56, 4 }
 0x1ec   : > { %1053 = vst [vmem:[#allocation2 + $0xc8] sm:$0x1] %v1052_v55  ;;  %v3003_v26 = vrot.slane %v3001_v60, 5  ;;  %v2988_v23 = vor.u32 %v2987_v38, %v2984_v61  ;;  %2772 = vst [vmem:[#allocation3 + $0x234] sm:$0xf] %v2740_v62  ;;  %v8396_v63 = vadd.f32 %v6455_v58, %v8318_v2  ;;  %v6458_v17 = vadd.f32 %v8236_v22, %v8234_v27  ;;  %v8404_v61 = vpop.f32.mrf.mxu0  ;;  %v8410_v27 = vpop.f32.mrf.mxu1 }
 0x1ed   : > { %v2810_v33 = vld [vmem:[#allocation2 + $0x6c] sm:$0xf]  ;;  %v2811_v51 = vld [vmem:[#allocation2 + $0x70] sm:$0xf]  ;;  %v2812_v59 = vld [vmem:[#allocation2 + $0x74] sm:$0x1]  ;;  %v8402_v43 = vadd.f32 %v8322_v18, %v8300_v42  ;;  %v2998_v34 = vor.u32 %v2997_v49, %v2993_v37  ;;  %v8408_v56 = vadd.f32 %v8288_v20, %v8284_v54  ;;  %v8414_v38 = vadd.f32 %v8182_v9, %v8284_v54 }
 0x1ee   : > { %v3006_v57 = vshrl.u32 %v2810_v33, 16  ;;  %v3009_v48 = vshll.u32 %v2810_v33, 16  ;;  %v3015_v3 = vshll.u32 %v2811_v51, 16  ;;  %v3285_v55 = vld [vmem:[#allocation2 + $0x18] sm:$0xe]  ;;  %v2989_v28 = vrot.slane %v2988_v23, 4 }
 0x1ef   : > { %v3019_v2 = vshrl.u32 %v2811_v51, 16  ;;  %v3025_v60 = vshll.u32 %v2812_v59, 16  ;;  %v3286_v12 = vld [vmem:[#allocation2 + $0x1c] sm:$0xf]  ;;  %v2999_v18 = vrot.slane %v2998_v34, 4  ;;  %v8417_v5 = vadd.f32 %v6458_v17, %v8342_v45 }
 0x1f0   : > { %v7145_v22 = vld [vmem:[#allocation3 + $0x184] ss:$36 sps:$4 sm:$0xff]   ;;  %v6461_v58 = vadd.f32 %v8248_v1, %v8240_v35  ;;  %v2994_v20 = vsel %vm7549_vm9, %v2989_v28, %v2993_v37  ;;  %v3008_v49 = vrot.slane %v3006_v57, 4  ;;  %v3011_v62 = vrot.slane %v3009_v48, 5  ;;  %v8428_v35 = vpop.f32.mrf.mxu0  ;;  %v8430_v28 = vpop.f32.mrf.mxu1 }
 0x1f1   : > { %v7148_v42 = vld [vmem:[#allocation3 + $0x180] ss:$36 sps:$4 sm:$0xff]   ;;  %v3017_v23 = vrot.slane %v3015_v3, 5  ;;  %v3287_v33 = vld [vmem:[#allocation2 + $0x20] sm:$0x1]  ;;  %5591 = vmatprep.mubr.bf16.mxu1 %v7145_v22  ;;  %v3004_v9 = vsel %vm7549_vm9, %v2999_v18, %v3003_v26  ;;  %v3021_v34 = vrot.slane %v3019_v2, 4 }
 0x1f2   : > { %3265 = vst [vmem:[#allocation3 + $0x1cc] sm:$0xf] %v2994_v20  ;;  %v3027_v45 = vrot.slane %v3025_v60, 5  ;;  %v8426_v17 = vadd.f32 %v6461_v58, %v8349_v13  ;;  %5592 = vmatmul.mubr.bf16.gmra.mxu1 %v7148_v42  ;;  %3266 = vst [vmem:[#allocation3 + $0x1f0] sm:$0xf] %v3004_v9  ;;  %v3012_v57 = vor.u32 %v3011_v62, %v3008_v49  ;;  %v6047_v48 = vrot.slane %v3285_v55, 9 }
 0x1f3   : > { %v2003_v51 = vld [vmem:[#allocation2 + $0xc8] sm:$0x1]  ;;  %v3288_v3 = vld [vmem:[#allocation2 + $0x24] sm:$0xe]  ;;  %v3022_v22 = vor.u32 %v3021_v34, %v3017_v23  ;;  %v3383_v8 = vrot.slane %v3286_v12, 5  ;;  %v3386_v26 = vrot.slane %v3287_v33, 5  ;;  %v8434_v13 = vadd.f32 %v8292_v30, %v8284_v54 }
 0x1f4   : > { %v2499_v59 = vld [vmem:[#allocation2 + $0xc8] sm:$0x1]  ;;  %v2384_v1 = vshll.u32 %v2003_v51, 16  ;;  %v3290_v2 = vld [vmem:[#allocation2 + $0x2c] sm:$0x1]  ;;  %v3013_v58 = vrot.slane %v3012_v57, 4 }
 0x1f5   : > { %v2658_v37 = vrot.slane %v2499_v59, 5  ;;  %v3289_v18 = vld [vmem:[#allocation2 + $0x28] sm:$0xf]  ;;  %v6048_v20 = vrot.slane %v3288_v3, 9  ;;  %v2741_v55 = vld [vmem:[#allocation2 + $0x78] sm:$0xf]  ;;  %v3384_v12 = vsel %vm7765_vm14, %v6047_v48, %v3383_v8  ;;  %v8441_v59 = vpop.f32.mrf.mxu0 }
 0x1f6   : > { %v2386_v60 = vrot.slane %v2384_v1, 5  ;;  %v3023_v49 = vrot.slane %v3022_v22, 4  ;;  %v3385_v62 = vrot.slane %v3383_v8, 4  ;;  %v3390_v33 = vrot.slane %v3289_v18, 5  ;;  %v2742_v51 = vld [vmem:[#allocation2 + $0x7c] sm:$0xf] }
 0x1f7   : > { %v2659_v42 = vsel %vm7765_vm14, %v8385_v44, %v2658_v37  ;;  %2773 = vst [vmem:[#allocation3 + $0x258] sm:$0xf] %v2741_v55  ;;  %v3018_v44 = vsel %vm7549_vm9, %v3013_v58, %v3017_v23  ;;  %3525 = vst [vmem:[#allocation3 + $0x20] sm:$0xf] %v3384_v12  ;;  %v3393_v9 = vrot.slane %v3290_v2, 5  ;;  %v8450_v8 = vadd.f32 %v8214_v41, %v8284_v54  ;;  %v8452_v37 = vpop.f32.mrf.mxu1  ;;  %v6390_v12 = vpop.f32.mrf.mxu0 }
 0x1f8   : > { %2723 = vst [vmem:[#allocation3 + $0x470] sm:$0xf] %v2659_v42  ;;  %v2387_v30 = vsel %vm7549_vm9, %v8391_v19, %v2386_v60  ;;  %2774 = vst [vmem:[#allocation3 + $0x27c] sm:$0xf] %v2742_v51  ;;  %v2813_v34 = vld [vmem:[#allocation2 + $0x78] sm:$0xf]  ;;  %v3028_v57 = vsel %vm7549_vm9, %v3023_v49, %v3027_v45  ;;  %v3387_v19 = vsel %vm7765_vm14, %v3385_v62, %v3386_v26 }
 0x1f9   : > { %v2814_v1 = vld [vmem:[#allocation2 + $0x7c] sm:$0xf]  ;;  %2451 = vst [vmem:[#allocation3 + $0x46c] sm:$0xf] %v2387_v30  ;;  %3267 = vst [vmem:[#allocation3 + $0x214] sm:$0xf] %v3018_v44  ;;  %v3391_v23 = vsel %vm7765_vm14, %v6048_v20, %v3390_v33  ;;  %v8460_v42 = vpop.f32.mrf.mxu1  ;;  %v6464_v20 = vadd.f32 %v8279_v32, %v8263_v53  ;;  %v8468_v49 = vadd.f32 %v8393_v50, %v8381_v4 }
 0x1fa   : > { %v3392_v48 = vrot.slane %v3390_v33, 4  ;;  %v2815_v3 = vld [vmem:[#allocation2 + $0x80] sm:$0x1]  ;;  %v3291_v22 = vld [vmem:[#allocation2 + $0x30] sm:$0xe]  ;;  %v3030_v41 = vshrl.u32 %v2813_v34, 16  ;;  %v8474_v53 = vadd.f32 %v8314_v36, %v8284_v54  ;;  %v6467_v36 = vadd.f32 %v8324_v16, %v8304_v25 }
 0x1fb   : > { %3268 = vst [vmem:[#allocation3 + $0x238] sm:$0xf] %v3028_v57  ;;  %3526 = vst [vmem:[#allocation3 + $0x44] sm:$0xf] %v3387_v19  ;;  %v3033_v18 = vshll.u32 %v2813_v34, 16  ;;  %v3039_v2 = vshll.u32 %v2814_v1, 16  ;;  %v8470_v34 = vpop.f32.mrf.mxu1  ;;  %v8477_v32 = vadd.f32 %v6464_v20, %v8361_v21  ;;  %v6470_v20 = vadd.f32 %v8338_v24, %v8332_v46 }
 0x1fc   : > { %3527 = vst [vmem:[#allocation3 + $0x68] sm:$0xf] %v3391_v23  ;;  %v3043_v60 = vshrl.u32 %v2814_v1, 16  ;;  %v7151_v45 = vld [vmem:[#allocation3 + $0x1cc] ss:$36 sps:$4 sm:$0xff]   ;;  %v3394_v26 = vsel %vm7765_vm14, %v3392_v48, %v3393_v9  ;;  %v3049_v55 = vshll.u32 %v2815_v3, 16  ;;  %v8501_v46 = vadd.f32 %v8371_v15, %v8284_v54 }
 0x1fd   : > { %v7154_v58 = vld [vmem:[#allocation3 + $0x1c8] ss:$36 sps:$4 sm:$0xff]   ;;  %3528 = vst [vmem:[#allocation3 + $0x8c] sm:$0xf] %v3394_v26  ;;  %v3032_v62 = vrot.slane %v3030_v41, 4  ;;  %v3035_v33 = vrot.slane %v3033_v18, 5  ;;  %5599 = vmatprep.mubr.bf16.mxu1 %v7151_v45  ;;  %v6481_v41 = vpop.f32.mrf.mxu1  ;;  %v6392_v45 = vpop.f32.mrf.mxu0  ;;  %v6376_v24 = vadd.f32 %v8277_v40, %v8271_v6  ;;  %v6473_v15 = vadd.f32 %v8389_v14, %v8363_v7 }
 0x1fe   : > { %v3041_v51 = vrot.slane %v3039_v2, 5  ;;  %v3045_v30 = vrot.slane %v3043_v60, 4  ;;  %v3292_v44 = vld [vmem:[#allocation2 + $0x34] sm:$0xf]  ;;  %v3293_v1 = vld [vmem:[#allocation2 + $0x38] sm:$0x1]  ;;  %5600 = vmatmul.mubr.bf16.gmra.mxu1 %v7154_v58 }
 0x1ff   : > { %v6049_v9 = vrot.slane %v3291_v22, 9  ;;  %v3397_v57 = vrot.slane %v3292_v44, 5  ;;  %v3036_v4 = vor.u32 %v3035_v33, %v3032_v62  ;;  %v3051_v19 = vrot.slane %v3049_v55, 5  ;;  %v3294_v48 = vld [vmem:[#allocation2 + $0x3c] sm:$0xe]  ;;  %v6483_v33 = vpop.f32.mrf.mxu1 }
 0x200   : > { %v3046_v50 = vor.u32 %v3045_v30, %v3041_v51  ;;  %v3400_v23 = vrot.slane %v3293_v1, 5  ;;  %v3295_v3 = vld [vmem:[#allocation2 + $0x40] sm:$0xf]  ;;  %v3296_v2 = vld [vmem:[#allocation2 + $0x44] sm:$0x1]  ;;  %v6050_v60 = vrot.slane %v3294_v48, 9  ;;  %v8485_v55 = vadd.f32 %v8428_v35, %v8404_v61 }
 0x201   : > { %v3398_v18 = vsel %vm7765_vm14, %v6049_v9, %v3397_v57  ;;  %v3399_v22 = vrot.slane %v3397_v57, 4  ;;  %v7149_v21 = vld [vmem:[#allocation3 + $0x44c] ss:$36 sps:$4 sm:$0xff]   ;;  %v3037_v58 = vrot.slane %v3036_v4, 4  ;;  %v8490_v62 = vadd.f32 %v6390_v12, %v8441_v59  ;;  %v6484_v12 = vpop.f32.mrf.mxu1  ;;  %v6393_v57 = vpop.f32.mrf.mxu0  ;;  %v2818_v7 = vld [vmem:[#allocation2 + $0x8c] sm:$0x1] }
 0x202   : > { %v7153_v26 = vld [vmem:[#allocation3 + $0x448] ss:$36 sps:$4 sm:$0xff]   ;;  %3529 = vst [vmem:[#allocation3 + $0xb0] sm:$0xf] %v3398_v18  ;;  %v7156_v30 = vld [vmem:[#allocation3 + $0x214] ss:$36 sps:$4 sm:$0xff]   ;;  %v8495_v1 = vadd.f32 %v6467_v36, %v8375_v47  ;;  %5510 = vmatprep.mubr.bf16.mxu0 %v7149_v21  ;;  %v8506_v59 = vadd.f32 %v6470_v20, %v8408_v56  ;;  %v8519_v14 = vadd.f32 %v6473_v15, %v8414_v38 }
 0x203   : > { %v3047_v44 = vrot.slane %v3046_v50, 4  ;;  %v3401_v25 = vsel %vm7765_vm14, %v3399_v22, %v3400_v23  ;;  %v3404_v16 = vrot.slane %v3295_v3, 5  ;;  %v7158_v9 = vld [vmem:[#allocation3 + $0x20] ss:$36 sps:$4 sm:$0xff]   ;;  %v7159_v61 = vld [vmem:[#allocation3 + $0x210] ss:$36 sps:$4 sm:$0xff]   ;;  %v3042_v35 = vsel %vm7549_vm9, %v3037_v58, %v3041_v51  ;;  %5511 = vmatmul.mubr.bf16.gmra.mxu0 %v7153_v26  ;;  %5607 = vmatprep.mubr.bf16.mxu1 %v7156_v30  ;;  %v6486_v23 = vpop.f32.mrf.mxu1 }
 0x204   : > { %3530 = vst [vmem:[#allocation3 + $0xd4] sm:$0xf] %v3401_v25  ;;  %3269 = vst [vmem:[#allocation3 + $0x25c] sm:$0xf] %v3042_v35  ;;  %6807 = vmatprep.mubr.bf16.mxu0 %v7158_v9  ;;  %v3407_v40 = vrot.slane %v3296_v2, 5  ;;  %v8514_v50 = vadd.f32 %v6393_v57, %v6392_v45  ;;  %v6479_v22 = vadd.f32 %v8460_v42, %v8452_v37  ;;  %v3073_v58 = vshll.u32 %v2818_v7, 16  ;;  %v6395_v37 = vpop.f32.mrf.mxu0 }
 0x205   : > { %v3052_v47 = vsel %vm7549_vm9, %v3047_v44, %v3051_v19  ;;  %v3405_v51 = vsel %vm7765_vm14, %v6050_v60, %v3404_v16  ;;  %v3406_v6 = vrot.slane %v3404_v16, 4  ;;  %v2743_v56 = vld [vmem:[#allocation2 + $0x84] sm:$0xf]  ;;  %v2744_v4 = vld [vmem:[#allocation2 + $0x88] sm:$0xf]  ;;  %v6476_v19 = vadd.f32 %v8430_v28, %v8410_v27  ;;  %v6487_v25 = vpop.f32.mrf.mxu1 }
 0x206   : > { %3270 = vst [vmem:[#allocation3 + $0x280] sm:$0xf] %v3052_v47  ;;  %3531 = vst [vmem:[#allocation3 + $0xf8] sm:$0xf] %v3405_v51  ;;  %v7160_v48 = vld [vmem:[#allocation3 + $0x68] ss:$36 sps:$4 sm:$0xff]   ;;  %v6482_v2 = vadd.f32 %v6481_v41, %v8470_v34  ;;  %v6485_v60 = vadd.f32 %v6484_v12, %v6483_v33  ;;  %5608 = vmatmul.mubr.bf16.gmra.mxu1 %v7159_v61  ;;  %v5122_v38 = vadd.f32 %v6376_v24, %v8284_v54  ;;  %v6396_v35 = vpop.f32.mrf.mxu0 }
 0x207   : > { %2775 = vst [vmem:[#allocation3 + $0x2a0] sm:$0xf] %v2743_v56  ;;  %2776 = vst [vmem:[#allocation3 + $0x2c4] sm:$0xf] %v2744_v4  ;;  %v2816_v3 = vld [vmem:[#allocation2 + $0x84] sm:$0xf]  ;;  %v3408_v27 = vsel %vm7765_vm14, %v3406_v6, %v3407_v40  ;;  %v8528_v30 = vadd.f32 %v6476_v19, %v8434_v13  ;;  %v8531_v12 = vadd.f32 %v6479_v22, %v8450_v8 }
 0x208   : > { %v2817_v18 = vld [vmem:[#allocation2 + $0x88] sm:$0xf]  ;;  %v3054_v28 = vshrl.u32 %v2816_v3, 16  ;;  %v3057_v36 = vshll.u32 %v2816_v3, 16  ;;  %3532 = vst [vmem:[#allocation3 + $0x11c] sm:$0xf] %v3408_v27  ;;  %v8534_v47 = vadd.f32 %v6482_v2, %v8474_v53  ;;  %v8536_v57 = vadd.f32 %v6396_v35, %v6395_v37  ;;  %v6398_v19 = vpop.f32.mrf.mxu0  ;;  %v6489_v2 = vpop.f32.mrf.mxu1 }
 0x209   : > { %v3063_v45 = vshll.u32 %v2817_v18, 16  ;;  %v3297_v21 = vld [vmem:[#allocation2 + $0x48] sm:$0xe]  ;;  %v3067_v26 = vshrl.u32 %v2817_v18, 16  ;;  %v3298_v20 = vld [vmem:[#allocation2 + $0x4c] sm:$0xf]  ;;  %v8539_v3 = vadd.f32 %v6485_v60, %v8501_v46  ;;  %v6488_v8 = vadd.f32 %v6487_v25, %v6486_v23 }
 0x20a   : > { %v3056_v42 = vrot.slane %v3054_v28, 4  ;;  %v3059_v34 = vrot.slane %v3057_v36, 5  ;;  %v3299_v33 = vld [vmem:[#allocation2 + $0x50] sm:$0x1]  ;;  %v6051_v44 = vrot.slane %v3297_v21, 9  ;;  %v3075_v61 = vrot.slane %v3073_v58, 5  ;;  %v6399_v46 = vpop.f32.mrf.mxu0  ;;  %v6490_v37 = vpop.f32.mrf.mxu1 }
 0x20b   : > { %v3065_v41 = vrot.slane %v3063_v45, 5  ;;  %v7164_v16 = vld [vmem:[#allocation3 + $0xb0] ss:$36 sps:$4 sm:$0xff]   ;;  %v3069_v9 = vrot.slane %v3067_v26, 4  ;;  %v3411_v13 = vrot.slane %v3298_v20, 5  ;;  %v3414_v51 = vrot.slane %v3299_v33, 5  ;;  %6808 = vmatmul.mubr.bf16.vlgmr.msra.gmra.mxu0 %v7160_v48 }
 0x20c   : > { %v3060_v24 = vor.u32 %v3059_v34, %v3056_v42  ;;  %v3300_v15 = vld [vmem:[#allocation2 + $0x54] sm:$0xe]  ;;  %6811 = vmatprep.mubr.bf16.mxu0 %v7164_v16  ;;  %v3301_v22 = vld [vmem:[#allocation2 + $0x58] sm:$0xf]  ;;  %v3302_v48 = vld [vmem:[#allocation2 + $0x5c] sm:$0x1]  ;;  %v6382_v45 = vadd.f32 %v8355_v10, %v8336_v39  ;;  %v8545_v60 = vadd.f32 %v6488_v8, %v5122_v38  ;;  %v8551_v20 = vadd.f32 %v6399_v46, %v6398_v19 }
 0x20d   : > { %v7161_v6 = vld [vmem:[#allocation3 + $0x258] ss:$36 sps:$4 sm:$0xff]   ;;  %v3070_v56 = vor.u32 %v3069_v9, %v3065_v41  ;;  %v6052_v4 = vrot.slane %v3300_v15, 9  ;;  %v3412_v53 = vsel %vm7765_vm14, %v6051_v44, %v3411_v13  ;;  %v3413_v7 = vrot.slane %v3411_v13, 4  ;;  %v2821_v44 = vld [vmem:[#allocation2 + $0x98] sm:$0x1] }
 0x20e   : > { %v7163_v40 = vld [vmem:[#allocation3 + $0x25c] ss:$36 sps:$4 sm:$0xff]   ;;  %v3061_v18 = vrot.slane %v3060_v24, 4  ;;  %3533 = vst [vmem:[#allocation3 + $0x140] sm:$0xf] %v3412_v53  ;;  %v3418_v28 = vrot.slane %v3301_v22, 5  ;;  %v5127_v9 = vadd.f32 %v8402_v43, %v8284_v54  ;;  %v5130_v19 = vadd.f32 %v6382_v45, %v8284_v54 }
 0x20f   : > { %5615 = vmatprep.mubr.bf16.mxu1 %v7163_v40  ;;  %v3071_v27 = vrot.slane %v3070_v56, 4  ;;  %v2745_v36 = vld [vmem:[#allocation2 + $0x90] sm:$0xf]  ;;  %v3415_v26 = vsel %vm7765_vm14, %v3413_v7, %v3414_v51  ;;  %v3421_v58 = vrot.slane %v3302_v48, 5  ;;  %v2746_v38 = vld [vmem:[#allocation2 + $0x94] sm:$0xf] }
 0x210   : > { %5616 = vmatmul.mubr.bf16.gmra.mxu1 %v7161_v6  ;;  %v7165_v23 = vld [vmem:[#allocation3 + $0xf8] ss:$36 sps:$4 sm:$0xff]   ;;  %v3066_v21 = vsel %vm7549_vm9, %v3061_v18, %v3065_v41  ;;  %2777 = vst [vmem:[#allocation3 + $0x2e8] sm:$0xf] %v2745_v36  ;;  %3534 = vst [vmem:[#allocation3 + $0x164] sm:$0xf] %v3415_v26  ;;  %v3419_v39 = vsel %vm7765_vm14, %v6052_v4, %v3418_v28  ;;  %v6491_v41 = vadd.f32 %v6490_v37, %v6489_v2 }
 0x211   : > { %v3076_v42 = vsel %vm7549_vm9, %v3071_v27, %v3075_v61  ;;  %3271 = vst [vmem:[#allocation3 + $0x2a4] sm:$0xf] %v3066_v21  ;;  %v3420_v10 = vrot.slane %v3418_v28, 4  ;;  %v2819_v34 = vld [vmem:[#allocation2 + $0x90] sm:$0xf]  ;;  %v6492_v61 = vpop.f32.mrf.mxu1  ;;  %v3097_v51 = vshll.u32 %v2821_v44, 16  ;;  %v6401_v27 = vpop.f32.mrf.mxu0 }
 0x212   : > { %3272 = vst [vmem:[#allocation3 + $0x2c8] sm:$0xf] %v3076_v42  ;;  %3535 = vst [vmem:[#allocation3 + $0x188] sm:$0xf] %v3419_v39  ;;  %v2820_v33 = vld [vmem:[#allocation2 + $0x94] sm:$0xf]  ;;  %v8562_v8 = vadd.f32 %v6491_v41, %v5127_v9 }
 0x213   : > { %2778 = vst [vmem:[#allocation3 + $0x30c] sm:$0xf] %v2746_v38  ;;  %v3078_v25 = vshrl.u32 %v2819_v34, 16  ;;  %v3081_v16 = vshll.u32 %v2819_v34, 16  ;;  %v3422_v35 = vsel %vm7765_vm14, %v3420_v10, %v3421_v58  ;;  %v3087_v24 = vshll.u32 %v2820_v33, 16  ;;  %v6493_v18 = vpop.f32.mrf.mxu1  ;;  %6812 = vmatmul.mubr.bf16.gmra.mxu0 %v7165_v23  ;;  %v6402_v39 = vpop.f32.mrf.mxu0 }
 0x214   : > { %v3091_v13 = vshrl.u32 %v2820_v33, 16  ;;  %v3303_v15 = vld [vmem:[#allocation2 + $0x60] sm:$0xe]  ;;  %3536 = vst [vmem:[#allocation3 + $0x1ac] sm:$0xf] %v3422_v35  ;;  %v3099_v7 = vrot.slane %v3097_v51, 5  ;;  %v6494_v21 = vadd.f32 %v6493_v18, %v6492_v61  ;;  %v8566_v34 = vadd.f32 %v6402_v39, %v6401_v27 }
 0x215   : > { %v3080_v6 = vrot.slane %v3078_v25, 4  ;;  %v3083_v40 = vrot.slane %v3081_v16, 5  ;;  %v3304_v56 = vld [vmem:[#allocation2 + $0x64] sm:$0xf]  ;;  %v3305_v4 = vld [vmem:[#allocation2 + $0x68] sm:$0x1]  ;;  %v6404_v9 = vpop.f32.mrf.mxu0 }
 0x216   : > { %v3089_v43 = vrot.slane %v3087_v24, 5  ;;  %v3093_v53 = vrot.slane %v3091_v13, 4  ;;  %v6053_v22 = vrot.slane %v3303_v15, 9  ;;  %v3306_v2 = vld [vmem:[#allocation2 + $0x6c] sm:$0xe]  ;;  %v3425_v28 = vrot.slane %v3304_v56, 5  ;;  %v6495_v56 = vpop.f32.mrf.mxu1 }
 0x217   : > { %v3084_v48 = vor.u32 %v3083_v40, %v3080_v6  ;;  %v3428_v36 = vrot.slane %v3305_v4, 5  ;;  %v3307_v46 = vld [vmem:[#allocation2 + $0x70] sm:$0xf]  ;;  %v3308_v58 = vld [vmem:[#allocation2 + $0x74] sm:$0x1]  ;;  %v6054_v37 = vrot.slane %v3306_v2, 9  ;;  %v8568_v41 = vadd.f32 %v6494_v21, %v5130_v19  ;;  %v6405_v40 = vpop.f32.mrf.mxu0 }
 0x218   : > { %v3094_v26 = vor.u32 %v3093_v53, %v3089_v43  ;;  %v3432_v42 = vrot.slane %v3307_v46, 5  ;;  %v2747_v45 = vld [vmem:[#allocation2 + $0x9c] sm:$0xf]  ;;  %v3426_v23 = vsel %vm7765_vm14, %v6053_v22, %v3425_v28  ;;  %v3427_v35 = vrot.slane %v3425_v28, 4  ;;  %v2748_v6 = vld [vmem:[#allocation2 + $0xa0] sm:$0xf]  ;;  %v6496_v21 = vpop.f32.mrf.mxu1 }
 0x219   : > { %v7169_v10 = vld [vmem:[#allocation3 + $0x140] ss:$36 sps:$4 sm:$0xff]   ;;  %v3085_v38 = vrot.slane %v3084_v48, 4  ;;  %2779 = vst [vmem:[#allocation3 + $0x330] sm:$0xf] %v2747_v45  ;;  %v3435_v13 = vrot.slane %v3308_v58, 5  ;;  %v8580_v22 = vadd.f32 %v6405_v40, %v6404_v9  ;;  %v6559_v46 = vpop.f32.mrf.mxu0  ;;  %v6497_v45 = vadd.f32 %v6496_v21, %v6495_v56 }
 0x21a   : > { %v7166_v33 = vld [vmem:[#allocation3 + $0x2a0] ss:$36 sps:$4 sm:$0xff]   ;;  %v3095_v25 = vrot.slane %v3094_v26, 4  ;;  %3537 = vst [vmem:[#allocation3 + $0x1d0] sm:$0xf] %v3426_v23  ;;  %v3433_v16 = vsel %vm7765_vm14, %v6054_v37, %v3432_v42  ;;  %6815 = vmatprep.mubr.bf16.mxu0 %v7169_v10  ;;  %v3434_v24 = vrot.slane %v3432_v42, 4  ;;  %v3429_v4 = vsel %vm7765_vm14, %v3427_v35, %v3428_v36 }
 0x21b   : > { %v7168_v44 = vld [vmem:[#allocation3 + $0x2a4] ss:$36 sps:$4 sm:$0xff]   ;;  %v3090_v61 = vsel %vm7549_vm9, %v3085_v38, %v3089_v43  ;;  %3539 = vst [vmem:[#allocation3 + $0x218] sm:$0xf] %v3433_v16  ;;  %2780 = vst [vmem:[#allocation3 + $0x354] sm:$0xf] %v2748_v6  ;;  %v5135_v42 = vadd.f32 %v8468_v49, %v8284_v54 }
 0x21c   : > { %5623 = vmatprep.mubr.bf16.mxu1 %v7168_v44  ;;  %v7170_v51 = vld [vmem:[#allocation3 + $0x188] ss:$36 sps:$4 sm:$0xff]   ;;  %v3100_v15 = vsel %vm7549_vm9, %v3095_v25, %v3099_v7  ;;  %3273 = vst [vmem:[#allocation3 + $0x2ec] sm:$0xf] %v3090_v61  ;;  %v3436_v19 = vsel %vm7765_vm14, %v3434_v24, %v3435_v13  ;;  %v2822_v18 = vld [vmem:[#allocation2 + $0x9c] sm:$0xf]  ;;  %v6560_v44 = vpop.f32.mrf.mxu0  ;;  %v6498_v25 = vpop.f32.mrf.mxu1 }
 0x21d   : > { %5624 = vmatmul.mubr.bf16.gmra.mxu1 %v7166_v33  ;;  %3274 = vst [vmem:[#allocation3 + $0x310] sm:$0xf] %v3100_v15  ;;  %v2823_v43 = vld [vmem:[#allocation2 + $0xa0] sm:$0xf]  ;;  %v2824_v53 = vld [vmem:[#allocation2 + $0xa4] sm:$0x1]  ;;  %6816 = vmatmul.mubr.bf16.gmra.mxu0 %v7170_v51  ;;  %v6561_v6 = vadd.f32 %v6560_v44, %v6559_v46 }
 0x21e   : > { %3538 = vst [vmem:[#allocation3 + $0x1f4] sm:$0xf] %v3429_v4  ;;  %3540 = vst [vmem:[#allocation3 + $0x23c] sm:$0xf] %v3436_v19  ;;  %v3102_v7 = vshrl.u32 %v2822_v18, 16  ;;  %v3105_v2 = vshll.u32 %v2822_v18, 16  ;;  %v6562_v40 = vpop.f32.mrf.mxu0  ;;  %v8584_v4 = vadd.f32 %v6497_v45, %v5135_v42  ;;  %v6499_v54 = vpop.f32.mrf.mxu1 }
 0x21f   : > { %v3111_v27 = vshll.u32 %v2823_v43, 16  ;;  %v3115_v48 = vshrl.u32 %v2823_v43, 16  ;;  %v3309_v28 = vld [vmem:[#allocation2 + $0x78] sm:$0xe]  ;;  %v3121_v36 = vshll.u32 %v2824_v53, 16  ;;  %v6500_v21 = vadd.f32 %v6499_v54, %v6498_v25 }
 0x220   : > { %v3310_v26 = vld [vmem:[#allocation2 + $0x7c] sm:$0xf]  ;;  %v3311_v58 = vld [vmem:[#allocation2 + $0x80] sm:$0x1]  ;;  %v6055_v37 = vrot.slane %v3309_v28, 9  ;;  %v3104_v39 = vrot.slane %v3102_v7, 4  ;;  %v8596_v28 = vadd.f32 %v6561_v6, %v8345_v29  ;;  %v6563_v46 = vpop.f32.mrf.mxu0 }
 0x221   : > { %v3107_v10 = vrot.slane %v3105_v2, 5  ;;  %v3113_v38 = vrot.slane %v3111_v27, 5  ;;  %v3117_v23 = vrot.slane %v3115_v48, 4  ;;  %v3312_v33 = vld [vmem:[#allocation2 + $0x84] sm:$0xe]  ;;  %v3123_v16 = vrot.slane %v3121_v36, 5 }
 0x222   : > { %v3439_v9 = vrot.slane %v3310_v26, 5  ;;  %v3442_v61 = vrot.slane %v3311_v58, 5  ;;  %v6056_v35 = vrot.slane %v3312_v33, 9  ;;  %v3313_v51 = vld [vmem:[#allocation2 + $0x88] sm:$0xf] }
 0x223   : > { %v3108_v24 = vor.u32 %v3107_v10, %v3104_v39  ;;  %v3118_v13 = vor.u32 %v3117_v23, %v3113_v38  ;;  %v3314_v15 = vld [vmem:[#allocation2 + $0x8c] sm:$0x1]  ;;  %v3446_v19 = vrot.slane %v3313_v51, 5  ;;  %v2749_v43 = vld [vmem:[#allocation2 + $0xa8] sm:$0xf]  ;;  %v6565_v10 = vpop.f32.mrf.mxu0 }
 0x224   : > { %v3440_v49 = vsel %vm7765_vm14, %v6055_v37, %v3439_v9  ;;  %v3441_v56 = vrot.slane %v3439_v9, 4  ;;  %v3449_v18 = vrot.slane %v3314_v15, 5  ;;  %v7171_v53 = vld [vmem:[#allocation3 + $0x2e8] ss:$36 sps:$4 sm:$0xff]   ;;  %2781 = vst [vmem:[#allocation3 + $0x378] sm:$0xf] %v2749_v43  ;;  %v6564_v37 = vadd.f32 %v6563_v46, %v6562_v40 }
 0x225   : > { %v7173_v7 = vld [vmem:[#allocation3 + $0x2ec] ss:$36 sps:$4 sm:$0xff]   ;;  %v3109_v2 = vrot.slane %v3108_v24, 4  ;;  %3541 = vst [vmem:[#allocation3 + $0x260] sm:$0xf] %v3440_v49  ;;  %v3447_v58 = vsel %vm7765_vm14, %v6056_v35, %v3446_v19  ;;  %v3448_v39 = vrot.slane %v3446_v19, 4  ;;  %v6566_v6 = vpop.f32.mrf.mxu0 }
 0x226   : > { %v8591_v27 = vld [vmem:[%s9004_s4] ss:$0 sm:$0xff]  ;;  %v7174_v36 = vld [vmem:[#allocation3 + $0x1d0] ss:$36 sps:$4 sm:$0xff]   ;;  %v3443_v26 = vsel %vm7765_vm14, %v3441_v56, %v3442_v61  ;;  %5631 = vmatprep.mubr.bf16.mxu1 %v7173_v7  ;;  %v7175_v42 = vld [vmem:[#allocation3 + $0x218] ss:$36 sps:$4 sm:$0xff]   ;;  %v8607_v9 = vadd.f32 %v6564_v37, %v8353_v52  ;;  %v6501_v61 = vpop.f32.mrf.mxu1 }
 0x227   : > { %v5138_v48 = vadd.f32 %v8591_v27, %v8485_v55  ;;  %v3114_v45 = vsel %vm7549_vm9, %v3109_v2, %v3113_v38  ;;  %v3119_v55 = vrot.slane %v3118_v13, 4  ;;  %3542 = vst [vmem:[#allocation3 + $0x284] sm:$0xf] %v3443_v26  ;;  %3543 = vst [vmem:[#allocation3 + $0x2a8] sm:$0xf] %v3447_v58  ;;  %6819 = vmatprep.mubr.bf16.mxu0 %v7174_v36  ;;  %5632 = vmatmul.mubr.bf16.gmra.mxu1 %v7171_v53 }
 0x228   : > { %v2750_v29 = vld [vmem:[#allocation2 + $0xac] sm:$0xf]  ;;  %3275 = vst [vmem:[#allocation3 + $0x334] sm:$0xf] %v3114_v45  ;;  %v2825_v33 = vld [vmem:[#allocation2 + $0xa8] sm:$0xf]  ;;  %6820 = vmatmul.mubr.bf16.gmra.mxu0 %v7175_v42  ;;  %v3450_v35 = vsel %vm7765_vm14, %v3448_v39, %v3449_v18  ;;  %v6502_v19 = vpop.f32.mrf.mxu1  ;;  %v6567_v39 = vadd.f32 %v6566_v6, %v6565_v10 }
 0x229   : > { %v8604_v23 = vadd.f32 %v6500_v21, %v5138_v48  ;;  %2782 = vst [vmem:[#allocation3 + $0x39c] sm:$0xf] %v2750_v29  ;;  %v2826_v44 = vld [vmem:[#allocation2 + $0xac] sm:$0xf]  ;;  %v2827_v25 = vld [vmem:[#allocation2 + $0xb0] sm:$0x1]  ;;  %v3124_v38 = vsel %vm7549_vm9, %v3119_v55, %v3123_v16  ;;  %v6568_v48 = vpop.f32.mrf.mxu0 }
 0x22a   : > { %v3126_v24 = vshrl.u32 %v2825_v33, 16  ;;  %v3129_v13 = vshll.u32 %v2825_v33, 16  ;;  %v3315_v51 = vld [vmem:[#allocation2 + $0x90] sm:$0xe]  ;;  %v3316_v15 = vld [vmem:[#allocation2 + $0x94] sm:$0xf]  ;;  %v6504_v26 = vpop.f32.mrf.mxu1 }
 0x22b   : > { %3276 = vst [vmem:[#allocation3 + $0x358] sm:$0xf] %v3124_v38  ;;  %3544 = vst [vmem:[#allocation3 + $0x2cc] sm:$0xf] %v3450_v35  ;;  %v3135_v40 = vshll.u32 %v2826_v44, 16  ;;  %v3139_v54 = vshrl.u32 %v2826_v44, 16  ;;  %v6569_v29 = vpop.f32.mrf.mxu0  ;;  %v6503_v35 = vadd.f32 %v6502_v19, %v6501_v61 }
 0x22c   : > { %v3145_v49 = vshll.u32 %v2827_v25, 16  ;;  %v3317_v52 = vld [vmem:[#allocation2 + $0x98] sm:$0x1]  ;;  %v6057_v56 = vrot.slane %v3315_v51, 9  ;;  %v3128_v43 = vrot.slane %v3126_v24, 4  ;;  %v3131_v53 = vrot.slane %v3129_v13, 5  ;;  %v6505_v24 = vpop.f32.mrf.mxu1 }
 0x22d   : > { %v3453_v7 = vrot.slane %v3316_v15, 5  ;;  %v3456_v16 = vrot.slane %v3317_v52, 5  ;;  %v3318_v2 = vld [vmem:[#allocation2 + $0x9c] sm:$0xe]  ;;  %v3137_v18 = vrot.slane %v3135_v40, 5  ;;  %v3141_v46 = vrot.slane %v3139_v54, 4  ;;  %v6571_v61 = vpop.f32.mrf.mxu0 }
 0x22e   : > { %v3147_v21 = vrot.slane %v3145_v49, 5  ;;  %v6058_v36 = vrot.slane %v3318_v2, 9  ;;  %v3132_v58 = vor.u32 %v3131_v53, %v3128_v43  ;;  %v3319_v45 = vld [vmem:[#allocation2 + $0xa0] sm:$0xf]  ;;  %v3320_v55 = vld [vmem:[#allocation2 + $0xa4] sm:$0x1]  ;;  %v5143_v25 = vadd.f32 %v8591_v27, %v8490_v62 }
 0x22f   : > { %v3454_v37 = vsel %vm7765_vm14, %v6057_v56, %v3453_v7  ;;  %v3455_v42 = vrot.slane %v3453_v7, 4  ;;  %v7179_v33 = vld [vmem:[#allocation3 + $0x260] ss:$36 sps:$4 sm:$0xff]   ;;  %v3142_v44 = vor.u32 %v3141_v46, %v3137_v18  ;;  %v6570_v38 = vadd.f32 %v6569_v29, %v6568_v48  ;;  %v2751_v54 = vld [vmem:[#allocation2 + $0xb4] sm:$0xf] }
 0x230   : > { %3545 = vst [vmem:[#allocation3 + $0x2f0] sm:$0xf] %v3454_v37  ;;  %v3133_v13 = vrot.slane %v3132_v58, 4  ;;  %v3460_v15 = vrot.slane %v3319_v45, 5  ;;  %v3463_v40 = vrot.slane %v3320_v55, 5  ;;  %6823 = vmatprep.mubr.bf16.mxu0 %v7179_v33  ;;  %v8620_v52 = vadd.f32 %v6567_v39, %v8396_v63  ;;  %v6507_v37 = vpop.f32.mrf.mxu1 }
 0x231   : > { %v3457_v51 = vsel %vm7765_vm14, %v3455_v42, %v3456_v16  ;;  %v3143_v49 = vrot.slane %v3142_v44, 4  ;;  %v2752_v10 = vld [vmem:[#allocation2 + $0xb8] sm:$0xf]  ;;  %2783 = vst [vmem:[#allocation3 + $0x3c0] sm:$0xf] %v2751_v54  ;;  %v8623_v62 = vadd.f32 %v6570_v38, %v8417_v5  ;;  %v8625_v56 = vadd.f32 %v6503_v35, %v5143_v25 }
 0x232   : > { %3546 = vst [vmem:[#allocation3 + $0x314] sm:$0xf] %v3457_v51  ;;  %v2828_v6 = vld [vmem:[#allocation2 + $0xb4] sm:$0xf]  ;;  %v7176_v19 = vld [vmem:[#allocation3 + $0x330] ss:$36 sps:$4 sm:$0xff]   ;;  %v3138_v53 = vsel %vm7549_vm9, %v3133_v13, %v3137_v18  ;;  %v3461_v7 = vsel %vm7765_vm14, %v6058_v36, %v3460_v15  ;;  %v6506_v2 = vadd.f32 %v6505_v24, %v6504_v26  ;;  %v5146_v5 = vadd.f32 %v8591_v27, %v8514_v50  ;;  %v6572_v18 = vpop.f32.mrf.mxu0  ;;  %v6508_v25 = vpop.f32.mrf.mxu1 }
 0x233   : > { %v7178_v43 = vld [vmem:[#allocation3 + $0x334] ss:$36 sps:$4 sm:$0xff]   ;;  %v3462_v16 = vrot.slane %v3460_v15, 4  ;;  %2784 = vst [vmem:[#allocation3 + $0x3e4] sm:$0xf] %v2752_v10  ;;  %v3148_v63 = vsel %vm7549_vm9, %v3143_v49, %v3147_v21  ;;  %v5151_v58 = vadd.f32 %v8591_v27, %v8536_v57  ;;  %v3150_v42 = vshrl.u32 %v2828_v6, 16 }
 0x234   : > { %v7180_v48 = vld [vmem:[#allocation3 + $0x2a8] ss:$36 sps:$4 sm:$0xff]   ;;  %3277 = vst [vmem:[#allocation3 + $0x37c] sm:$0xf] %v3138_v53  ;;  %3547 = vst [vmem:[#allocation3 + $0x338] sm:$0xf] %v3461_v7  ;;  %5639 = vmatprep.mubr.bf16.mxu1 %v7178_v43  ;;  %v6573_v33 = vadd.f32 %v6572_v18, %v6571_v61  ;;  %v6574_v57 = vpop.f32.mrf.mxu0  ;;  %v8639_v44 = vadd.f32 %v6506_v2, %v5146_v5  ;;  %v5154_v54 = vadd.f32 %v8591_v27, %v8551_v20 }
 0x235   : > { %v2829_v46 = vld [vmem:[#allocation2 + $0xb8] sm:$0xf]  ;;  %3278 = vst [vmem:[#allocation3 + $0x3a0] sm:$0xf] %v3148_v63  ;;  %v3464_v36 = vsel %vm7765_vm14, %v3462_v16, %v3463_v40  ;;  %v2830_v26 = vld [vmem:[#allocation2 + $0xbc] sm:$0x1]  ;;  %5640 = vmatmul.mubr.bf16.gmra.mxu1 %v7176_v19  ;;  %6824 = vmatmul.mubr.bf16.gmra.mxu0 %v7180_v48  ;;  %v6509_v7 = vadd.f32 %v6508_v25, %v6507_v37 }
 0x236   : > { %v3153_v45 = vshll.u32 %v2828_v6, 16  ;;  %v3159_v21 = vshll.u32 %v2829_v46, 16  ;;  %3548 = vst [vmem:[#allocation3 + $0x35c] sm:$0xf] %v3464_v36  ;;  %v3163_v55 = vshrl.u32 %v2829_v46, 16  ;;  %v3169_v50 = vshll.u32 %v2830_v26, 16  ;;  %v6575_v10 = vpop.f32.mrf.mxu0  ;;  %v6510_v6 = vpop.f32.mrf.mxu1 }
 0x237   : > { %v3321_v39 = vld [vmem:[#allocation2 + $0xa8] sm:$0xe]  ;;  %v3322_v29 = vld [vmem:[#allocation2 + $0xac] sm:$0xf]  ;;  %v3152_v38 = vrot.slane %v3150_v42, 4  ;;  %v8644_v49 = vadd.f32 %v6573_v33, %v8426_v17  ;;  %v6576_v53 = vadd.f32 %v6575_v10, %v6574_v57  ;;  %v8651_v42 = vadd.f32 %v6509_v7, %v5151_v58 }
 0x238   : > { %v3155_v35 = vrot.slane %v3153_v45, 5  ;;  %v3161_v24 = vrot.slane %v3159_v21, 5  ;;  %v6059_v13 = vrot.slane %v3321_v39, 9  ;;  %v3165_v51 = vrot.slane %v3163_v55, 4  ;;  %v3323_v15 = vld [vmem:[#allocation2 + $0xb0] sm:$0x1]  ;;  %v6511_v18 = vpop.f32.mrf.mxu1  ;;  %v6577_v26 = vpop.f32.mrf.mxu0 }
 0x239   : > { %v3467_v40 = vrot.slane %v3322_v29, 5  ;;  %v7184_v61 = vld [vmem:[#allocation3 + $0x2f0] ss:$36 sps:$4 sm:$0xff]   ;;  %v3470_v43 = vrot.slane %v3323_v15, 5  ;;  %v3171_v2 = vrot.slane %v3169_v50, 5  ;;  %v8649_v36 = vadd.f32 %v6576_v53, %v8477_v32 }
 0x23a   : > { %v3156_v19 = vor.u32 %v3155_v35, %v3152_v38  ;;  %v3166_v16 = vor.u32 %v3165_v51, %v3161_v24  ;;  %v3324_v5 = vld [vmem:[#allocation2 + $0xb4] sm:$0xe]  ;;  %v3325_v46 = vld [vmem:[#allocation2 + $0xb8] sm:$0xf]  ;;  %6827 = vmatprep.mubr.bf16.mxu0 %v7184_v61  ;;  %v3326_v17 = vld [vmem:[#allocation2 + $0xbc] sm:$0x1]  ;;  %v6512_v37 = vadd.f32 %v6511_v18, %v6510_v6  ;;  %v6578_v25 = vpop.f32.mrf.mxu0  ;;  %v6513_v7 = vpop.f32.mrf.mxu1 }
 0x23b   : > { %v3468_v48 = vsel %vm7765_vm14, %v6059_v13, %v3467_v40  ;;  %v3469_v63 = vrot.slane %v3467_v40, 4  ;;  %v7181_v45 = vld [vmem:[#allocation3 + $0x378] ss:$36 sps:$4 sm:$0xff]   ;;  %v6060_v33 = vrot.slane %v3324_v5, 9  ;;  %v3474_v57 = vrot.slane %v3325_v46, 5 }
 0x23c   : > { %v3157_v20 = vrot.slane %v3156_v19, 4  ;;  %3549 = vst [vmem:[#allocation3 + $0x380] sm:$0xf] %v3468_v48  ;;  %v7183_v21 = vld [vmem:[#allocation3 + $0x37c] ss:$36 sps:$4 sm:$0xff]   ;;  %v3167_v55 = vrot.slane %v3166_v16, 4  ;;  %v8657_v32 = vadd.f32 %v6512_v37, %v5154_v54  ;;  %v6579_v51 = vadd.f32 %v6578_v25, %v6577_v26  ;;  %v6580_v10 = vpop.f32.mrf.mxu0 }
 0x23d   : > { %v3471_v50 = vsel %vm7765_vm14, %v3469_v63, %v3470_v43  ;;  %v7185_v39 = vld [vmem:[#allocation3 + $0x338] ss:$36 sps:$4 sm:$0xff]   ;;  %5647 = vmatprep.mubr.bf16.mxu1 %v7183_v21  ;;  %v3477_v38 = vrot.slane %v3326_v17, 5  ;;  %v2753_v35 = vld [vmem:[#allocation2 + $0xc0] sm:$0xf]  ;;  %v3476_v15 = vrot.slane %v3474_v57, 4  ;;  %v5159_v48 = vadd.f32 %v8591_v27, %v8566_v34 }
 0x23e   : > { %v3162_v29 = vsel %vm7549_vm9, %v3157_v20, %v3161_v24  ;;  %3550 = vst [vmem:[#allocation3 + $0x3a4] sm:$0xf] %v3471_v50  ;;  %v3172_v58 = vsel %vm7549_vm9, %v3167_v55, %v3171_v2  ;;  %v2754_v13 = vld [vmem:[#allocation2 + $0xc4] sm:$0xf]  ;;  %5648 = vmatmul.mubr.bf16.gmra.mxu1 %v7181_v45  ;;  %6828 = vmatmul.mubr.bf16.gmra.mxu0 %v7185_v39  ;;  %2785 = vst [vmem:[#allocation3 + $0x408] sm:$0xf] %v2753_v35  ;;  %v6581_v18 = vpop.f32.mrf.mxu0  ;;  %v6514_v45 = vpop.f32.mrf.mxu1 }
 0x23f   : > { %3279 = vst [vmem:[#allocation3 + $0x3c4] sm:$0xf] %v3162_v29  ;;  %3280 = vst [vmem:[#allocation3 + $0x3e8] sm:$0xf] %v3172_v58  ;;  %v3475_v24 = vsel %vm7765_vm14, %v6060_v33, %v3474_v57  ;;  %v2831_v40 = vld [vmem:[#allocation2 + $0xc0] sm:$0xf]  ;;  %v3478_v16 = vsel %vm7765_vm14, %v3476_v15, %v3477_v38  ;;  %v8668_v46 = vadd.f32 %v6579_v51, %v8495_v1 }
 0x240   : > { %2786 = vst [vmem:[#allocation3 + $0x42c] sm:$0xf] %v2754_v13  ;;  %v2832_v54 = vld [vmem:[#allocation2 + $0xc4] sm:$0xf]  ;;  %3551 = vst [vmem:[#allocation3 + $0x3c8] sm:$0xf] %v3475_v24  ;;  %v6582_v29 = vadd.f32 %v6581_v18, %v6580_v10  ;;  %v6515_v58 = vadd.f32 %v6514_v45, %v6513_v7  ;;  %v6516_v38 = vpop.f32.mrf.mxu1  ;;  %v5162_v10 = vadd.f32 %v8591_v27, %v8580_v22  ;;  %v6583_v7 = vpop.f32.mrf.mxu0 }
 0x241   : > { %v2833_v6 = vld [vmem:[#allocation2 + $0xc8] sm:$0x1]  ;;  %v3174_v61 = vshrl.u32 %v2831_v40, 16  ;;  %v3177_v19 = vshll.u32 %v2831_v40, 16  ;;  %v3183_v43 = vshll.u32 %v2832_v54, 16  ;;  %v3187_v53 = vshrl.u32 %v2832_v54, 16 }
 0x242   : > { %v3193_v2 = vshll.u32 %v2833_v6, 16  ;;  %v3327_v63 = vld [vmem:[#allocation2 + $0xc0] sm:$0xe]  ;;  %v3328_v5 = vld [vmem:[#allocation2 + $0xc4] sm:$0xf]  ;;  %v8673_v24 = vadd.f32 %v6582_v29, %v8506_v59  ;;  %v8677_v6 = vadd.f32 %v6515_v58, %v5159_v48  ;;  %v9050_v58 = vld [vmem:[#allocation15_spill] sm:$0xff] }
 0x243   : > { %3552 = vst [vmem:[#allocation3 + $0x3ec] sm:$0xf] %v3478_v16  ;;  %v3176_v20 = vrot.slane %v3174_v61, 4  ;;  %v3179_v17 = vrot.slane %v3177_v19, 5  ;;  %v3185_v26 = vrot.slane %v3183_v43, 5  ;;  %v3189_v37 = vrot.slane %v3187_v53, 4  ;;  %v6517_v61 = vpop.f32.mrf.mxu1 }
 0x244   : > { %v3195_v21 = vrot.slane %v3193_v2, 5  ;;  %v3329_v55 = vld [vmem:[#allocation2 + $0xc8] sm:$0x1]  ;;  %v6061_v50 = vrot.slane %v3327_v63, 9  ;;  %v3481_v39 = vrot.slane %v3328_v5, 5  ;;  %v6518_v16 = vadd.f32 %v6517_v61, %v6516_v38  ;;  %v9051_v38 = vld [vmem:[#allocation16_spill] sm:$0xff] }
 0x245   : > { %v7189_v33 = vld [vmem:[#allocation3 + $0x380] ss:$36 sps:$4 sm:$0xff]   ;;  %v3180_v57 = vor.u32 %v3179_v17, %v3176_v20  ;;  %v3190_v34 = vor.u32 %v3189_v37, %v3185_v26  ;;  %v3484_v25 = vrot.slane %v3329_v55, 5  ;;  %v518_v13 = vld [vmem:[#allocation2 + $0xd4] sm:$0x1]  ;;  %v6584_v37 = vpop.f32.mrf.mxu0 }
 0x246   : > { %v3482_v1 = vsel %vm7765_vm14, %v6061_v50, %v3481_v39  ;;  %v3483_v35 = vrot.slane %v3481_v39, 4  ;;  %v3330_v51 = vld [vmem:[#allocation2 + $0xcc] sm:$0xe]  ;;  %v7186_v15 = vld [vmem:[#allocation3 + $0x3c0] ss:$36 sps:$4 sm:$0xff]   ;;  %6831 = vmatprep.mubr.bf16.mxu0 %v7189_v33  ;;  %v519_v53 = vsel %vm7506_vm4, 0, %v518_v13  ;;  %v8689_v45 = vadd.f32 %v6518_v16, %v5162_v10 }
 0x247   : > { %v7188_v40 = vld [vmem:[#allocation3 + $0x3c4] ss:$36 sps:$4 sm:$0xff]   ;;  %v3181_v54 = vrot.slane %v3180_v57, 4  ;;  %3553 = vst [vmem:[#allocation3 + $0x410] sm:$0xf] %v3482_v1  ;;  %v3191_v19 = vrot.slane %v3190_v34, 4  ;;  %v6585_v39 = vadd.f32 %v6584_v37, %v6583_v7  ;;  %v6586_v33 = vpop.f32.mrf.mxu0  ;;  %v6412_v1 = vadd.f32 %v9051_v38, %v9050_v58 }
 0x248   : > { %v3485_v43 = vsel %vm7765_vm14, %v3483_v35, %v3484_v25  ;;  %v3331_v59 = vld [vmem:[#allocation2 + $0xd0] sm:$0xf]  ;;  %5655 = vmatprep.mubr.bf16.mxu1 %v7188_v40  ;;  %520 = vst [vmem:[#allocation2 + $0xd4] sm:$0x1] %v519_v53  ;;  %v6062_v22 = vrot.slane %v3330_v51, 9  ;;  %v9049_v34 = vld [vmem:[#allocation14_spill] sm:$0xff] }
 0x249   : > { %v3186_v2 = vsel %vm7549_vm9, %v3181_v54, %v3185_v26  ;;  %3554 = vst [vmem:[#allocation3 + $0x434] sm:$0xf] %v3485_v43  ;;  %v3488_v48 = vrot.slane %v3331_v59, 5  ;;  %v462_v63 = vld [vmem:[#allocation2 + $0xcc] sm:$0x1]  ;;  %5656 = vmatmul.mubr.bf16.gmra.mxu1 %v7186_v15  ;;  %v3196_v20 = vsel %vm7549_vm9, %v3191_v19, %v3195_v21  ;;  %v6519_v26 = vpop.f32.mrf.mxu1  ;;  %v5167_v25 = vadd.f32 %v8591_v27, %v9049_v34  ;;  %v6587_v40 = vpop.f32.mrf.mxu0 }
 0x24a   : > { %v2756_v5 = vld [vmem:[#allocation2 + $0xd0] sm:$0xf]  ;;  %v7190_v18 = vld [vmem:[#allocation3 + $0x3c8] ss:$36 sps:$4 sm:$0xff]   ;;  %3281 = vst [vmem:[#allocation3 + $0x40c] sm:$0xf] %v3186_v2  ;;  %v8698_v35 = vadd.f32 %v6585_v39, %v8519_v14  ;;  %v6588_v61 = vadd.f32 %v6587_v40, %v6586_v33  ;;  %v5170_v16 = vadd.f32 %v8591_v27, %v6412_v1 }
 0x24b   : > { %v463_v17 = vsel %vm7501_vm2, 0, %v462_v63  ;;  %2788 = vst [vmem:[#allocation3 + $0x474] sm:$0xf] %v2756_v5  ;;  %3282 = vst [vmem:[#allocation3 + $0x430] sm:$0xf] %v3196_v20  ;;  %v3489_v55 = vsel %vm7765_vm14, %v6062_v22, %v3488_v48  ;;  %6832 = vmatmul.mubr.bf16.gmra.mxu0 %v7190_v18  ;;  %v6520_v57 = vpop.f32.mrf.mxu1  ;;  %v3490_v10 = vrot.slane %v3488_v48, 4  ;;  %v6589_v20 = vpop.f32.mrf.mxu0 }
 0x24c   : > { %464 = vst [vmem:[#allocation2 + $0xcc] sm:$0x1] %v463_v17  ;;  %v2835_v50 = vld [vmem:[#allocation2 + $0xd0] sm:$0xf]  ;;  %3555 = vst [vmem:[#allocation3 + $0x458] sm:$0xf] %v3489_v55  ;;  %v6521_v13 = vadd.f32 %v6520_v57, %v6519_v26  ;;  %v8704_v14 = vadd.f32 %v6588_v61, %v8528_v30 }
 0x24d   : > { %v3207_v29 = vshll.u32 %v2835_v50, 16  ;;  %v3211_v21 = vshrl.u32 %v2835_v50, 16  ;;  %v6522_v54 = vpop.f32.mrf.mxu1  ;;  %v7191_v5 = vld [vmem:[#allocation3 + $0x408] ss:$36 sps:$4 sm:$0xff]   ;;  %v6590_v39 = vpop.f32.mrf.mxu0 }
 0x24e   : > { %v8700_v19 = vadd.f32 %v6521_v13, %v5167_v25  ;;  %v9053_v61 = vld [vmem:[#allocation18_spill] sm:$0xff] }
 0x24f   : > { %v3209_v51 = vrot.slane %v3207_v29, 5  ;;  %v3213_v15 = vrot.slane %v3211_v21, 4  ;;  %v3332_v53 = vld [vmem:[#allocation2 + $0xd4] sm:$0x1]  ;;  %v6523_v7 = vpop.f32.mrf.mxu1  ;;  %v6591_v29 = vadd.f32 %v6590_v39, %v6589_v20  ;;  %v6592_v34 = vpop.f32.mrf.mxu0 }
 0x250   : > { %v7194_v43 = vld [vmem:[#allocation3 + $0x410] ss:$36 sps:$4 sm:$0xff]   ;;  %v3491_v2 = vrot.slane %v3332_v53, 5  ;;  %v2836_v22 = vld [vmem:[#allocation2 + $0xd4] sm:$0x1]  ;;  %v6524_v63 = vadd.f32 %v6523_v7, %v6522_v54  ;;  %v9052_v54 = vld [vmem:[#allocation17_spill] sm:$0xff] }
 0x251   : > { %v3214_v59 = vor.u32 %v3213_v15, %v3209_v51  ;;  %6835 = vmatprep.mubr.bf16.mxu0 %v7194_v43  ;;  %v3217_v30 = vshll.u32 %v2836_v22, 16  ;;  %v8711_v31 = vadd.f32 %v6591_v29, %v8531_v12  ;;  %v6593_v38 = vpop.f32.mrf.mxu0  ;;  %v6525_v1 = vpop.f32.mrf.mxu1  ;;  %v9054_v43 = vld [vmem:[#allocation19_spill] sm:$0xff] }
 0x252   : > { %v7193_v18 = vld [vmem:[#allocation3 + $0x40c] ss:$36 sps:$4 sm:$0xff]   ;;  %v3492_v48 = vsel %vm7765_vm14, %v3490_v10, %v3491_v2  ;;  %v8708_v37 = vadd.f32 %v6524_v63, %v5170_v16  ;;  %v6594_v13 = vadd.f32 %v6593_v38, %v6592_v34  ;;  %v5175_v10 = vadd.f32 %v8591_v27, %v9052_v54 }
 0x253   : > { %v2755_v11 = vld [vmem:[#allocation2 + $0xcc] sm:$0xf]  ;;  %5663 = vmatprep.mubr.bf16.mxu1 %v7193_v18  ;;  %3556 = vst [vmem:[#allocation3 + $0x47c] sm:$0xf] %v3492_v48  ;;  %v3215_v50 = vrot.slane %v3214_v59, 4  ;;  %v3219_v57 = vrot.slane %v3217_v30, 5  ;;  %v6526_v40 = vpop.f32.mrf.mxu1  ;;  %v6418_v53 = vadd.f32 %v9054_v43, %v9053_v61  ;;  %v6595_v63 = vpop.f32.mrf.mxu0 }
 0x254   : > { %v2834_v17 = vld [vmem:[#allocation2 + $0xcc] sm:$0xf]  ;;  %2787 = vst [vmem:[#allocation3 + $0x450] sm:$0xf] %v2755_v11  ;;  %5664 = vmatmul.mubr.bf16.gmra.mxu1 %v7191_v5  ;;  %v8720_v12 = vadd.f32 %v6594_v13, %v8534_v47  ;;  %v6527_v7 = vadd.f32 %v6526_v40, %v6525_v1  ;;  %v9057_v30 = vld [vmem:[#allocation22_spill] sm:$0xff] }
 0x255   : > { %v3198_v26 = vshrl.u32 %v2834_v17, 16  ;;  %v3201_v55 = vshll.u32 %v2834_v17, 16  ;;  %v3220_v58 = vsel %vm7549_vm9, %v3215_v50, %v3219_v57  ;;  %v6528_v2 = vpop.f32.mrf.mxu1  ;;  %v5178_v18 = vadd.f32 %v8591_v27, %v6418_v53  ;;  %v6596_v48 = vpop.f32.mrf.mxu0  ;;  %v9055_v50 = vld [vmem:[#allocation20_spill] sm:$0xff] }
 0x256   : > { %3284 = vst [vmem:[#allocation3 + $0x478] sm:$0xf] %v3220_v58  ;;  %v8724_v22 = vadd.f32 %v6527_v7, %v5175_v10  ;;  %v6597_v17 = vadd.f32 %v6596_v48, %v6595_v63  ;;  %v5183_v0 = vadd.f32 %v8591_v27, %v9055_v50 }
 0x257   : > { %v3200_v21 = vrot.slane %v3198_v26, 4  ;;  %v3203_v33 = vrot.slane %v3201_v55, 5  ;;  %v6529_v5 = vpop.f32.mrf.mxu1  ;;  %v6598_v47 = vpop.f32.mrf.mxu0 }
 0x258   : > { %v6530_v20 = vadd.f32 %v6529_v5, %v6528_v2  ;;  %v8734_v29 = vadd.f32 %v6597_v17, %v8539_v3 }
 0x259   : > { %v3204_v25 = vor.u32 %v3203_v33, %v3200_v21  ;;  %v6531_v11 = vpop.f32.mrf.mxu1  ;;  %v6599_v34 = vpop.f32.mrf.mxu0 }
 0x25a   : > { %v7195_v59 = vld [vmem:[#allocation3 + $0x458] ss:$36 sps:$4 sm:$0xff]   ;;  %v8727_v26 = vadd.f32 %v6530_v20, %v5178_v18  ;;  %v6600_v58 = vadd.f32 %v6599_v34, %v6598_v47 }
 0x25b   : > { %v3205_v15 = vrot.slane %v3204_v25, 4  ;;  %6836 = vmatmul.mubr.bf16.gmra.mxu0 %v7195_v59  ;;  %v6532_v55 = vpop.f32.mrf.mxu1  ;;  %v7196_v33 = vld [vmem:[#allocation3 + $0x450] ss:$36 sps:$4 sm:$0xff]   ;;  %v6601_v40 = vpop.f32.mrf.mxu0  ;;  %v9059_v47 = vld [vmem:[#allocation24_spill] sm:$0xff] }
 0x25c   : > { %v6533_v21 = vadd.f32 %v6532_v55, %v6531_v11  ;;  %v9058_v11 = vld [vmem:[#allocation23_spill] sm:$0xff] }
 0x25d   : > { %v3210_v16 = vsel %vm7549_vm9, %v3205_v15, %v3209_v51  ;;  %v9056_v51 = vld [vmem:[#allocation21_spill] sm:$0xff]  ;;  %v6534_v25 = vpop.f32.mrf.mxu1  ;;  %v8740_v15 = vadd.f32 %v6600_v58, %v8545_v60  ;;  %v6602_v3 = vpop.f32.mrf.mxu0  ;;  %v5191_v17 = vadd.f32 %v8591_v27, %v9058_v11 }
 0x25e   : > { %3283 = vst [vmem:[#allocation3 + $0x454] sm:$0xf] %v3210_v16  ;;  %v6424_v39 = vadd.f32 %v9057_v30, %v9056_v51  ;;  %v8736_v38 = vadd.f32 %v6533_v21, %v5183_v0  ;;  %v6603_v61 = vadd.f32 %v6602_v3, %v6601_v40 }
 0x25f   : > { %v6535_v1 = vpop.f32.mrf.mxu1  ;;  %v6604_v43 = vpop.f32.mrf.mxu0 }
 0x260   : > { %v5186_v13 = vadd.f32 %v8591_v27, %v6424_v39  ;;  %v6536_v54 = vadd.f32 %v6535_v1, %v6534_v25  ;;  %v8745_v53 = vadd.f32 %v6603_v61, %v8562_v8  ;;  %v9060_v8 = vld [vmem:[#allocation25_spill] sm:$0xff] }
 0x261   : > { %v6605_v59 = vpop.f32.mrf.mxu0  ;;  %v6430_v55 = vadd.f32 %v9060_v8, %v9059_v47 }
 0x262   : > { %v8742_v10 = vadd.f32 %v6536_v54, %v5186_v13  ;;  %v6606_v7 = vadd.f32 %v6605_v59, %v6604_v43 }
 0x263   : > { %v6607_v2 = vpop.f32.mrf.mxu0 }
 0x264   : > { %v8748_v16 = vadd.f32 %v6606_v7, %v8568_v41  ;;  %v6537_v5 = vpop.f32.mrf.mxu1 }
 0x265   : > { %v7198_v57 = vld [vmem:[#allocation3 + $0x454] ss:$36 sps:$4 sm:$0xff]   ;;  %v6608_v63 = vpop.f32.mrf.mxu0 }
 0x266   : > { %5671 = vmatprep.mubr.bf16.mxu1 %v7198_v57  ;;  %v6609_v60 = vadd.f32 %v6608_v63, %v6607_v2  ;;  %v6538_v20 = vpop.f32.mrf.mxu1 }
 0x267   : > { %5672 = vmatmul.mubr.bf16.gmra.mxu1 %v7196_v33  ;;  %v6610_v18 = vpop.f32.mrf.mxu0  ;;  %v6539_v50 = vadd.f32 %v6538_v20, %v6537_v5 }
 0x268   : > { %v8751_v48 = vadd.f32 %v6609_v60, %v8584_v4  ;;  %v6540_v51 = vpop.f32.mrf.mxu1  ;;  %v5194_v4 = vadd.f32 %v8591_v27, %v6430_v55 }
 0x269   : > { %v6611_v0 = vpop.f32.mrf.mxu0  ;;  %v8757_v30 = vadd.f32 %v6539_v50, %v5191_v17 }
 0x26a   : > { %v6612_v41 = vadd.f32 %v6611_v0, %v6610_v18  ;;  %v6541_v21 = vpop.f32.mrf.mxu1 }
 0x26b   : > { %v6613_v39 = vpop.f32.mrf.mxu0  ;;  %v6542_v57 = vadd.f32 %v6541_v21, %v6540_v51 }
 0x26c   : > { %v8760_v33 = vadd.f32 %v6612_v41, %v8604_v23 }
 0x26d   : > { %v6614_v34 = vpop.f32.mrf.mxu0  ;;  %v8763_v58 = vadd.f32 %v6542_v57, %v5194_v4 }
 0x26e   : > { %v6615_v25 = vadd.f32 %v6614_v34, %v6613_v39 }
 0x26f   : > { %v6616_v1 = vpop.f32.mrf.mxu0 }
 0x270   : > { %v8765_v13 = vpop.f32.mrf.mxu1  ;;  %v8768_v40 = vadd.f32 %v6615_v25, %v8625_v56 }
 0x271   : > { %v6617_v54 = vpop.f32.mrf.mxu0 }
 0x272   : > { %v8770_v3 = vpop.f32.mrf.mxu1  ;;  %v6618_v61 = vadd.f32 %v6617_v54, %v6616_v1 }
 0x274   : > { %v8772_v43 = vpop.f32.mrf.mxu1  ;;  %v8775_v23 = vadd.f32 %v6618_v61, %v8639_v44  ;;  %v6619_v27 = vpop.f32.mrf.mxu0 }
 0x276   : > { %v6620_v59 = vpop.f32.mrf.mxu0  ;;  %v8777_v2 = vpop.f32.mrf.mxu1 }
 0x277   : > { %v6621_v7 = vadd.f32 %v6620_v59, %v6619_v27 }
 0x278   : > { %v6622_v63 = vpop.f32.mrf.mxu0 }
 0x279   : > { %v8780_v5 = vadd.f32 %v6621_v7, %v8651_v42 }
 0x27a   : > { %v6623_v56 = vpop.f32.mrf.mxu0 }
 0x27b   : > { %9061 = vst [vmem:[#allocation13_spill] sm:$0xff] %v8780_v5  ;;  %v6624_v60 = vadd.f32 %v6623_v56, %v6622_v63 }
 0x27d   : > { %v8783_v20 = vadd.f32 %v6624_v60, %v8657_v32 }
 0x27e   : > { %v6677_v18 = vpop.f32.mrf.mxu1 }
 0x27f   : > { %9062 = vst [vmem:[#allocation14_spill] sm:$0xff] %v8783_v20 }
 0x280   : > { %v6678_v11 = vpop.f32.mrf.mxu1 }
 0x281   : > { %v6625_v17 = vpop.f32.mrf.mxu0 }
 0x282   : > { %v8785_v47 = vpop.f32.mrf.mxu1 }
 0x283   : > { %v6626_v44 = vpop.f32.mrf.mxu0 }
 0x284   : > { %v6627_v8 = vadd.f32 %v6626_v44, %v6625_v17  ;;  %v6681_v55 = vpop.f32.mrf.mxu1 }
 0x285   : > { %v6628_v50 = vpop.f32.mrf.mxu0  ;;  %v6682_v20 = vadd.f32 %v6681_v55, %v8785_v47 }
 0x286   : > { %v8788_v0 = vadd.f32 %v6627_v8, %v8677_v6 }
 0x287   : > { %v6629_v51 = vpop.f32.mrf.mxu0 }
 0x288   : > { %v6630_v42 = vadd.f32 %v6629_v51, %v6628_v50 }
 0x28a   : > { %v8790_v41 = vpop.f32.mrf.mxu1  ;;  %v8793_v39 = vadd.f32 %v6630_v42, %v8689_v45 }
 0x28c   : > { %9063 = vst [vmem:[#allocation15_spill] sm:$0xff] %v8793_v39  ;;  %v8795_v32 = vpop.f32.mrf.mxu1 }
 0x28e   : > { %v8797_v21 = vpop.f32.mrf.mxu1  ;;  %v6631_v4 = vpop.f32.mrf.mxu0 }
 0x290   : > { %v6632_v57 = vpop.f32.mrf.mxu0  ;;  %v8799_v34 = vpop.f32.mrf.mxu1 }
 0x291   : > { %v6633_v25 = vadd.f32 %v6632_v57, %v6631_v4 }
 0x292   : > { %v6634_v1 = vpop.f32.mrf.mxu0 }
 0x293   : > { %v8802_v6 = vadd.f32 %v6633_v25, %v8700_v19 }
 0x294   : > { %v6635_v54 = vpop.f32.mrf.mxu0 }
 0x295   : > { %9064 = vst [vmem:[#allocation16_spill] sm:$0xff] %v8802_v6  ;;  %v6689_v61 = vpop.f32.mrf.mxu1  ;;  %v6636_v27 = vadd.f32 %v6635_v54, %v6634_v1 }
 0x297   : > { %v6690_v59 = vpop.f32.mrf.mxu1  ;;  %v8805_v45 = vadd.f32 %v6636_v27, %v8708_v37 }
 0x299   : > { %9065 = vst [vmem:[#allocation17_spill] sm:$0xff] %v8805_v45  ;;  %v8807_v7 = vpop.f32.mrf.mxu1 }
 0x29b   : > { %v6637_v63 = vpop.f32.mrf.mxu0  ;;  %v6693_v60 = vpop.f32.mrf.mxu1 }
 0x29d   : > { %v6638_v56 = vpop.f32.mrf.mxu0 }
 0x29e   : > { %v6639_v17 = vadd.f32 %v6638_v56, %v6637_v63 }
 0x29f   : > { %v6640_v44 = vpop.f32.mrf.mxu0 }
 0x2a0   : > { %v8810_v8 = vadd.f32 %v6639_v17, %v8724_v22 }
 0x2a1   : > { %v6641_v50 = vpop.f32.mrf.mxu0 }
 0x2a2   : > { %9066 = vst [vmem:[#allocation18_spill] sm:$0xff] %v8810_v8  ;;  %v6642_v51 = vadd.f32 %v6641_v50, %v6640_v44 }
 0x2a4   : > { %v8812_v19 = vpop.f32.mrf.mxu1  ;;  %v8817_v4 = vadd.f32 %v6642_v51, %v8727_v26 }
 0x2a6   : > { %v8814_v42 = vpop.f32.mrf.mxu1  ;;  %9067 = vst [vmem:[#allocation19_spill] sm:$0xff] %v8817_v4 }
 0x2a8   : > { %v8819_v37 = vpop.f32.mrf.mxu1  ;;  %v6643_v57 = vpop.f32.mrf.mxu0 }
 0x2aa   : > { %v6644_v25 = vpop.f32.mrf.mxu0  ;;  %v8821_v54 = vpop.f32.mrf.mxu1 }
 0x2ab   : > { %v6645_v1 = vadd.f32 %v6644_v25, %v6643_v57 }
 0x2ac   : > { %v6646_v27 = vpop.f32.mrf.mxu0 }
 0x2ad   : > { %v8824_v22 = vadd.f32 %v6645_v1, %v8736_v38  ;;  %v6679_v1 = vadd.f32 %v6678_v11, %v6677_v18 }
 0x2ae   : > { %v6647_v63 = vpop.f32.mrf.mxu0 }
 0x2af   : > { %9068 = vst [vmem:[#allocation20_spill] sm:$0xff] %v8824_v22  ;;  %v6648_v56 = vadd.f32 %v6647_v63, %v6646_v27  ;;  %v5562_v5 = vadd.f32 %v6679_v1, %v8620_v52 }
 0x2b1   : > { %v8827_v44 = vadd.f32 %v6648_v56, %v8742_v10  ;;  %v6673_v10 = vadd.f32 %v8770_v3, %v8765_v13 }
 0x2b2   : > { %v6701_v17 = vpop.f32.mrf.mxu1 }
 0x2b3   : > { %9069 = vst [vmem:[#allocation21_spill] sm:$0xff] %v8827_v44 }
 0x2b4   : > { %v6702_v50 = vpop.f32.mrf.mxu1 }
 0x2b6   : > { %v6704_v26 = vpop.f32.mrf.mxu1 }
 0x2b8   : > { %v6705_v51 = vpop.f32.mrf.mxu1 }
 0x2be   : > { %v8829_v4 = vpop.f32.mrf.mxu1 }
 0x2c0   : > { %v8831_v45 = vpop.f32.mrf.mxu1 }
 0x2c2   : > { %v8833_v57 = vpop.f32.mrf.mxu1 }
 0x2c3   : > { %v6649_v25 = vpop.f32.mrf.mxu0 }
 0x2c4   : > { %v8835_v8 = vpop.f32.mrf.mxu1 }
 0x2c5   : > { %v6650_v38 = vpop.f32.mrf.mxu0 }
 0x2c6   : > { %v6651_v22 = vadd.f32 %v6650_v38, %v6649_v25  ;;  %v8837_v27 = vpop.f32.mrf.mxu1  ;;  %v6676_v25 = vadd.f32 %v8777_v2, %v8772_v43  ;;  %v5565_v43 = vadd.f32 %v6682_v20, %v8623_v62 }
 0x2c7   : > { %v6652_v63 = vpop.f32.mrf.mxu0 }
 0x2c8   : > { %v8842_v56 = vadd.f32 %v6651_v22, %v8757_v30  ;;  %v8844_v44 = vpop.f32.mrf.mxu1  ;;  %v5554_v30 = vadd.f32 %v6673_v10, %v8596_v28  ;;  %v6685_v28 = vadd.f32 %v8795_v32, %v8790_v41  ;;  %v5557_v47 = vadd.f32 %v6676_v25, %v8607_v9 }
 0x2c9   : > { %v6653_v6 = vpop.f32.mrf.mxu0  ;;  %v6688_v41 = vadd.f32 %v8799_v34, %v8797_v21  ;;  %v6706_v25 = vadd.f32 %v6705_v51, %v6704_v26 }
 0x2ca   : > { %9070 = vst [vmem:[#allocation22_spill] sm:$0xff] %v8842_v56  ;;  %v6654_v39 = vadd.f32 %v6653_v6, %v6652_v63  ;;  %v8848_v18 = vpop.f32.mrf.mxu1  ;;  %v6691_v56 = vadd.f32 %v6690_v59, %v6689_v61  ;;  %v6694_v6 = vadd.f32 %v6693_v60, %v8807_v7  ;;  %v5570_v9 = vadd.f32 %v6685_v28, %v8644_v49 }
 0x2cb   : > { %v6809_v11 = vpop.f32.mrf.mxu0  ;;  %v6703_v63 = vadd.f32 %v6702_v50, %v6701_v17  ;;  %v5573_v34 = vadd.f32 %v6688_v41, %v8649_v36  ;;  %v5597_v51 = vadd.f32 %v6706_v25, %v8720_v12 }
 0x2cc   : > { %v8853_v13 = vadd.f32 %v6654_v39, %v8763_v58  ;;  %v5723_v3 = vadd.f32 %v6809_v11, %v5562_v5  ;;  %v8856_v22 = vpop.f32.mrf.mxu1  ;;  %v5578_v62 = vadd.f32 %v6691_v56, %v8668_v46  ;;  %v5581_v60 = vadd.f32 %v6694_v6, %v8673_v24 }
 0x2cd   : > { %v5714_v38 = vpop.f32.mrf.mxu0  ;;  %v6697_v56 = vadd.f32 %v8814_v42, %v8812_v19  ;;  %v5594_v50 = vadd.f32 %v6703_v63, %v8711_v31  ;;  %v6700_v24 = vadd.f32 %v8821_v54, %v8819_v37  ;;  %v6715_v31 = vadd.f32 %v8844_v44, %v8837_v27 }
 0x2ce   : > { %5843 = vst [vmem:[%s8860_s29 + $0x10] sm:$0xff] %v5723_v3  ;;  %v5715_v52 = vadd.f32 %v5714_v38, %v5554_v30  ;;  %v6718_v12 = vadd.f32 %v8856_v22, %v8848_v18 }
 0x2cf   : > { %v6810_v2 = vpop.f32.mrf.mxu0  ;;  %v5586_v42 = vadd.f32 %v6697_v56, %v8698_v35  ;;  %v5589_v54 = vadd.f32 %v6700_v24, %v8704_v14  ;;  %v6709_v35 = vadd.f32 %v8831_v45, %v8829_v4  ;;  %v5610_v44 = vadd.f32 %v6715_v31, %v8745_v53 }
 0x2d0   : > { %v8864_v58 = vpop.f32.mrf.mxu1  ;;  %5841 = vst [vmem:[%s8860_s29] sm:$0xff] %v5715_v52  ;;  %v5726_v5 = vadd.f32 %v6810_v2, %v5565_v43  ;;  %v5613_v18 = vadd.f32 %v6718_v12, %v8748_v16 }
 0x2d1   : > { %v5717_v39 = vpop.f32.mrf.mxu0  ;;  %v5602_v6 = vadd.f32 %v6709_v35, %v8734_v29 }
 0x2d2   : > { %v8870_v55 = vpop.f32.mrf.mxu1  ;;  %5844 = vst [vmem:[%s8860_s29 + $0x18] sm:$0xff] %v5726_v5  ;;  %v5718_v61 = vadd.f32 %v5717_v39, %v5557_v47  ;;  %v6712_v47 = vadd.f32 %v8835_v8, %v8833_v57 }
 0x2d3   : > { %v6813_v59 = vpop.f32.mrf.mxu0  ;;  %v6721_v29 = vadd.f32 %v8870_v55, %v8864_v58 }
 0x2d4   : > { %v8875_v20 = vpop.f32.mrf.mxu1  ;;  %5842 = vst [vmem:[%s8860_s29 + $0x8] sm:$0xff] %v5718_v61  ;;  %v5739_v32 = vadd.f32 %v6813_v59, %v5578_v62  ;;  %v5605_v53 = vadd.f32 %v6712_v47, %v8740_v15  ;;  %v9074_v47 = vld [vmem:[#allocation16_spill] sm:$0xff] }
 0x2d5   : > { %v5730_v1 = vpop.f32.mrf.mxu0  ;;  %v5618_v15 = vadd.f32 %v6721_v29, %v8751_v48 }
 0x2d6   : > { %5847 = vst [vmem:[%s8860_s29 + $0x30] sm:$0xff] %v5739_v32  ;;  %v5731_v7 = vadd.f32 %v5730_v1, %v5570_v9  ;;  %v6723_v10 = vpop.f32.mrf.mxu1 }
 0x2d7   : > { %v6814_v46 = vpop.f32.mrf.mxu0  ;;  %v6724_v63 = vadd.f32 %v6723_v10, %v8875_v20 }
 0x2d8   : > { %5845 = vst [vmem:[%s8860_s29 + $0x20] sm:$0xff] %v5731_v7  ;;  %v5742_v21 = vadd.f32 %v6814_v46, %v5581_v60 }
 0x2d9   : > { %v5733_v11 = vpop.f32.mrf.mxu0 }
 0x2da   : > { %5848 = vst [vmem:[%s8860_s29 + $0x38] sm:$0xff] %v5742_v21  ;;  %v5734_v49 = vadd.f32 %v5733_v11, %v5573_v34  ;;  %v5621_v11 = vadd.f32 %v6724_v63, %v8760_v33 }
 0x2dc   : > { %5846 = vst [vmem:[%s8860_s29 + $0x28] sm:$0xff] %v5734_v49 }
 0x2dd   : > { %v6725_v17 = vpop.f32.mrf.mxu1  ;;  %v6817_v3 = vpop.f32.mrf.mxu0 }
 0x2de   : > { %v5755_v30 = vadd.f32 %v6817_v3, %v5594_v50 }
 0x2df   : > { %v6726_v19 = vpop.f32.mrf.mxu1  ;;  %v5746_v38 = vpop.f32.mrf.mxu0 }
 0x2e0   : > { %5851 = vst [vmem:[%s8860_s29 + $0x50] sm:$0xff] %v5755_v30  ;;  %v5747_v36 = vadd.f32 %v5746_v38, %v5586_v42  ;;  %v6727_v59 = vadd.f32 %v6726_v19, %v6725_v17  ;;  %v9071_v30 = vld [vmem:[#allocation13_spill] sm:$0xff] }
 0x2e1   : > { %v6728_v26 = vpop.f32.mrf.mxu1  ;;  %v6818_v52 = vpop.f32.mrf.mxu0 }
 0x2e2   : > { %5849 = vst [vmem:[%s8860_s29 + $0x40] sm:$0xff] %v5747_v36  ;;  %v5758_v43 = vadd.f32 %v6818_v52, %v5597_v51  ;;  %v5626_v9 = vadd.f32 %v6727_v59, %v8768_v40  ;;  %v9072_v36 = vld [vmem:[#allocation15_spill] sm:$0xff]  ;;  %v9076_v59 = vld [vmem:[#allocation17_spill] sm:$0xff] }
 0x2e3   : > { %v6729_v37 = vpop.f32.mrf.mxu1  ;;  %v5749_v2 = vpop.f32.mrf.mxu0 }
 0x2e4   : > { %5852 = vst [vmem:[%s8860_s29 + $0x58] sm:$0xff] %v5758_v43  ;;  %v5750_v28 = vadd.f32 %v5749_v2, %v5589_v54  ;;  %v6730_v32 = vadd.f32 %v6729_v37, %v6728_v26 }
 0x2e6   : > { %5850 = vst [vmem:[%s8860_s29 + $0x48] sm:$0xff] %v5750_v28  ;;  %v5629_v58 = vadd.f32 %v6730_v32, %v8775_v23 }
 0x2e7   : > { %v6731_v5 = vpop.f32.mrf.mxu1 }
 0x2e8   : > { %v6821_v27 = vpop.f32.mrf.mxu0 }
 0x2e9   : > { %v5771_v14 = vadd.f32 %v6821_v27, %v5610_v44  ;;  %v6732_v39 = vpop.f32.mrf.mxu1 }
 0x2ea   : > { %v5762_v45 = vpop.f32.mrf.mxu0  ;;  %v6733_v20 = vadd.f32 %v6732_v39, %v6731_v5 }
 0x2eb   : > { %5855 = vst [vmem:[%s8860_s29 + $0x70] sm:$0xff] %v5771_v14  ;;  %v5763_v4 = vadd.f32 %v5762_v45, %v5602_v6  ;;  %v6734_v61 = vpop.f32.mrf.mxu1  ;;  %v9075_v45 = vld [vmem:[#allocation18_spill] sm:$0xff] }
 0x2ec   : > { %v6822_v22 = vpop.f32.mrf.mxu0  ;;  %v5634_v19 = vadd.f32 %v6733_v20, %v9071_v30 }
 0x2ed   : > { %5853 = vst [vmem:[%s8860_s29 + $0x60] sm:$0xff] %v5763_v4  ;;  %v5774_v62 = vadd.f32 %v6822_v22, %v5613_v18  ;;  %v6735_v8 = vpop.f32.mrf.mxu1 }
 0x2ee   : > { %v5765_v41 = vpop.f32.mrf.mxu0  ;;  %v6736_v3 = vadd.f32 %v6735_v8, %v6734_v61 }
 0x2ef   : > { %5856 = vst [vmem:[%s8860_s29 + $0x78] sm:$0xff] %v5774_v62  ;;  %v5766_v57 = vadd.f32 %v5765_v41, %v5605_v53 }
 0x2f1   : > { %5854 = vst [vmem:[%s8860_s29 + $0x68] sm:$0xff] %v5766_v57  ;;  %v9077_v57 = vld [vmem:[#allocation19_spill] sm:$0xff] }
 0x2f5   : > { %v6737_v16 = vpop.f32.mrf.mxu1  ;;  %v6825_v1 = vpop.f32.mrf.mxu0 }
 0x2f6   : > { %v5787_v7 = vadd.f32 %v6825_v1, %v5626_v9 }
 0x2f7   : > { %v6738_v60 = vpop.f32.mrf.mxu1  ;;  %v5778_v46 = vpop.f32.mrf.mxu0 }
 0x2f8   : > { %5859 = vst [vmem:[%s8860_s29 + $0x90] sm:$0xff] %v5787_v7  ;;  %v5779_v56 = vadd.f32 %v5778_v46, %v5618_v15  ;;  %v6739_v55 = vadd.f32 %v6738_v60, %v6737_v16  ;;  %v9078_v46 = vld [vmem:[#allocation20_spill] sm:$0xff] }
 0x2f9   : > { %v6740_v21 = vpop.f32.mrf.mxu1  ;;  %v6826_v34 = vpop.f32.mrf.mxu0 }
 0x2fa   : > { %5857 = vst [vmem:[%s8860_s29 + $0x80] sm:$0xff] %v5779_v56  ;;  %v5790_v40 = vadd.f32 %v6826_v34, %v5629_v58  ;;  %v5642_v17 = vadd.f32 %v6739_v55, %v8788_v0  ;;  %v9073_v0 = vld [vmem:[#allocation14_spill] sm:$0xff]  ;;  %v9079_v34 = vld [vmem:[#allocation21_spill] sm:$0xff] }
 0x2fb   : > { %v6741_v10 = vpop.f32.mrf.mxu1  ;;  %v5781_v25 = vpop.f32.mrf.mxu0  ;;  %v5637_v43 = vadd.f32 %v6736_v3, %v9073_v0 }
 0x2fc   : > { %5860 = vst [vmem:[%s8860_s29 + $0x98] sm:$0xff] %v5790_v40  ;;  %v5782_v48 = vadd.f32 %v5781_v25, %v5621_v11  ;;  %v6742_v49 = vadd.f32 %v6741_v10, %v6740_v21 }
 0x2fe   : > { %5858 = vst [vmem:[%s8860_s29 + $0x88] sm:$0xff] %v5782_v48  ;;  %v6743_v50 = vpop.f32.mrf.mxu1  ;;  %v6829_v23 = vpop.f32.mrf.mxu0  ;;  %v5645_v26 = vadd.f32 %v6742_v49, %v9072_v36 }
 0x2ff   : > { %v5803_v24 = vadd.f32 %v6829_v23, %v5642_v17 }
 0x300   : > { %v6744_v33 = vpop.f32.mrf.mxu1  ;;  %v5794_v42 = vpop.f32.mrf.mxu0 }
 0x301   : > { %5863 = vst [vmem:[%s8860_s29 + $0xb0] sm:$0xff] %v5803_v24  ;;  %v5795_v38 = vadd.f32 %v5794_v42, %v5634_v19  ;;  %v6745_v35 = vadd.f32 %v6744_v33, %v6743_v50  ;;  %v9080_v50 = vld [vmem:[#allocation22_spill] sm:$0xff] }
 0x302   : > { %v6746_v51 = vpop.f32.mrf.mxu1  ;;  %v6830_v52 = vpop.f32.mrf.mxu0 }
 0x303   : > { %5861 = vst [vmem:[%s8860_s29 + $0xa0] sm:$0xff] %v5795_v38  ;;  %v5806_v31 = vadd.f32 %v6830_v52, %v5645_v26  ;;  %v5650_v14 = vadd.f32 %v6745_v35, %v9074_v47 }
 0x304   : > { %v6747_v37 = vpop.f32.mrf.mxu1  ;;  %v5797_v54 = vpop.f32.mrf.mxu0 }
 0x305   : > { %5864 = vst [vmem:[%s8860_s29 + $0xb8] sm:$0xff] %v5806_v31  ;;  %v5798_v2 = vadd.f32 %v5797_v54, %v5637_v43  ;;  %v6748_v44 = vadd.f32 %v6747_v37, %v6746_v51 }
 0x307   : > { %5862 = vst [vmem:[%s8860_s29 + $0xa8] sm:$0xff] %v5798_v2  ;;  %v5653_v41 = vadd.f32 %v6748_v44, %v9076_v59 }
 0x309   : > { %v6749_v28 = vpop.f32.mrf.mxu1 }
 0x30b   : > { %v6833_v12 = vpop.f32.mrf.mxu0  ;;  %v6750_v5 = vpop.f32.mrf.mxu1 }
 0x30c   : > { %v6751_v27 = vadd.f32 %v6750_v5, %v6749_v28 }
 0x30d   : > { %v5810_v39 = vpop.f32.mrf.mxu0  ;;  %v6752_v6 = vpop.f32.mrf.mxu1 }
 0x30e   : > { %v5658_v4 = vadd.f32 %v6751_v27, %v9075_v45  ;;  %v5811_v61 = vadd.f32 %v5810_v39, %v5650_v14 }
 0x30f   : > { %v6834_v18 = vpop.f32.mrf.mxu0  ;;  %v6753_v22 = vpop.f32.mrf.mxu1 }
 0x310   : > { %v5819_v62 = vadd.f32 %v6833_v12, %v5658_v4  ;;  %5865 = vst [vmem:[%s8860_s29 + $0xc0] sm:$0xff] %v5811_v61  ;;  %v6754_v53 = vadd.f32 %v6753_v22, %v6752_v6 }
 0x311   : > { %v5813_v8 = vpop.f32.mrf.mxu0 }
 0x312   : > { %5867 = vst [vmem:[%s8860_s29 + $0xd0] sm:$0xff] %v5819_v62  ;;  %v5661_v29 = vadd.f32 %v6754_v53, %v9077_v57  ;;  %v5814_v32 = vadd.f32 %v5813_v8, %v5653_v41 }
 0x314   : > { %v5822_v9 = vadd.f32 %v6834_v18, %v5661_v29  ;;  %5866 = vst [vmem:[%s8860_s29 + $0xc8] sm:$0xff] %v5814_v32  ;;  %v6755_v16 = vpop.f32.mrf.mxu1 }
 0x316   : > { %5868 = vst [vmem:[%s8860_s29 + $0xd8] sm:$0xff] %v5822_v9  ;;  %v6756_v1 = vpop.f32.mrf.mxu1 }
 0x317   : > { %v6757_v63 = vadd.f32 %v6756_v1, %v6755_v16 }
 0x318   : > { %v6758_v7 = vpop.f32.mrf.mxu1 }
 0x319   : > { %v5666_v56 = vadd.f32 %v6757_v63, %v9078_v46 }
 0x31a   : > { %v6759_v15 = vpop.f32.mrf.mxu1 }
 0x31b   : > { %v6760_v60 = vadd.f32 %v6759_v15, %v6758_v7  ;;  %v6837_v58 = vpop.f32.mrf.mxu0 }
 0x31d   : > { %v5826_v55 = vpop.f32.mrf.mxu0  ;;  %v5669_v40 = vadd.f32 %v6760_v60, %v9079_v34 }
 0x31e   : > { %v5827_v21 = vadd.f32 %v5826_v55, %v5666_v56 }
 0x31f   : > { %v6838_v11 = vpop.f32.mrf.mxu0 }
 0x320   : > { %5869 = vst [vmem:[%s8860_s29 + $0xe0] sm:$0xff] %v5827_v21 }
 0x321   : > { %v5829_v20 = vpop.f32.mrf.mxu0 }
 0x322   : > { %v5830_v10 = vadd.f32 %v5829_v20, %v5669_v40 }
 0x324   : > { %5870 = vst [vmem:[%s8860_s29 + $0xe8] sm:$0xff] %v5830_v10 }
 0x327   : > { %v6761_v25 = vpop.f32.mrf.mxu1 }
 0x329   : > { %v6762_v48 = vpop.f32.mrf.mxu1 }
 0x32a   : > { %v6763_v49 = vadd.f32 %v6762_v48, %v6761_v25 }
 0x32b   : > { %v6764_v17 = vpop.f32.mrf.mxu1 }
 0x32c   : > { %v5674_v23 = vadd.f32 %v6763_v49, %v9080_v50 }
 0x32d   : > { %v6765_v3 = vpop.f32.mrf.mxu1 }
 0x32e   : > { %v5835_v24 = vadd.f32 %v6837_v58, %v5674_v23  ;;  %v6766_v30 = vadd.f32 %v6765_v3, %v6764_v17 }
 0x330   : > { %5871 = vst [vmem:[%s8860_s29 + $0xf0] sm:$0xff] %v5835_v24  ;;  %v5677_v19 = vadd.f32 %v6766_v30, %v8853_v13 }
 0x332   : > { %v5838_v33 = vadd.f32 %v6838_v11, %v5677_v19 }
 0x334   : > { %5872 = vst [vmem:[%s8860_s29 + $0xf8] sm:$0xff] %v5838_v33 }
 0x335   : > { %7271 = shalt.err (!%p7268_p0)
}
 0x336   : > { %s7272_s10 = scalar_lea.hbm %s8954_s15, 4096  ;;  %s7276_s24 = scalar_lea.hbm %s9005_s5, 8192 }
 0x337   : > { %p7273_p5 = scmp.ne.s32.totalorder %s8954_s15, %s7272_s10  ;;  %p7277_p4 = scmp.lt.s32.totalorder %s8954_s15, %s9005_s5 }
 0x338   : > { %p7278_p6 = scmp.lt.s32.totalorder %s7276_s24, %s7272_s10 }
 0x339   : > { %p7274_p9 = pnand %p7273_p5, %p9081_p11 }
 0x33a   : > { %p7279_p8 = por %p7278_p6, %p7277_p4 }
 0x33b   : > { %p7275_p1 = pneg %p7274_p9 }
 0x33d   : > { %p7280_p3 = pnand %p7279_p8, %p7275_p1 }
 0x33f   : > { %7283 = shalt.err (!%p7280_p3)
}
 0x340   : > { %s7336_s12 = smov 128   ;;  %s7337_s7 = smov 8  }
 0x341   : > { %6861 = dma.vmem_to_hbm [thread:$0]  (%p9081_p11), %s8956_s6, 4096, %s8954_s15, %s5874_s23, %s7336_s12, %s7336_s12, %s7337_s7  }
 0x342 PF: > { %s5902_s8 = sand.u32 1, %s7314_s18   ;;  %p9082_p7 = scmp.ne.s32.totalorder %s9012_s25, 0 }
 0x343   : > { %p9083_p12 = scmp.ge.s32.totalorder %s7326_s21, 2  ;;  %s5903_s27 = scalar_lea.sflag [#allocation6], %s5902_s8 }
 0x345   : > { %p6872_p10 = pnand %p9083_p12, %p9082_p7 }
 0x347   : > { %p6873_p2 = pneg %p6872_p10 }
 0x349   : > { %7309 = dma.done.wait (%p6873_p2), %s5903_s27, 4096  }
 0x34a   : > { %7311 = vsyncadd (%p6873_p2), %s5903_s27, 4294963200  ;;  %p19_p13 = scmp.ge.s32.totalorder %s7422_s30, 4   ;;  %s9084_s18 = smov %s7318_s19 }
 0x34b   : > { %s9085_s19 = smov %s7322_s20  ;;  %s9086_s20 = smov %s7439_s13 }
 0x34c   : > { %s9087_s21 = smov %s7422_s30  ;;  %21 = sbr.rel (!%p19_p13) target bundleno = 6 (0x6), region = 92 }
 0x351   :  { %5908 = vsyncpa [#allocation5], 1 }
 0x352   :  { %5910 = vsyncpa [#allocation5 + $0x1], 1 }
 0x353   :  { %5911 = vsyncpa [#allocation8], 1 }
 0x354   :  { %5912 = vsyncpa [#allocation6], 1 }
 0x355   :  { %5914 = vsyncpa [#allocation6 + $0x1], 1 }

</bundles_post_ra>
